<compile_context>
chip_gen: v5e
topology: v5e:2x2
jax: 0.10.0
libtpu: 0.0.40
codegen_flags: <defaults>
</compile_context>

<pallas_src>
import numpy as np

import jax
import jax.numpy as jnp
from jax import lax
from jax.experimental import pallas as pl
from jax.experimental.pallas import tpu as pltpu

INPUT_SIZE = 4
EMBED_SIZE = 8
HIDDEN = 32        # must be 32 (hard-coded reshape(32,32) / Linear(32,1) in DeepAR)
NUM_TS = 1         # num_ts * hidden must equal 32
NUM_LAYERS = 1     # single-layer LSTM (h[-1] == h)
SEQ_LEN = 8
HORIZON = 4
NUM_SAMPLES = 8    # Monte-Carlo sample paths batched along the sublane dimension


def _softplus(x):
    """Numerically-stable log(1 + exp(x)) from ops with guaranteed TPU lowerings."""
    return jnp.maximum(x, 0.0) + jnp.log(1.0 + jnp.exp(-jnp.abs(x)))


# ----------------------------------------------------------------------------
# Pallas kernel
# ----------------------------------------------------------------------------
def deepar_kernel(xall_ref, eps_ref, wx_ref, whh_ref, u_ref, wms_ref, coef_ref,
                  mu_ref, sigma_ref, ypred_ref, hs_ref):
    T, S, H, N, I = SEQ_LEN + HORIZON, SEQ_LEN, HIDDEN, NUM_SAMPLES, INPUT_SIZE

    # ---- SMEM scalars: embed_fun folded into rank-1 coefficients + head biases
    asc, abi = coef_ref[0], coef_ref[1]     # attention:   exp(asc * h_j + abi)
    oasc, oabi = coef_ref[2], coef_ref[3]   # output head, reshape_feat half
    obs, obb = coef_ref[4], coef_ref[5]     # output head, weighted-prefix half
    b_mu, b_sig = coef_ref[6], coef_ref[7]  # Gaussian head biases

    def gauss_head(hrows):
        """Attention block + Gaussian likelihood head for a batch of h rows (M, H)."""
        attn = jnp.exp(asc * hrows + abi)                         # (M, H)
        a_rows = oasc * hrows + oabi                              # (M, H)
        b_rows = obs * hrows + obb                                # (M, H)
        m = attn.shape[0]
        # One prefix matmul against the strict-lower mask U gives both the
        # accumulated attention (rows :m) and the weighted numerator (rows m:).
        num = jnp.concatenate([attn, attn * b_rows], axis=0)      # (2M, H)
        ps = jnp.dot(num, u_ref[...], preferred_element_type=jnp.float32)
        ratio = ps[m:, :] * pl.reciprocal(ps[:m, :] + 1e-9, approx=True)
        out = jnp.tanh(a_rows + ratio)                            # (M, H)
        ms = jnp.dot(out, wms_ref[...], preferred_element_type=jnp.float32)
        mu = ms[:, 0:1] + b_mu                                    # (M, 1)
        sigma = _softplus(ms[:, 1:2] + b_sig) + 1e-6              # (M, 1)
        return mu, sigma

    def lstm_cell(xg_row, y_term, h, c):
        """LSTM cell with gates host-reordered to (i, f, o | g)."""
        gates = xg_row + jnp.dot(h, whh_ref[...],
                                 preferred_element_type=jnp.float32)
        if y_term is not None:
            gates = gates + y_term
        sg = jax.nn.sigmoid(gates[:, 0:3 * H])      # i | f | o in one EUP pass
        gg = jnp.tanh(gates[:, 3 * H:4 * H])        # g
        c_new = sg[:, H:2 * H] * c + sg[:, 0:H] * gg
        h_new = sg[:, 2 * H:3 * H] * jnp.tanh(c_new)
        return h_new, c_new

    # ---- hoisted, loop-invariant: one (T, I+2) @ (I+2, 4H) matmul holds the
    #      X-feature, teacher-forced-y and bias contributions for every step.
    xg_all = jnp.dot(xall_ref[...], wx_ref[...],
                     preferred_element_type=jnp.float32)          # (T, 4H)
    w_y = wx_ref[I:I + 1, :]                                      # (1, 4H) y gate row

    # ---- Phase A: conditioning recurrence (batch 1 — all sample paths share it).
    # The attention / likelihood work for these steps never feeds the recurrence,
    # so only the LSTM cell stays on the serial chain; h is stashed for Phase C.
    h = jnp.zeros((1, H), jnp.float32)
    c = jnp.zeros((1, H), jnp.float32)
    for s in range(S - 1):
        h, c = lstm_cell(xg_all[s:s + 1, :], None, h, c)
        hs_ref[s:s + 1, :] = h

    # ---- Phase B: boundary step s = S-1 (head needed to seed sampling), then
    #      the sampled horizon, batched over the N Monte-Carlo paths.
    h, c = lstm_cell(xg_all[S - 1:S, :], None, h, c)              # (1, H)
    mu_b, sigma_b = gauss_head(h)                                 # (1, 1)
    mu_ref[:, S - 1:S] = jnp.broadcast_to(mu_b, (N, 1))
    sigma_ref[:, S - 1:S] = jnp.broadcast_to(sigma_b, (N, 1))
    ynext = mu_b + sigma_b * eps_ref[:, S - 1:S]                  # (N, 1) paths fan out
    ypred_ref[:, 0:1] = ynext

    for s in range(S, T):
        # h broadcasts from (1,H) to (N,H) on the first horizon step via y_term.
        h, c = lstm_cell(xg_all[s:s + 1, :], ynext * w_y, h, c)   # (N, H)
        mu_s, sigma_s = gauss_head(h)                             # (N, 1)
        mu_ref[:, s:s + 1] = mu_s
        sigma_ref[:, s:s + 1] = sigma_s
        ynext = mu_s + sigma_s * eps_ref[:, s:s + 1]              # gaussian_sample
        if s < T - 1:
            ypred_ref[:, s - S + 1:s - S + 2] = ynext

    # ---- Phase C: deferred conditioning-phase heads, batched over (S-1, H) rows.
    mu_c, sigma_c = gauss_head(hs_ref[...])                       # (S-1, 1)
    for s in range(S - 1):
        mu_ref[:, s:s + 1] = jnp.broadcast_to(mu_c[s:s + 1, :], (N, 1))
        sigma_ref[:, s:s + 1] = jnp.broadcast_to(sigma_c[s:s + 1, :], (N, 1))


# ----------------------------------------------------------------------------
# Wrapper
# ----------------------------------------------------------------------------
@jax.jit
def deepar_forward(X, y, Xf, noise, kp):
    """X:(1,S,I)  y:(1,S)  Xf:(1,P,I)  noise:(N,S+P)  ->  (ypred, mu, sigma)."""
    T = SEQ_LEN + HORIZON
    # Fold teacher-forced y and the gate bias into the hoisted input matmul:
    # columns are [X features | y (zeros for the horizon) | 1].
    x_cond = jnp.concatenate(
        [X.reshape(SEQ_LEN, INPUT_SIZE), y.reshape(SEQ_LEN, 1),
         jnp.ones((SEQ_LEN, 1), jnp.float32)], axis=1)
    x_hor = jnp.concatenate(
        [Xf.reshape(HORIZON, INPUT_SIZE), jnp.zeros((HORIZON, 1), jnp.float32),
         jnp.ones((HORIZON, 1), jnp.float32)], axis=1)
    x_all = jnp.concatenate([x_cond, x_hor], axis=0)              # (T, I+2)

    vmem = pl.BlockSpec(memory_space=pltpu.MemorySpace.VMEM)
    smem = pl.BlockSpec(memory_space=pltpu.MemorySpace.SMEM)
    args = (x_all, noise, kp["Wx"], kp["Whh"], kp["U"], kp["Wms"], kp["coef"])
    mu, sigma, ypred = pl.pallas_call(
        deepar_kernel,
        out_shape=(jax.ShapeDtypeStruct((NUM_SAMPLES, T), jnp.float32),
                   jax.ShapeDtypeStruct((NUM_SAMPLES, T), jnp.float32),
                   jax.ShapeDtypeStruct((NUM_SAMPLES, HORIZON), jnp.float32)),
        in_specs=[vmem, vmem, vmem, vmem, vmem, vmem, smem],
        out_specs=(vmem, vmem, vmem),
        scratch_shapes=[pltpu.VMEM((SEQ_LEN - 1, HIDDEN), jnp.float32)],
    )(*args)
    return ypred, mu, sigma


# ----------------------------------------------------------------------------
# Host-side parameter construction (PyTorch shapes) and kernel-layout folding
# ----------------------------------------------------------------------------
def init_torch_params(key):
    """Deterministic synthetic parameters in the module's native PyTorch shapes."""
    ks = jax.random.split(key, 16)

    def lin(k, shape, scale=0.1):
        return (scale * jax.random.normal(k, shape)).astype(jnp.float32)

    E, H, I = EMBED_SIZE, HIDDEN, INPUT_SIZE
    return dict(
        W_ie=lin(ks[0], (E, 1)), b_ie=lin(ks[1], (E,)),            # input_embed
        W_ih=lin(ks[2], (4 * H, E + I)), W_hh=lin(ks[3], (4 * H, H)),
        b_ih=lin(ks[4], (4 * H,)), b_hh=lin(ks[5], (4 * H,)),      # LSTM (i,f,g,o)
        W_ef=lin(ks[6], (32, 1)), b_ef=lin(ks[7], (32,)),          # embed_fun
        W_attn=lin(ks[8], (1, 32)), b_attn=lin(ks[9], (1,)),       # attention head
        W_out=lin(ks[10], (1, 64)), b_out=lin(ks[11], (1,)),       # output_func
        W_mu=lin(ks[12], (1, 32)), b_mu=lin(ks[13], (1,)),         # Gaussian heads
        W_sig=lin(ks[14], (1, 32)), b_sig=lin(ks[15], (1,)),
    )


def pack_kernel_params(tp):
    """Host-side weight folding / re-layout (pure re-parameterisation, same math).

    Done in float64 numpy so the folds add no rounding error of their own.
    """
    I, E, H = INPUT_SIZE, EMBED_SIZE, HIDDEN
    f = lambda a: np.asarray(a, dtype=np.float64)

    W_ie, b_ie = f(tp["W_ie"]), f(tp["b_ie"])
    W_ih, W_hh = f(tp["W_ih"]), f(tp["W_hh"])
    b_ih, b_hh = f(tp["b_ih"]), f(tp["b_hh"])
    W_ef, b_ef = f(tp["W_ef"])[:, 0], f(tp["b_ef"])
    W_attn, b_attn = f(tp["W_attn"])[0], f(tp["b_attn"])[0]
    W_out, b_out = f(tp["W_out"])[0], f(tp["b_out"])[0]
    W_mu, b_mu = f(tp["W_mu"]), f(tp["b_mu"])
    W_sig, b_sig = f(tp["W_sig"]), f(tp["b_sig"])

    # LSTM gate reorder: PyTorch (i, f, g, o) -> (i, f, o, g) so the kernel can
    # run ONE sigmoid over the first 3H gate lanes and ONE tanh over the last H.
    perm = np.concatenate([np.arange(0, H), np.arange(H, 2 * H),
                           np.arange(3 * H, 4 * H), np.arange(2 * H, 3 * H)])
    W_ih_r, W_hh_r = W_ih[perm], W_hh[perm]
    b_r = (b_ih + b_hh)[perm]

    Wih_x = W_ih_r[:, :I].T                        # (I, 4H)  X-feature columns
    Wih_y = W_ih_r[:, I:].T                        # (E, 4H)  yembed columns
    # input_embed (Linear(1,E)) folded through the LSTM's yembed columns.
    w_y = W_ie.T @ Wih_y                           # (1, 4H)
    b_gate = b_r[None, :] + b_ie[None, :] @ Wih_y  # (1, 4H)  every bias folded
    # Hoisted-matmul weight: rows = [X-feature cols | folded-y row | folded-bias row]
    Wx = np.concatenate([Wih_x, w_y, b_gate], axis=0)            # (I+2, 4H)

    # embed_fun (Linear(1,32)) composed with the Linear(32,.) heads collapses to
    # rank-1 scale/bias coefficients (packed into one SMEM scalar array).
    attn_scale, attn_bias = W_attn @ W_ef, W_attn @ b_ef + b_attn
    outa_scale, outa_bias = W_out[:32] @ W_ef, W_out[:32] @ b_ef + b_out
    outb_scale, outb_bias = W_out[32:] @ W_ef, W_out[32:] @ b_ef

    kp = dict(
        Wx=Wx, Whh=W_hh_r.T,
        U=np.triu(np.ones((H, H)), k=1),           # U[j, i] = 1  iff  j < i
        Wms=np.concatenate([W_mu.T, W_sig.T], axis=1),            # (32, 2)
        coef=np.array([attn_scale, attn_bias, outa_scale, outa_bias,
                       outb_scale, outb_bias, b_mu[0], b_sig[0]]),
    )
    return {k: jnp.asarray(v, dtype=jnp.float32) for k, v in kp.items()}


# ----------------------------------------------------------------------------
# Pure-JAX reference that follows the PyTorch module op-for-op (unfused weights,
# full 32x32 attention block).  Dots use HIGHEST precision so the reference is
# an exact-f32 baseline.  One call == one sample path (one noise row).
# ----------------------------------------------------------------------------
def deepar_reference(X, y, Xf, noise, tp):
    hp = lax.Precision.HIGHEST
    T, H = SEQ_LEN + HORIZON, HIDDEN
    h = jnp.zeros((1, H), jnp.float32)
    c = jnp.zeros((1, H), jnp.float32)
    ynext = jnp.zeros((1, 1), jnp.float32)
    flag = jnp.triu(jnp.ones((32, 32), jnp.float32), k=1).T   # flag[i,j]=1 iff j<i
    mus, sigmas, ypred = [], [], []
    for s in range(T):
        if s < SEQ_LEN:
            yin, x = y[:, s:s + 1], X[:, s, :]
        else:
            yin, x = ynext, Xf[:, s - SEQ_LEN, :]
        yembed = jnp.dot(yin, tp["W_ie"].T, precision=hp) + tp["b_ie"]
        inp = jnp.concatenate([x, yembed], axis=1)
        gates = (jnp.dot(inp, tp["W_ih"].T, precision=hp)
                 + jnp.dot(h, tp["W_hh"].T, precision=hp) + tp["b_ih"] + tp["b_hh"])
        i_g = jax.nn.sigmoid(gates[:, 0:H])
        f_g = jax.nn.sigmoid(gates[:, H:2 * H])
        g_g = jnp.tanh(gates[:, 2 * H:3 * H])
        o_g = jax.nn.sigmoid(gates[:, 3 * H:4 * H])
        c = f_g * c + i_g * g_g
        h = o_g * jnp.tanh(c)

        reshape_feat = jnp.dot(h.reshape(32, 1), tp["W_ef"].T, precision=hp) + tp["b_ef"]
        attn = jnp.exp(jnp.dot(reshape_feat, tp["W_attn"].T, precision=hp)
                       + tp["b_attn"]).reshape(1, 32)
        accum = jnp.sum(attn * flag, axis=-1, keepdims=True) + 1e-9      # (32, 1)
        attn_w = (attn * flag) / accum                                   # (32, 32)
        weighted = jnp.dot(attn_w, reshape_feat, precision=hp)           # (32, 32)
        mix = jnp.concatenate([reshape_feat, weighted], axis=-1)         # (32, 64)
        out = jnp.tanh(jnp.dot(mix, tp["W_out"].T, precision=hp)
                       + tp["b_out"]).reshape(1, 32)
        mu = jnp.dot(out, tp["W_mu"].T, precision=hp) + tp["b_mu"]
        sigma = _softplus(jnp.dot(out, tp["W_sig"].T, precision=hp) + tp["b_sig"]) + 1e-6
        ynext = mu + sigma * noise[:, s:s + 1]
        mus.append(mu)
        sigmas.append(sigma)
        if SEQ_LEN - 1 <= s < T - 1:
            ypred.append(ynext)
    return (jnp.concatenate(ypred, axis=1),
            jnp.concatenate(mus, axis=1),
            jnp.concatenate(sigmas, axis=1))


if __name__ == "__main__":
    key = jax.random.PRNGKey(0)
    k_p, k_x, k_y, k_xf, k_n = jax.random.split(key, 5)
    tp = init_torch_params(k_p)
    kp = pack_kernel_params(tp)

    T = SEQ_LEN + HORIZON
    X = jax.random.normal(k_x, (NUM_TS, SEQ_LEN, INPUT_SIZE), jnp.float32)
    y = jax.random.normal(k_y, (NUM_TS, SEQ_LEN), jnp.float32)
    Xf = jax.random.normal(k_xf, (NUM_TS, HORIZON, INPUT_SIZE), jnp.float32)
    noise = jax.random.normal(k_n, (NUM_SAMPLES, T), jnp.float32)   # one row per path

    ypred, mu, sigma = jax.block_until_ready(deepar_forward(X, y, Xf, noise, kp))

    # Reference = NUM_SAMPLES independent runs of the (num_ts=1) module, one per
    # noise row, stacked along the sample-path (sublane) batch dimension.
    ref_single = jax.jit(lambda nz: deepar_reference(X, y, Xf, nz, tp))
    refs = [ref_single(noise[n:n + 1, :]) for n in range(NUM_SAMPLES)]
    ypred_r = jnp.concatenate([r[0] for r in refs], axis=0)
    mu_r = jnp.concatenate([r[1] for r in refs], axis=0)
    sigma_r = jnp.concatenate([r[2] for r in refs], axis=0)

    assert ypred.shape == (NUM_SAMPLES, HORIZON)
    assert mu.shape == (NUM_SAMPLES, T) and sigma.shape == (NUM_SAMPLES, T)
    assert bool(jnp.all(jnp.isfinite(mu))) and bool(jnp.all(jnp.isfinite(sigma)))
    # Tolerance covers MXU f32 pass-precision differences, the benign host-side
    # weight-folding reassociation, and the approximate-EUP reciprocal used for
    # the attention denominator.  Structural errors would show up as O(1e-1).
    assert bool(jnp.allclose(mu, mu_r, atol=5e-3, rtol=5e-3))
    assert bool(jnp.allclose(sigma, sigma_r, atol=5e-3, rtol=5e-3))
    assert bool(jnp.allclose(ypred, ypred_r, atol=5e-3, rtol=5e-3))
    print("KERNEL_OK")
</pallas_src>

<mosaic_0001>
module attributes {stable_mosaic.version = 11 : i64} {
  func.func @deepar_kernel(%arg0: memref<12x6xf32, #tpu.memory_space<vmem>>, %arg1: memref<8x12xf32, #tpu.memory_space<vmem>>, %arg2: memref<6x128xf32, #tpu.memory_space<vmem>>, %arg3: memref<32x128xf32, #tpu.memory_space<vmem>>, %arg4: memref<32x32xf32, #tpu.memory_space<vmem>>, %arg5: memref<32x2xf32, #tpu.memory_space<vmem>>, %arg6: memref<8xf32, #tpu.memory_space<smem>>, %arg7: memref<8x12xf32, #tpu.memory_space<vmem>>, %arg8: memref<8x12xf32, #tpu.memory_space<vmem>>, %arg9: memref<8x4xf32, #tpu.memory_space<vmem>>, %arg10: memref<7x32xf32, #tpu.memory_space<vmem>>) attributes {dimension_semantics = [], scalar_prefetch = 0 : i64, scratch_operands = 1 : i64, tpu.core_type = #tpu.core_type<tc>} {
    %c0 = arith.constant 0 : index
    %0 = memref.load %arg6[%c0] : memref<8xf32, #tpu.memory_space<smem>>
    %c1 = arith.constant 1 : index
    %1 = memref.load %arg6[%c1] : memref<8xf32, #tpu.memory_space<smem>>
    %c2 = arith.constant 2 : index
    %2 = memref.load %arg6[%c2] : memref<8xf32, #tpu.memory_space<smem>>
    %c3 = arith.constant 3 : index
    %3 = memref.load %arg6[%c3] : memref<8xf32, #tpu.memory_space<smem>>
    %c4 = arith.constant 4 : index
    %4 = memref.load %arg6[%c4] : memref<8xf32, #tpu.memory_space<smem>>
    %c5 = arith.constant 5 : index
    %5 = memref.load %arg6[%c5] : memref<8xf32, #tpu.memory_space<smem>>
    %c6 = arith.constant 6 : index
    %6 = memref.load %arg6[%c6] : memref<8xf32, #tpu.memory_space<smem>>
    %c7 = arith.constant 7 : index
    %7 = memref.load %arg6[%c7] : memref<8xf32, #tpu.memory_space<smem>>
    %c0_0 = arith.constant 0 : index
    %c0_1 = arith.constant 0 : index
    %8 = vector.load %arg0[%c0_0, %c0_1] : memref<12x6xf32, #tpu.memory_space<vmem>>, vector<12x6xf32>
    %c0_2 = arith.constant 0 : index
    %c0_3 = arith.constant 0 : index
    %9 = vector.load %arg2[%c0_2, %c0_3] : memref<6x128xf32, #tpu.memory_space<vmem>>, vector<6x128xf32>
    %cst = arith.constant dense<0.000000e+00> : vector<12x128xf32>
    %10 = tpu.matmul %8, %9, %cst {dimension_numbers = #tpu.dot_dimension_numbers<[1], [0], [0], [1], [0, 0, 1, 1], [], []>} : vector<12x6xf32>, vector<6x128xf32>, vector<12x128xf32> -> vector<12x128xf32>
    %c4_4 = arith.constant 4 : index
    %c0_5 = arith.constant 0 : index
    %11 = vector.load %arg2[%c4_4, %c0_5] : memref<6x128xf32, #tpu.memory_space<vmem>>, vector<1x128xf32>
    %cst_6 = arith.constant 0.000000e+00 : f32
    %12 = vector.broadcast %cst_6 : f32 to vector<1x32xf32>
    %cst_7 = arith.constant 0.000000e+00 : f32
    %13 = vector.broadcast %cst_7 : f32 to vector<1x32xf32>
    %14 = vector.extract_strided_slice %10 {offsets = [0, 0], sizes = [1, 128], strides = [1, 1]} : vector<12x128xf32> to vector<1x128xf32>
    %c0_8 = arith.constant 0 : index
    %c0_9 = arith.constant 0 : index
    %15 = vector.load %arg3[%c0_8, %c0_9] : memref<32x128xf32, #tpu.memory_space<vmem>>, vector<32x128xf32>
    %cst_10 = arith.constant dense<0.000000e+00> : vector<1x128xf32>
    %16 = tpu.matmul %12, %15, %cst_10 {dimension_numbers = #tpu.dot_dimension_numbers<[1], [0], [0], [1], [0, 0, 1, 1], [], []>} : vector<1x32xf32>, vector<32x128xf32>, vector<1x128xf32> -> vector<1x128xf32>
    %17 = arith.addf %14, %16 : vector<1x128xf32>
    %18 = vector.extract_strided_slice %17 {offsets = [0, 0], sizes = [1, 96], strides = [1, 1]} : vector<1x128xf32> to vector<1x96xf32>
    %19 = arith.negf %18 : vector<1x96xf32>
    %20 = math.exp %19 : vector<1x96xf32>
    %cst_11 = arith.constant 1.000000e+00 : f32
    %21 = vector.broadcast %cst_11 : f32 to vector<1x96xf32>
    %22 = arith.addf %21, %20 : vector<1x96xf32>
    %23 = arith.divf %21, %22 : vector<1x96xf32>
    %24 = vector.extract_strided_slice %17 {offsets = [0, 96], sizes = [1, 32], strides = [1, 1]} : vector<1x128xf32> to vector<1x32xf32>
    %25 = math.tanh %24 : vector<1x32xf32>
    %26 = vector.extract_strided_slice %23 {offsets = [0, 32], sizes = [1, 32], strides = [1, 1]} : vector<1x96xf32> to vector<1x32xf32>
    %27 = arith.mulf %26, %13 : vector<1x32xf32>
    %28 = vector.extract_strided_slice %23 {offsets = [0, 0], sizes = [1, 32], strides = [1, 1]} : vector<1x96xf32> to vector<1x32xf32>
    %29 = arith.mulf %28, %25 : vector<1x32xf32>
    %30 = arith.addf %27, %29 : vector<1x32xf32>
    %31 = vector.extract_strided_slice %23 {offsets = [0, 64], sizes = [1, 32], strides = [1, 1]} : vector<1x96xf32> to vector<1x32xf32>
    %32 = math.tanh %30 : vector<1x32xf32>
    %33 = arith.mulf %31, %32 : vector<1x32xf32>
    %c0_12 = arith.constant 0 : index
    %c0_13 = arith.constant 0 : index
    %34 = vector.load %arg10[%c0_12, %c0_13] : memref<7x32xf32, #tpu.memory_space<vmem>>, vector<1x32xf32>
    tpu.vector_store %arg10[%c0_12, %c0_13], %33 {strides = array<i32>} : memref<7x32xf32, #tpu.memory_space<vmem>>, vector<1x32xf32>,
    %35 = vector.extract_strided_slice %10 {offsets = [1, 0], sizes = [1, 128], strides = [1, 1]} : vector<12x128xf32> to vector<1x128xf32>
    %c0_14 = arith.constant 0 : index
    %c0_15 = arith.constant 0 : index
    %36 = vector.load %arg3[%c0_14, %c0_15] : memref<32x128xf32, #tpu.memory_space<vmem>>, vector<32x128xf32>
    %cst_16 = arith.constant dense<0.000000e+00> : vector<1x128xf32>
    %37 = tpu.matmul %33, %36, %cst_16 {dimension_numbers = #tpu.dot_dimension_numbers<[1], [0], [0], [1], [0, 0, 1, 1], [], []>} : vector<1x32xf32>, vector<32x128xf32>, vector<1x128xf32> -> vector<1x128xf32>
    %38 = arith.addf %35, %37 : vector<1x128xf32>
    %39 = vector.extract_strided_slice %38 {offsets = [0, 0], sizes = [1, 96], strides = [1, 1]} : vector<1x128xf32> to vector<1x96xf32>
    %40 = arith.negf %39 : vector<1x96xf32>
    %41 = math.exp %40 : vector<1x96xf32>
    %cst_17 = arith.constant 1.000000e+00 : f32
    %42 = vector.broadcast %cst_17 : f32 to vector<1x96xf32>
    %43 = arith.addf %42, %41 : vector<1x96xf32>
    %44 = arith.divf %42, %43 : vector<1x96xf32>
    %45 = vector.extract_strided_slice %38 {offsets = [0, 96], sizes = [1, 32], strides = [1, 1]} : vector<1x128xf32> to vector<1x32xf32>
    %46 = math.tanh %45 : vector<1x32xf32>
    %47 = vector.extract_strided_slice %44 {offsets = [0, 32], sizes = [1, 32], strides = [1, 1]} : vector<1x96xf32> to vector<1x32xf32>
    %48 = arith.mulf %47, %30 : vector<1x32xf32>
    %49 = vector.extract_strided_slice %44 {offsets = [0, 0], sizes = [1, 32], strides = [1, 1]} : vector<1x96xf32> to vector<1x32xf32>
    %50 = arith.mulf %49, %46 : vector<1x32xf32>
    %51 = arith.addf %48, %50 : vector<1x32xf32>
    %52 = vector.extract_strided_slice %44 {offsets = [0, 64], sizes = [1, 32], strides = [1, 1]} : vector<1x96xf32> to vector<1x32xf32>
    %53 = math.tanh %51 : vector<1x32xf32>
    %54 = arith.mulf %52, %53 : vector<1x32xf32>
    %c1_18 = arith.constant 1 : index
    %c0_19 = arith.constant 0 : index
    %55 = vector.load %arg10[%c1_18, %c0_19] : memref<7x32xf32, #tpu.memory_space<vmem>>, vector<1x32xf32>
    tpu.vector_store %arg10[%c1_18, %c0_19], %54 {strides = array<i32>} : memref<7x32xf32, #tpu.memory_space<vmem>>, vector<1x32xf32>,
    %56 = vector.extract_strided_slice %10 {offsets = [2, 0], sizes = [1, 128], strides = [1, 1]} : vector<12x128xf32> to vector<1x128xf32>
    %c0_20 = arith.constant 0 : index
    %c0_21 = arith.constant 0 : index
    %57 = vector.load %arg3[%c0_20, %c0_21] : memref<32x128xf32, #tpu.memory_space<vmem>>, vector<32x128xf32>
    %cst_22 = arith.constant dense<0.000000e+00> : vector<1x128xf32>
    %58 = tpu.matmul %54, %57, %cst_22 {dimension_numbers = #tpu.dot_dimension_numbers<[1], [0], [0], [1], [0, 0, 1, 1], [], []>} : vector<1x32xf32>, vector<32x128xf32>, vector<1x128xf32> -> vector<1x128xf32>
    %59 = arith.addf %56, %58 : vector<1x128xf32>
    %60 = vector.extract_strided_slice %59 {offsets = [0, 0], sizes = [1, 96], strides = [1, 1]} : vector<1x128xf32> to vector<1x96xf32>
    %61 = arith.negf %60 : vector<1x96xf32>
    %62 = math.exp %61 : vector<1x96xf32>
    %cst_23 = arith.constant 1.000000e+00 : f32
    %63 = vector.broadcast %cst_23 : f32 to vector<1x96xf32>
    %64 = arith.addf %63, %62 : vector<1x96xf32>
    %65 = arith.divf %63, %64 : vector<1x96xf32>
    %66 = vector.extract_strided_slice %59 {offsets = [0, 96], sizes = [1, 32], strides = [1, 1]} : vector<1x128xf32> to vector<1x32xf32>
    %67 = math.tanh %66 : vector<1x32xf32>
    %68 = vector.extract_strided_slice %65 {offsets = [0, 32], sizes = [1, 32], strides = [1, 1]} : vector<1x96xf32> to vector<1x32xf32>
    %69 = arith.mulf %68, %51 : vector<1x32xf32>
    %70 = vector.extract_strided_slice %65 {offsets = [0, 0], sizes = [1, 32], strides = [1, 1]} : vector<1x96xf32> to vector<1x32xf32>
    %71 = arith.mulf %70, %67 : vector<1x32xf32>
    %72 = arith.addf %69, %71 : vector<1x32xf32>
    %73 = vector.extract_strided_slice %65 {offsets = [0, 64], sizes = [1, 32], strides = [1, 1]} : vector<1x96xf32> to vector<1x32xf32>
    %74 = math.tanh %72 : vector<1x32xf32>
    %75 = arith.mulf %73, %74 : vector<1x32xf32>
    %c2_24 = arith.constant 2 : index
    %c0_25 = arith.constant 0 : index
    %76 = vector.load %arg10[%c2_24, %c0_25] : memref<7x32xf32, #tpu.memory_space<vmem>>, vector<1x32xf32>
    tpu.vector_store %arg10[%c2_24, %c0_25], %75 {strides = array<i32>} : memref<7x32xf32, #tpu.memory_space<vmem>>, vector<1x32xf32>,
    %77 = vector.extract_strided_slice %10 {offsets = [3, 0], sizes = [1, 128], strides = [1, 1]} : vector<12x128xf32> to vector<1x128xf32>
    %c0_26 = arith.constant 0 : index
    %c0_27 = arith.constant 0 : index
    %78 = vector.load %arg3[%c0_26, %c0_27] : memref<32x128xf32, #tpu.memory_space<vmem>>, vector<32x128xf32>
    %cst_28 = arith.constant dense<0.000000e+00> : vector<1x128xf32>
    %79 = tpu.matmul %75, %78, %cst_28 {dimension_numbers = #tpu.dot_dimension_numbers<[1], [0], [0], [1], [0, 0, 1, 1], [], []>} : vector<1x32xf32>, vector<32x128xf32>, vector<1x128xf32> -> vector<1x128xf32>
    %80 = arith.addf %77, %79 : vector<1x128xf32>
    %81 = vector.extract_strided_slice %80 {offsets = [0, 0], sizes = [1, 96], strides = [1, 1]} : vector<1x128xf32> to vector<1x96xf32>
    %82 = arith.negf %81 : vector<1x96xf32>
    %83 = math.exp %82 : vector<1x96xf32>
    %cst_29 = arith.constant 1.000000e+00 : f32
    %84 = vector.broadcast %cst_29 : f32 to vector<1x96xf32>
    %85 = arith.addf %84, %83 : vector<1x96xf32>
    %86 = arith.divf %84, %85 : vector<1x96xf32>
    %87 = vector.extract_strided_slice %80 {offsets = [0, 96], sizes = [1, 32], strides = [1, 1]} : vector<1x128xf32> to vector<1x32xf32>
    %88 = math.tanh %87 : vector<1x32xf32>
    %89 = vector.extract_strided_slice %86 {offsets = [0, 32], sizes = [1, 32], strides = [1, 1]} : vector<1x96xf32> to vector<1x32xf32>
    %90 = arith.mulf %89, %72 : vector<1x32xf32>
    %91 = vector.extract_strided_slice %86 {offsets = [0, 0], sizes = [1, 32], strides = [1, 1]} : vector<1x96xf32> to vector<1x32xf32>
    %92 = arith.mulf %91, %88 : vector<1x32xf32>
    %93 = arith.addf %90, %92 : vector<1x32xf32>
    %94 = vector.extract_strided_slice %86 {offsets = [0, 64], sizes = [1, 32], strides = [1, 1]} : vector<1x96xf32> to vector<1x32xf32>
    %95 = math.tanh %93 : vector<1x32xf32>
    %96 = arith.mulf %94, %95 : vector<1x32xf32>
    %c3_30 = arith.constant 3 : index
    %c0_31 = arith.constant 0 : index
    %97 = vector.load %arg10[%c3_30, %c0_31] : memref<7x32xf32, #tpu.memory_space<vmem>>, vector<1x32xf32>
    tpu.vector_store %arg10[%c3_30, %c0_31], %96 {strides = array<i32>} : memref<7x32xf32, #tpu.memory_space<vmem>>, vector<1x32xf32>,
    %98 = vector.extract_strided_slice %10 {offsets = [4, 0], sizes = [1, 128], strides = [1, 1]} : vector<12x128xf32> to vector<1x128xf32>
    %c0_32 = arith.constant 0 : index
    %c0_33 = arith.constant 0 : index
    %99 = vector.load %arg3[%c0_32, %c0_33] : memref<32x128xf32, #tpu.memory_space<vmem>>, vector<32x128xf32>
    %cst_34 = arith.constant dense<0.000000e+00> : vector<1x128xf32>
    %100 = tpu.matmul %96, %99, %cst_34 {dimension_numbers = #tpu.dot_dimension_numbers<[1], [0], [0], [1], [0, 0, 1, 1], [], []>} : vector<1x32xf32>, vector<32x128xf32>, vector<1x128xf32> -> vector<1x128xf32>
    %101 = arith.addf %98, %100 : vector<1x128xf32>
    %102 = vector.extract_strided_slice %101 {offsets = [0, 0], sizes = [1, 96], strides = [1, 1]} : vector<1x128xf32> to vector<1x96xf32>
    %103 = arith.negf %102 : vector<1x96xf32>
    %104 = math.exp %103 : vector<1x96xf32>
    %cst_35 = arith.constant 1.000000e+00 : f32
    %105 = vector.broadcast %cst_35 : f32 to vector<1x96xf32>
    %106 = arith.addf %105, %104 : vector<1x96xf32>
    %107 = arith.divf %105, %106 : vector<1x96xf32>
    %108 = vector.extract_strided_slice %101 {offsets = [0, 96], sizes = [1, 32], strides = [1, 1]} : vector<1x128xf32> to vector<1x32xf32>
    %109 = math.tanh %108 : vector<1x32xf32>
    %110 = vector.extract_strided_slice %107 {offsets = [0, 32], sizes = [1, 32], strides = [1, 1]} : vector<1x96xf32> to vector<1x32xf32>
    %111 = arith.mulf %110, %93 : vector<1x32xf32>
    %112 = vector.extract_strided_slice %107 {offsets = [0, 0], sizes = [1, 32], strides = [1, 1]} : vector<1x96xf32> to vector<1x32xf32>
    %113 = arith.mulf %112, %109 : vector<1x32xf32>
    %114 = arith.addf %111, %113 : vector<1x32xf32>
    %115 = vector.extract_strided_slice %107 {offsets = [0, 64], sizes = [1, 32], strides = [1, 1]} : vector<1x96xf32> to vector<1x32xf32>
    %116 = math.tanh %114 : vector<1x32xf32>
    %117 = arith.mulf %115, %116 : vector<1x32xf32>
    %c4_36 = arith.constant 4 : index
    %c0_37 = arith.constant 0 : index
    %118 = vector.load %arg10[%c4_36, %c0_37] : memref<7x32xf32, #tpu.memory_space<vmem>>, vector<1x32xf32>
    tpu.vector_store %arg10[%c4_36, %c0_37], %117 {strides = array<i32>} : memref<7x32xf32, #tpu.memory_space<vmem>>, vector<1x32xf32>,
    %119 = vector.extract_strided_slice %10 {offsets = [5, 0], sizes = [1, 128], strides = [1, 1]} : vector<12x128xf32> to vector<1x128xf32>
    %c0_38 = arith.constant 0 : index
    %c0_39 = arith.constant 0 : index
    %120 = vector.load %arg3[%c0_38, %c0_39] : memref<32x128xf32, #tpu.memory_space<vmem>>, vector<32x128xf32>
    %cst_40 = arith.constant dense<0.000000e+00> : vector<1x128xf32>
    %121 = tpu.matmul %117, %120, %cst_40 {dimension_numbers = #tpu.dot_dimension_numbers<[1], [0], [0], [1], [0, 0, 1, 1], [], []>} : vector<1x32xf32>, vector<32x128xf32>, vector<1x128xf32> -> vector<1x128xf32>
    %122 = arith.addf %119, %121 : vector<1x128xf32>
    %123 = vector.extract_strided_slice %122 {offsets = [0, 0], sizes = [1, 96], strides = [1, 1]} : vector<1x128xf32> to vector<1x96xf32>
    %124 = arith.negf %123 : vector<1x96xf32>
    %125 = math.exp %124 : vector<1x96xf32>
    %cst_41 = arith.constant 1.000000e+00 : f32
    %126 = vector.broadcast %cst_41 : f32 to vector<1x96xf32>
    %127 = arith.addf %126, %125 : vector<1x96xf32>
    %128 = arith.divf %126, %127 : vector<1x96xf32>
    %129 = vector.extract_strided_slice %122 {offsets = [0, 96], sizes = [1, 32], strides = [1, 1]} : vector<1x128xf32> to vector<1x32xf32>
    %130 = math.tanh %129 : vector<1x32xf32>
    %131 = vector.extract_strided_slice %128 {offsets = [0, 32], sizes = [1, 32], strides = [1, 1]} : vector<1x96xf32> to vector<1x32xf32>
    %132 = arith.mulf %131, %114 : vector<1x32xf32>
    %133 = vector.extract_strided_slice %128 {offsets = [0, 0], sizes = [1, 32], strides = [1, 1]} : vector<1x96xf32> to vector<1x32xf32>
    %134 = arith.mulf %133, %130 : vector<1x32xf32>
    %135 = arith.addf %132, %134 : vector<1x32xf32>
    %136 = vector.extract_strided_slice %128 {offsets = [0, 64], sizes = [1, 32], strides = [1, 1]} : vector<1x96xf32> to vector<1x32xf32>
    %137 = math.tanh %135 : vector<1x32xf32>
    %138 = arith.mulf %136, %137 : vector<1x32xf32>
    %c5_42 = arith.constant 5 : index
    %c0_43 = arith.constant 0 : index
    %139 = vector.load %arg10[%c5_42, %c0_43] : memref<7x32xf32, #tpu.memory_space<vmem>>, vector<1x32xf32>
    tpu.vector_store %arg10[%c5_42, %c0_43], %138 {strides = array<i32>} : memref<7x32xf32, #tpu.memory_space<vmem>>, vector<1x32xf32>,
    %140 = vector.extract_strided_slice %10 {offsets = [6, 0], sizes = [1, 128], strides = [1, 1]} : vector<12x128xf32> to vector<1x128xf32>
    %c0_44 = arith.constant 0 : index
    %c0_45 = arith.constant 0 : index
    %141 = vector.load %arg3[%c0_44, %c0_45] : memref<32x128xf32, #tpu.memory_space<vmem>>, vector<32x128xf32>
    %cst_46 = arith.constant dense<0.000000e+00> : vector<1x128xf32>
    %142 = tpu.matmul %138, %141, %cst_46 {dimension_numbers = #tpu.dot_dimension_numbers<[1], [0], [0], [1], [0, 0, 1, 1], [], []>} : vector<1x32xf32>, vector<32x128xf32>, vector<1x128xf32> -> vector<1x128xf32>
    %143 = arith.addf %140, %142 : vector<1x128xf32>
    %144 = vector.extract_strided_slice %143 {offsets = [0, 0], sizes = [1, 96], strides = [1, 1]} : vector<1x128xf32> to vector<1x96xf32>
    %145 = arith.negf %144 : vector<1x96xf32>
    %146 = math.exp %145 : vector<1x96xf32>
    %cst_47 = arith.constant 1.000000e+00 : f32
    %147 = vector.broadcast %cst_47 : f32 to vector<1x96xf32>
    %148 = arith.addf %147, %146 : vector<1x96xf32>
    %149 = arith.divf %147, %148 : vector<1x96xf32>
    %150 = vector.extract_strided_slice %143 {offsets = [0, 96], sizes = [1, 32], strides = [1, 1]} : vector<1x128xf32> to vector<1x32xf32>
    %151 = math.tanh %150 : vector<1x32xf32>
    %152 = vector.extract_strided_slice %149 {offsets = [0, 32], sizes = [1, 32], strides = [1, 1]} : vector<1x96xf32> to vector<1x32xf32>
    %153 = arith.mulf %152, %135 : vector<1x32xf32>
    %154 = vector.extract_strided_slice %149 {offsets = [0, 0], sizes = [1, 32], strides = [1, 1]} : vector<1x96xf32> to vector<1x32xf32>
    %155 = arith.mulf %154, %151 : vector<1x32xf32>
    %156 = arith.addf %153, %155 : vector<1x32xf32>
    %157 = vector.extract_strided_slice %149 {offsets = [0, 64], sizes = [1, 32], strides = [1, 1]} : vector<1x96xf32> to vector<1x32xf32>
    %158 = math.tanh %156 : vector<1x32xf32>
    %159 = arith.mulf %157, %158 : vector<1x32xf32>
    %c6_48 = arith.constant 6 : index
    %c0_49 = arith.constant 0 : index
    %160 = vector.load %arg10[%c6_48, %c0_49] : memref<7x32xf32, #tpu.memory_space<vmem>>, vector<1x32xf32>
    tpu.vector_store %arg10[%c6_48, %c0_49], %159 {strides = array<i32>} : memref<7x32xf32, #tpu.memory_space<vmem>>, vector<1x32xf32>,
    %161 = vector.extract_strided_slice %10 {offsets = [7, 0], sizes = [1, 128], strides = [1, 1]} : vector<12x128xf32> to vector<1x128xf32>
    %c0_50 = arith.constant 0 : index
    %c0_51 = arith.constant 0 : index
    %162 = vector.load %arg3[%c0_50, %c0_51] : memref<32x128xf32, #tpu.memory_space<vmem>>, vector<32x128xf32>
    %cst_52 = arith.constant dense<0.000000e+00> : vector<1x128xf32>
    %163 = tpu.matmul %159, %162, %cst_52 {dimension_numbers = #tpu.dot_dimension_numbers<[1], [0], [0], [1], [0, 0, 1, 1], [], []>} : vector<1x32xf32>, vector<32x128xf32>, vector<1x128xf32> -> vector<1x128xf32>
    %164 = arith.addf %161, %163 : vector<1x128xf32>
    %165 = vector.extract_strided_slice %164 {offsets = [0, 0], sizes = [1, 96], strides = [1, 1]} : vector<1x128xf32> to vector<1x96xf32>
    %166 = arith.negf %165 : vector<1x96xf32>
    %167 = math.exp %166 : vector<1x96xf32>
    %cst_53 = arith.constant 1.000000e+00 : f32
    %168 = vector.broadcast %cst_53 : f32 to vector<1x96xf32>
    %169 = arith.addf %168, %167 : vector<1x96xf32>
    %170 = arith.divf %168, %169 : vector<1x96xf32>
    %171 = vector.extract_strided_slice %164 {offsets = [0, 96], sizes = [1, 32], strides = [1, 1]} : vector<1x128xf32> to vector<1x32xf32>
    %172 = math.tanh %171 : vector<1x32xf32>
    %173 = vector.extract_strided_slice %170 {offsets = [0, 32], sizes = [1, 32], strides = [1, 1]} : vector<1x96xf32> to vector<1x32xf32>
    %174 = arith.mulf %173, %156 : vector<1x32xf32>
    %175 = vector.extract_strided_slice %170 {offsets = [0, 0], sizes = [1, 32], strides = [1, 1]} : vector<1x96xf32> to vector<1x32xf32>
    %176 = arith.mulf %175, %172 : vector<1x32xf32>
    %177 = arith.addf %174, %176 : vector<1x32xf32>
    %178 = vector.extract_strided_slice %170 {offsets = [0, 64], sizes = [1, 32], strides = [1, 1]} : vector<1x96xf32> to vector<1x32xf32>
    %179 = math.tanh %177 : vector<1x32xf32>
    %180 = arith.mulf %178, %179 : vector<1x32xf32>
    %181 = vector.broadcast %0 : f32 to vector<1x32xf32>
    %182 = arith.mulf %181, %180 : vector<1x32xf32>
    %183 = vector.broadcast %1 : f32 to vector<1x32xf32>
    %184 = arith.addf %182, %183 : vector<1x32xf32>
    %185 = math.exp %184 : vector<1x32xf32>
    %186 = vector.broadcast %2 : f32 to vector<1x32xf32>
    %187 = arith.mulf %186, %180 : vector<1x32xf32>
    %188 = vector.broadcast %3 : f32 to vector<1x32xf32>
    %189 = arith.addf %187, %188 : vector<1x32xf32>
    %190 = vector.broadcast %4 : f32 to vector<1x32xf32>
    %191 = arith.mulf %190, %180 : vector<1x32xf32>
    %192 = vector.broadcast %5 : f32 to vector<1x32xf32>
    %193 = arith.addf %191, %192 : vector<1x32xf32>
    %194 = arith.mulf %185, %193 : vector<1x32xf32>
    %195 = tpu.concatenate %185, %194 in 0 : vector<1x32xf32>, vector<1x32xf32> -> vector<2x32xf32>
    %c0_54 = arith.constant 0 : index
    %c0_55 = arith.constant 0 : index
    %196 = vector.load %arg4[%c0_54, %c0_55] : memref<32x32xf32, #tpu.memory_space<vmem>>, vector<32x32xf32>
    %cst_56 = arith.constant dense<0.000000e+00> : vector<2x32xf32>
    %197 = tpu.matmul %195, %196, %cst_56 {dimension_numbers = #tpu.dot_dimension_numbers<[1], [0], [0], [1], [0, 0, 1, 1], [], []>} : vector<2x32xf32>, vector<32x32xf32>, vector<2x32xf32> -> vector<2x32xf32>
    %198 = vector.extract_strided_slice %197 {offsets = [1, 0], sizes = [1, 32], strides = [1, 1]} : vector<2x32xf32> to vector<1x32xf32>
    %199 = vector.extract_strided_slice %197 {offsets = [0, 0], sizes = [1, 32], strides = [1, 1]} : vector<2x32xf32> to vector<1x32xf32>
    %cst_57 = arith.constant 9.99999971E-10 : f32
    %200 = vector.broadcast %cst_57 : f32 to vector<1x32xf32>
    %201 = arith.addf %199, %200 : vector<1x32xf32>
    %202 = tpu.reciprocal %201 {approx = true} : vector<1x32xf32> -> vector<1x32xf32>
    %203 = arith.mulf %198, %202 : vector<1x32xf32>
    %204 = arith.addf %189, %203 : vector<1x32xf32>
    %205 = math.tanh %204 : vector<1x32xf32>
    %c0_58 = arith.constant 0 : index
    %c0_59 = arith.constant 0 : index
    %206 = vector.load %arg5[%c0_58, %c0_59] : memref<32x2xf32, #tpu.memory_space<vmem>>, vector<32x2xf32>
    %cst_60 = arith.constant dense<0.000000e+00> : vector<1x2xf32>
    %207 = tpu.matmul %205, %206, %cst_60 {dimension_numbers = #tpu.dot_dimension_numbers<[1], [0], [0], [1], [0, 0, 1, 1], [], []>} : vector<1x32xf32>, vector<32x2xf32>, vector<1x2xf32> -> vector<1x2xf32>
    %208 = vector.extract_strided_slice %207 {offsets = [0, 0], sizes = [1, 1], strides = [1, 1]} : vector<1x2xf32> to vector<1x1xf32>
    %209 = vector.broadcast %6 : f32 to vector<1x1xf32>
    %210 = arith.addf %208, %209 : vector<1x1xf32>
    %211 = vector.extract_strided_slice %207 {offsets = [0, 1], sizes = [1, 1], strides = [1, 1]} : vector<1x2xf32> to vector<1x1xf32>
    %212 = vector.broadcast %7 : f32 to vector<1x1xf32>
    %213 = arith.addf %211, %212 : vector<1x1xf32>
    %cst_61 = arith.constant 0.000000e+00 : f32
    %214 = vector.broadcast %cst_61 : f32 to vector<1x1xf32>
    %215 = arith.maximumf %213, %214 : vector<1x1xf32>
    %216 = math.absf %213 : vector<1x1xf32>
    %cst_62 = arith.constant 0.000000e+00 : f32
    %217 = vector.broadcast %cst_62 : f32 to vector<1x1xf32>
    %218 = arith.subf %217, %216 : vector<1x1xf32>
    %219 = math.exp %218 : vector<1x1xf32>
    %cst_63 = arith.constant 1.000000e+00 : f32
    %220 = vector.broadcast %cst_63 : f32 to vector<1x1xf32>
    %221 = arith.addf %220, %219 : vector<1x1xf32>
    %222 = math.log %221 : vector<1x1xf32>
    %223 = arith.addf %215, %222 : vector<1x1xf32>
    %cst_64 = arith.constant 9.99999997E-7 : f32
    %224 = vector.broadcast %cst_64 : f32 to vector<1x1xf32>
    %225 = arith.addf %223, %224 : vector<1x1xf32>
    %226 = vector.shape_cast %210 : vector<1x1xf32> to vector<1x1xf32>
    %227 = vector.broadcast %226 : vector<1x1xf32> to vector<8x1xf32>
    %c0_65 = arith.constant 0 : index
    %c7_66 = arith.constant 7 : index
    %228 = vector.load %arg7[%c0_65, %c7_66] : memref<8x12xf32, #tpu.memory_space<vmem>>, vector<8x1xf32>
    tpu.vector_store %arg7[%c0_65, %c7_66], %227 {strides = array<i32>} : memref<8x12xf32, #tpu.memory_space<vmem>>, vector<8x1xf32>,
    %229 = vector.shape_cast %225 : vector<1x1xf32> to vector<1x1xf32>
    %230 = vector.broadcast %229 : vector<1x1xf32> to vector<8x1xf32>
    %c0_67 = arith.constant 0 : index
    %c7_68 = arith.constant 7 : index
    %231 = vector.load %arg8[%c0_67, %c7_68] : memref<8x12xf32, #tpu.memory_space<vmem>>, vector<8x1xf32>
    tpu.vector_store %arg8[%c0_67, %c7_68], %230 {strides = array<i32>} : memref<8x12xf32, #tpu.memory_space<vmem>>, vector<8x1xf32>,
    %c0_69 = arith.constant 0 : index
    %c7_70 = arith.constant 7 : index
    %232 = vector.load %arg1[%c0_69, %c7_70] : memref<8x12xf32, #tpu.memory_space<vmem>>, vector<8x1xf32>
    %233 = vector.broadcast %225 : vector<1x1xf32> to vector<8x1xf32>
    %234 = arith.mulf %233, %232 : vector<8x1xf32>
    %235 = vector.broadcast %210 : vector<1x1xf32> to vector<8x1xf32>
    %236 = arith.addf %235, %234 : vector<8x1xf32>
    %c0_71 = arith.constant 0 : index
    %c0_72 = arith.constant 0 : index
    %237 = vector.load %arg9[%c0_71, %c0_72] : memref<8x4xf32, #tpu.memory_space<vmem>>, vector<8x1xf32>
    tpu.vector_store %arg9[%c0_71, %c0_72], %236 {strides = array<i32>} : memref<8x4xf32, #tpu.memory_space<vmem>>, vector<8x1xf32>,
    %238 = vector.extract_strided_slice %10 {offsets = [8, 0], sizes = [1, 128], strides = [1, 1]} : vector<12x128xf32> to vector<1x128xf32>
    %239 = vector.broadcast %236 : vector<8x1xf32> to vector<8x128xf32>
    %240 = vector.broadcast %11 : vector<1x128xf32> to vector<8x128xf32>
    %241 = arith.mulf %239, %240 : vector<8x128xf32>
    %c0_73 = arith.constant 0 : index
    %c0_74 = arith.constant 0 : index
    %242 = vector.load %arg3[%c0_73, %c0_74] : memref<32x128xf32, #tpu.memory_space<vmem>>, vector<32x128xf32>
    %cst_75 = arith.constant dense<0.000000e+00> : vector<1x128xf32>
    %243 = tpu.matmul %180, %242, %cst_75 {dimension_numbers = #tpu.dot_dimension_numbers<[1], [0], [0], [1], [0, 0, 1, 1], [], []>} : vector<1x32xf32>, vector<32x128xf32>, vector<1x128xf32> -> vector<1x128xf32>
    %244 = arith.addf %238, %243 : vector<1x128xf32>
    %245 = vector.broadcast %244 : vector<1x128xf32> to vector<8x128xf32>
    %246 = arith.addf %245, %241 : vector<8x128xf32>
    %247 = vector.extract_strided_slice %246 {offsets = [0, 0], sizes = [8, 96], strides = [1, 1]} : vector<8x128xf32> to vector<8x96xf32>
    %248 = arith.negf %247 : vector<8x96xf32>
    %249 = math.exp %248 : vector<8x96xf32>
    %cst_76 = arith.constant 1.000000e+00 : f32
    %250 = vector.broadcast %cst_76 : f32 to vector<8x96xf32>
    %251 = arith.addf %250, %249 : vector<8x96xf32>
    %252 = arith.divf %250, %251 : vector<8x96xf32>
    %253 = vector.extract_strided_slice %246 {offsets = [0, 96], sizes = [8, 32], strides = [1, 1]} : vector<8x128xf32> to vector<8x32xf32>
    %254 = math.tanh %253 : vector<8x32xf32>
    %255 = vector.extract_strided_slice %252 {offsets = [0, 32], sizes = [8, 32], strides = [1, 1]} : vector<8x96xf32> to vector<8x32xf32>
    %256 = vector.broadcast %177 : vector<1x32xf32> to vector<8x32xf32>
    %257 = arith.mulf %255, %256 : vector<8x32xf32>
    %258 = vector.extract_strided_slice %252 {offsets = [0, 0], sizes = [8, 32], strides = [1, 1]} : vector<8x96xf32> to vector<8x32xf32>
    %259 = arith.mulf %258, %254 : vector<8x32xf32>
    %260 = arith.addf %257, %259 : vector<8x32xf32>
    %261 = vector.extract_strided_slice %252 {offsets = [0, 64], sizes = [8, 32], strides = [1, 1]} : vector<8x96xf32> to vector<8x32xf32>
    %262 = math.tanh %260 : vector<8x32xf32>
    %263 = arith.mulf %261, %262 : vector<8x32xf32>
    %264 = vector.broadcast %0 : f32 to vector<8x32xf32>
    %265 = arith.mulf %264, %263 : vector<8x32xf32>
    %266 = vector.broadcast %1 : f32 to vector<8x32xf32>
    %267 = arith.addf %265, %266 : vector<8x32xf32>
    %268 = math.exp %267 : vector<8x32xf32>
    %269 = vector.broadcast %2 : f32 to vector<8x32xf32>
    %270 = arith.mulf %269, %263 : vector<8x32xf32>
    %271 = vector.broadcast %3 : f32 to vector<8x32xf32>
    %272 = arith.addf %270, %271 : vector<8x32xf32>
    %273 = vector.broadcast %4 : f32 to vector<8x32xf32>
    %274 = arith.mulf %273, %263 : vector<8x32xf32>
    %275 = vector.broadcast %5 : f32 to vector<8x32xf32>
    %276 = arith.addf %274, %275 : vector<8x32xf32>
    %277 = arith.mulf %268, %276 : vector<8x32xf32>
    %278 = tpu.concatenate %268, %277 in 0 : vector<8x32xf32>, vector<8x32xf32> -> vector<16x32xf32>
    %c0_77 = arith.constant 0 : index
    %c0_78 = arith.constant 0 : index
    %279 = vector.load %arg4[%c0_77, %c0_78] : memref<32x32xf32, #tpu.memory_space<vmem>>, vector<32x32xf32>
    %cst_79 = arith.constant dense<0.000000e+00> : vector<16x32xf32>
    %280 = tpu.matmul %278, %279, %cst_79 {dimension_numbers = #tpu.dot_dimension_numbers<[1], [0], [0], [1], [0, 0, 1, 1], [], []>} : vector<16x32xf32>, vector<32x32xf32>, vector<16x32xf32> -> vector<16x32xf32>
    %281 = vector.extract_strided_slice %280 {offsets = [8, 0], sizes = [8, 32], strides = [1, 1]} : vector<16x32xf32> to vector<8x32xf32>
    %282 = vector.extract_strided_slice %280 {offsets = [0, 0], sizes = [8, 32], strides = [1, 1]} : vector<16x32xf32> to vector<8x32xf32>
    %cst_80 = arith.constant 9.99999971E-10 : f32
    %283 = vector.broadcast %cst_80 : f32 to vector<8x32xf32>
    %284 = arith.addf %282, %283 : vector<8x32xf32>
    %285 = tpu.reciprocal %284 {approx = true} : vector<8x32xf32> -> vector<8x32xf32>
    %286 = arith.mulf %281, %285 : vector<8x32xf32>
    %287 = arith.addf %272, %286 : vector<8x32xf32>
    %288 = math.tanh %287 : vector<8x32xf32>
    %c0_81 = arith.constant 0 : index
    %c0_82 = arith.constant 0 : index
    %289 = vector.load %arg5[%c0_81, %c0_82] : memref<32x2xf32, #tpu.memory_space<vmem>>, vector<32x2xf32>
    %cst_83 = arith.constant dense<0.000000e+00> : vector<8x2xf32>
    %290 = tpu.matmul %288, %289, %cst_83 {dimension_numbers = #tpu.dot_dimension_numbers<[1], [0], [0], [1], [0, 0, 1, 1], [], []>} : vector<8x32xf32>, vector<32x2xf32>, vector<8x2xf32> -> vector<8x2xf32>
    %291 = vector.extract_strided_slice %290 {offsets = [0, 0], sizes = [8, 1], strides = [1, 1]} : vector<8x2xf32> to vector<8x1xf32>
    %292 = vector.broadcast %6 : f32 to vector<8x1xf32>
    %293 = arith.addf %291, %292 : vector<8x1xf32>
    %294 = vector.extract_strided_slice %290 {offsets = [0, 1], sizes = [8, 1], strides = [1, 1]} : vector<8x2xf32> to vector<8x1xf32>
    %295 = vector.broadcast %7 : f32 to vector<8x1xf32>
    %296 = arith.addf %294, %295 : vector<8x1xf32>
    %cst_84 = arith.constant 0.000000e+00 : f32
    %297 = vector.broadcast %cst_84 : f32 to vector<8x1xf32>
    %298 = arith.maximumf %296, %297 : vector<8x1xf32>
    %299 = math.absf %296 : vector<8x1xf32>
    %cst_85 = arith.constant 0.000000e+00 : f32
    %300 = vector.broadcast %cst_85 : f32 to vector<8x1xf32>
    %301 = arith.subf %300, %299 : vector<8x1xf32>
    %302 = math.exp %301 : vector<8x1xf32>
    %cst_86 = arith.constant 1.000000e+00 : f32
    %303 = vector.broadcast %cst_86 : f32 to vector<8x1xf32>
    %304 = arith.addf %303, %302 : vector<8x1xf32>
    %305 = math.log %304 : vector<8x1xf32>
    %306 = arith.addf %298, %305 : vector<8x1xf32>
    %cst_87 = arith.constant 9.99999997E-7 : f32
    %307 = vector.broadcast %cst_87 : f32 to vector<8x1xf32>
    %308 = arith.addf %306, %307 : vector<8x1xf32>
    %c0_88 = arith.constant 0 : index
    %c8 = arith.constant 8 : index
    %309 = vector.load %arg7[%c0_88, %c8] : memref<8x12xf32, #tpu.memory_space<vmem>>, vector<8x1xf32>
    tpu.vector_store %arg7[%c0_88, %c8], %293 {strides = array<i32>} : memref<8x12xf32, #tpu.memory_space<vmem>>, vector<8x1xf32>,
    %c0_89 = arith.constant 0 : index
    %c8_90 = arith.constant 8 : index
    %310 = vector.load %arg8[%c0_89, %c8_90] : memref<8x12xf32, #tpu.memory_space<vmem>>, vector<8x1xf32>
    tpu.vector_store %arg8[%c0_89, %c8_90], %308 {strides = array<i32>} : memref<8x12xf32, #tpu.memory_space<vmem>>, vector<8x1xf32>,
    %c0_91 = arith.constant 0 : index
    %c8_92 = arith.constant 8 : index
    %311 = vector.load %arg1[%c0_91, %c8_92] : memref<8x12xf32, #tpu.memory_space<vmem>>, vector<8x1xf32>
    %312 = arith.mulf %308, %311 : vector<8x1xf32>
    %313 = arith.addf %293, %312 : vector<8x1xf32>
    %c0_93 = arith.constant 0 : index
    %c1_94 = arith.constant 1 : index
    %314 = vector.load %arg9[%c0_93, %c1_94] : memref<8x4xf32, #tpu.memory_space<vmem>>, vector<8x1xf32>
    tpu.vector_store %arg9[%c0_93, %c1_94], %313 {strides = array<i32>} : memref<8x4xf32, #tpu.memory_space<vmem>>, vector<8x1xf32>,
    %315 = vector.extract_strided_slice %10 {offsets = [9, 0], sizes = [1, 128], strides = [1, 1]} : vector<12x128xf32> to vector<1x128xf32>
    %316 = vector.broadcast %313 : vector<8x1xf32> to vector<8x128xf32>
    %317 = vector.broadcast %11 : vector<1x128xf32> to vector<8x128xf32>
    %318 = arith.mulf %316, %317 : vector<8x128xf32>
    %c0_95 = arith.constant 0 : index
    %c0_96 = arith.constant 0 : index
    %319 = vector.load %arg3[%c0_95, %c0_96] : memref<32x128xf32, #tpu.memory_space<vmem>>, vector<32x128xf32>
    %cst_97 = arith.constant dense<0.000000e+00> : vector<8x128xf32>
    %320 = tpu.matmul %263, %319, %cst_97 {dimension_numbers = #tpu.dot_dimension_numbers<[1], [0], [0], [1], [0, 0, 1, 1], [], []>} : vector<8x32xf32>, vector<32x128xf32>, vector<8x128xf32> -> vector<8x128xf32>
    %321 = vector.broadcast %315 : vector<1x128xf32> to vector<8x128xf32>
    %322 = arith.addf %321, %320 : vector<8x128xf32>
    %323 = arith.addf %322, %318 : vector<8x128xf32>
    %324 = vector.extract_strided_slice %323 {offsets = [0, 0], sizes = [8, 96], strides = [1, 1]} : vector<8x128xf32> to vector<8x96xf32>
    %325 = arith.negf %324 : vector<8x96xf32>
    %326 = math.exp %325 : vector<8x96xf32>
    %cst_98 = arith.constant 1.000000e+00 : f32
    %327 = vector.broadcast %cst_98 : f32 to vector<8x96xf32>
    %328 = arith.addf %327, %326 : vector<8x96xf32>
    %329 = arith.divf %327, %328 : vector<8x96xf32>
    %330 = vector.extract_strided_slice %323 {offsets = [0, 96], sizes = [8, 32], strides = [1, 1]} : vector<8x128xf32> to vector<8x32xf32>
    %331 = math.tanh %330 : vector<8x32xf32>
    %332 = vector.extract_strided_slice %329 {offsets = [0, 32], sizes = [8, 32], strides = [1, 1]} : vector<8x96xf32> to vector<8x32xf32>
    %333 = arith.mulf %332, %260 : vector<8x32xf32>
    %334 = vector.extract_strided_slice %329 {offsets = [0, 0], sizes = [8, 32], strides = [1, 1]} : vector<8x96xf32> to vector<8x32xf32>
    %335 = arith.mulf %334, %331 : vector<8x32xf32>
    %336 = arith.addf %333, %335 : vector<8x32xf32>
    %337 = vector.extract_strided_slice %329 {offsets = [0, 64], sizes = [8, 32], strides = [1, 1]} : vector<8x96xf32> to vector<8x32xf32>
    %338 = math.tanh %336 : vector<8x32xf32>
    %339 = arith.mulf %337, %338 : vector<8x32xf32>
    %340 = vector.broadcast %0 : f32 to vector<8x32xf32>
    %341 = arith.mulf %340, %339 : vector<8x32xf32>
    %342 = vector.broadcast %1 : f32 to vector<8x32xf32>
    %343 = arith.addf %341, %342 : vector<8x32xf32>
    %344 = math.exp %343 : vector<8x32xf32>
    %345 = vector.broadcast %2 : f32 to vector<8x32xf32>
    %346 = arith.mulf %345, %339 : vector<8x32xf32>
    %347 = vector.broadcast %3 : f32 to vector<8x32xf32>
    %348 = arith.addf %346, %347 : vector<8x32xf32>
    %349 = vector.broadcast %4 : f32 to vector<8x32xf32>
    %350 = arith.mulf %349, %339 : vector<8x32xf32>
    %351 = vector.broadcast %5 : f32 to vector<8x32xf32>
    %352 = arith.addf %350, %351 : vector<8x32xf32>
    %353 = arith.mulf %344, %352 : vector<8x32xf32>
    %354 = tpu.concatenate %344, %353 in 0 : vector<8x32xf32>, vector<8x32xf32> -> vector<16x32xf32>
    %c0_99 = arith.constant 0 : index
    %c0_100 = arith.constant 0 : index
    %355 = vector.load %arg4[%c0_99, %c0_100] : memref<32x32xf32, #tpu.memory_space<vmem>>, vector<32x32xf32>
    %cst_101 = arith.constant dense<0.000000e+00> : vector<16x32xf32>
    %356 = tpu.matmul %354, %355, %cst_101 {dimension_numbers = #tpu.dot_dimension_numbers<[1], [0], [0], [1], [0, 0, 1, 1], [], []>} : vector<16x32xf32>, vector<32x32xf32>, vector<16x32xf32> -> vector<16x32xf32>
    %357 = vector.extract_strided_slice %356 {offsets = [8, 0], sizes = [8, 32], strides = [1, 1]} : vector<16x32xf32> to vector<8x32xf32>
    %358 = vector.extract_strided_slice %356 {offsets = [0, 0], sizes = [8, 32], strides = [1, 1]} : vector<16x32xf32> to vector<8x32xf32>
    %cst_102 = arith.constant 9.99999971E-10 : f32
    %359 = vector.broadcast %cst_102 : f32 to vector<8x32xf32>
    %360 = arith.addf %358, %359 : vector<8x32xf32>
    %361 = tpu.reciprocal %360 {approx = true} : vector<8x32xf32> -> vector<8x32xf32>
    %362 = arith.mulf %357, %361 : vector<8x32xf32>
    %363 = arith.addf %348, %362 : vector<8x32xf32>
    %364 = math.tanh %363 : vector<8x32xf32>
    %c0_103 = arith.constant 0 : index
    %c0_104 = arith.constant 0 : index
    %365 = vector.load %arg5[%c0_103, %c0_104] : memref<32x2xf32, #tpu.memory_space<vmem>>, vector<32x2xf32>
    %cst_105 = arith.constant dense<0.000000e+00> : vector<8x2xf32>
    %366 = tpu.matmul %364, %365, %cst_105 {dimension_numbers = #tpu.dot_dimension_numbers<[1], [0], [0], [1], [0, 0, 1, 1], [], []>} : vector<8x32xf32>, vector<32x2xf32>, vector<8x2xf32> -> vector<8x2xf32>
    %367 = vector.extract_strided_slice %366 {offsets = [0, 0], sizes = [8, 1], strides = [1, 1]} : vector<8x2xf32> to vector<8x1xf32>
    %368 = vector.broadcast %6 : f32 to vector<8x1xf32>
    %369 = arith.addf %367, %368 : vector<8x1xf32>
    %370 = vector.extract_strided_slice %366 {offsets = [0, 1], sizes = [8, 1], strides = [1, 1]} : vector<8x2xf32> to vector<8x1xf32>
    %371 = vector.broadcast %7 : f32 to vector<8x1xf32>
    %372 = arith.addf %370, %371 : vector<8x1xf32>
    %cst_106 = arith.constant 0.000000e+00 : f32
    %373 = vector.broadcast %cst_106 : f32 to vector<8x1xf32>
    %374 = arith.maximumf %372, %373 : vector<8x1xf32>
    %375 = math.absf %372 : vector<8x1xf32>
    %cst_107 = arith.constant 0.000000e+00 : f32
    %376 = vector.broadcast %cst_107 : f32 to vector<8x1xf32>
    %377 = arith.subf %376, %375 : vector<8x1xf32>
    %378 = math.exp %377 : vector<8x1xf32>
    %cst_108 = arith.constant 1.000000e+00 : f32
    %379 = vector.broadcast %cst_108 : f32 to vector<8x1xf32>
    %380 = arith.addf %379, %378 : vector<8x1xf32>
    %381 = math.log %380 : vector<8x1xf32>
    %382 = arith.addf %374, %381 : vector<8x1xf32>
    %cst_109 = arith.constant 9.99999997E-7 : f32
    %383 = vector.broadcast %cst_109 : f32 to vector<8x1xf32>
    %384 = arith.addf %382, %383 : vector<8x1xf32>
    %c0_110 = arith.constant 0 : index
    %c9 = arith.constant 9 : index
    %385 = vector.load %arg7[%c0_110, %c9] : memref<8x12xf32, #tpu.memory_space<vmem>>, vector<8x1xf32>
    tpu.vector_store %arg7[%c0_110, %c9], %369 {strides = array<i32>} : memref<8x12xf32, #tpu.memory_space<vmem>>, vector<8x1xf32>,
    %c0_111 = arith.constant 0 : index
    %c9_112 = arith.constant 9 : index
    %386 = vector.load %arg8[%c0_111, %c9_112] : memref<8x12xf32, #tpu.memory_space<vmem>>, vector<8x1xf32>
    tpu.vector_store %arg8[%c0_111, %c9_112], %384 {strides = array<i32>} : memref<8x12xf32, #tpu.memory_space<vmem>>, vector<8x1xf32>,
    %c0_113 = arith.constant 0 : index
    %c9_114 = arith.constant 9 : index
    %387 = vector.load %arg1[%c0_113, %c9_114] : memref<8x12xf32, #tpu.memory_space<vmem>>, vector<8x1xf32>
    %388 = arith.mulf %384, %387 : vector<8x1xf32>
    %389 = arith.addf %369, %388 : vector<8x1xf32>
    %c0_115 = arith.constant 0 : index
    %c2_116 = arith.constant 2 : index
    %390 = vector.load %arg9[%c0_115, %c2_116] : memref<8x4xf32, #tpu.memory_space<vmem>>, vector<8x1xf32>
    tpu.vector_store %arg9[%c0_115, %c2_116], %389 {strides = array<i32>} : memref<8x4xf32, #tpu.memory_space<vmem>>, vector<8x1xf32>,
    %391 = vector.extract_strided_slice %10 {offsets = [10, 0], sizes = [1, 128], strides = [1, 1]} : vector<12x128xf32> to vector<1x128xf32>
    %392 = vector.broadcast %389 : vector<8x1xf32> to vector<8x128xf32>
    %393 = vector.broadcast %11 : vector<1x128xf32> to vector<8x128xf32>
    %394 = arith.mulf %392, %393 : vector<8x128xf32>
    %c0_117 = arith.constant 0 : index
    %c0_118 = arith.constant 0 : index
    %395 = vector.load %arg3[%c0_117, %c0_118] : memref<32x128xf32, #tpu.memory_space<vmem>>, vector<32x128xf32>
    %cst_119 = arith.constant dense<0.000000e+00> : vector<8x128xf32>
    %396 = tpu.matmul %339, %395, %cst_119 {dimension_numbers = #tpu.dot_dimension_numbers<[1], [0], [0], [1], [0, 0, 1, 1], [], []>} : vector<8x32xf32>, vector<32x128xf32>, vector<8x128xf32> -> vector<8x128xf32>
    %397 = vector.broadcast %391 : vector<1x128xf32> to vector<8x128xf32>
    %398 = arith.addf %397, %396 : vector<8x128xf32>
    %399 = arith.addf %398, %394 : vector<8x128xf32>
    %400 = vector.extract_strided_slice %399 {offsets = [0, 0], sizes = [8, 96], strides = [1, 1]} : vector<8x128xf32> to vector<8x96xf32>
    %401 = arith.negf %400 : vector<8x96xf32>
    %402 = math.exp %401 : vector<8x96xf32>
    %cst_120 = arith.constant 1.000000e+00 : f32
    %403 = vector.broadcast %cst_120 : f32 to vector<8x96xf32>
    %404 = arith.addf %403, %402 : vector<8x96xf32>
    %405 = arith.divf %403, %404 : vector<8x96xf32>
    %406 = vector.extract_strided_slice %399 {offsets = [0, 96], sizes = [8, 32], strides = [1, 1]} : vector<8x128xf32> to vector<8x32xf32>
    %407 = math.tanh %406 : vector<8x32xf32>
    %408 = vector.extract_strided_slice %405 {offsets = [0, 32], sizes = [8, 32], strides = [1, 1]} : vector<8x96xf32> to vector<8x32xf32>
    %409 = arith.mulf %408, %336 : vector<8x32xf32>
    %410 = vector.extract_strided_slice %405 {offsets = [0, 0], sizes = [8, 32], strides = [1, 1]} : vector<8x96xf32> to vector<8x32xf32>
    %411 = arith.mulf %410, %407 : vector<8x32xf32>
    %412 = arith.addf %409, %411 : vector<8x32xf32>
    %413 = vector.extract_strided_slice %405 {offsets = [0, 64], sizes = [8, 32], strides = [1, 1]} : vector<8x96xf32> to vector<8x32xf32>
    %414 = math.tanh %412 : vector<8x32xf32>
    %415 = arith.mulf %413, %414 : vector<8x32xf32>
    %416 = vector.broadcast %0 : f32 to vector<8x32xf32>
    %417 = arith.mulf %416, %415 : vector<8x32xf32>
    %418 = vector.broadcast %1 : f32 to vector<8x32xf32>
    %419 = arith.addf %417, %418 : vector<8x32xf32>
    %420 = math.exp %419 : vector<8x32xf32>
    %421 = vector.broadcast %2 : f32 to vector<8x32xf32>
    %422 = arith.mulf %421, %415 : vector<8x32xf32>
    %423 = vector.broadcast %3 : f32 to vector<8x32xf32>
    %424 = arith.addf %422, %423 : vector<8x32xf32>
    %425 = vector.broadcast %4 : f32 to vector<8x32xf32>
    %426 = arith.mulf %425, %415 : vector<8x32xf32>
    %427 = vector.broadcast %5 : f32 to vector<8x32xf32>
    %428 = arith.addf %426, %427 : vector<8x32xf32>
    %429 = arith.mulf %420, %428 : vector<8x32xf32>
    %430 = tpu.concatenate %420, %429 in 0 : vector<8x32xf32>, vector<8x32xf32> -> vector<16x32xf32>
    %c0_121 = arith.constant 0 : index
    %c0_122 = arith.constant 0 : index
    %431 = vector.load %arg4[%c0_121, %c0_122] : memref<32x32xf32, #tpu.memory_space<vmem>>, vector<32x32xf32>
    %cst_123 = arith.constant dense<0.000000e+00> : vector<16x32xf32>
    %432 = tpu.matmul %430, %431, %cst_123 {dimension_numbers = #tpu.dot_dimension_numbers<[1], [0], [0], [1], [0, 0, 1, 1], [], []>} : vector<16x32xf32>, vector<32x32xf32>, vector<16x32xf32> -> vector<16x32xf32>
    %433 = vector.extract_strided_slice %432 {offsets = [8, 0], sizes = [8, 32], strides = [1, 1]} : vector<16x32xf32> to vector<8x32xf32>
    %434 = vector.extract_strided_slice %432 {offsets = [0, 0], sizes = [8, 32], strides = [1, 1]} : vector<16x32xf32> to vector<8x32xf32>
    %cst_124 = arith.constant 9.99999971E-10 : f32
    %435 = vector.broadcast %cst_124 : f32 to vector<8x32xf32>
    %436 = arith.addf %434, %435 : vector<8x32xf32>
    %437 = tpu.reciprocal %436 {approx = true} : vector<8x32xf32> -> vector<8x32xf32>
    %438 = arith.mulf %433, %437 : vector<8x32xf32>
    %439 = arith.addf %424, %438 : vector<8x32xf32>
    %440 = math.tanh %439 : vector<8x32xf32>
    %c0_125 = arith.constant 0 : index
    %c0_126 = arith.constant 0 : index
    %441 = vector.load %arg5[%c0_125, %c0_126] : memref<32x2xf32, #tpu.memory_space<vmem>>, vector<32x2xf32>
    %cst_127 = arith.constant dense<0.000000e+00> : vector<8x2xf32>
    %442 = tpu.matmul %440, %441, %cst_127 {dimension_numbers = #tpu.dot_dimension_numbers<[1], [0], [0], [1], [0, 0, 1, 1], [], []>} : vector<8x32xf32>, vector<32x2xf32>, vector<8x2xf32> -> vector<8x2xf32>
    %443 = vector.extract_strided_slice %442 {offsets = [0, 0], sizes = [8, 1], strides = [1, 1]} : vector<8x2xf32> to vector<8x1xf32>
    %444 = vector.broadcast %6 : f32 to vector<8x1xf32>
    %445 = arith.addf %443, %444 : vector<8x1xf32>
    %446 = vector.extract_strided_slice %442 {offsets = [0, 1], sizes = [8, 1], strides = [1, 1]} : vector<8x2xf32> to vector<8x1xf32>
    %447 = vector.broadcast %7 : f32 to vector<8x1xf32>
    %448 = arith.addf %446, %447 : vector<8x1xf32>
    %cst_128 = arith.constant 0.000000e+00 : f32
    %449 = vector.broadcast %cst_128 : f32 to vector<8x1xf32>
    %450 = arith.maximumf %448, %449 : vector<8x1xf32>
    %451 = math.absf %448 : vector<8x1xf32>
    %cst_129 = arith.constant 0.000000e+00 : f32
    %452 = vector.broadcast %cst_129 : f32 to vector<8x1xf32>
    %453 = arith.subf %452, %451 : vector<8x1xf32>
    %454 = math.exp %453 : vector<8x1xf32>
    %cst_130 = arith.constant 1.000000e+00 : f32
    %455 = vector.broadcast %cst_130 : f32 to vector<8x1xf32>
    %456 = arith.addf %455, %454 : vector<8x1xf32>
    %457 = math.log %456 : vector<8x1xf32>
    %458 = arith.addf %450, %457 : vector<8x1xf32>
    %cst_131 = arith.constant 9.99999997E-7 : f32
    %459 = vector.broadcast %cst_131 : f32 to vector<8x1xf32>
    %460 = arith.addf %458, %459 : vector<8x1xf32>
    %c0_132 = arith.constant 0 : index
    %c10 = arith.constant 10 : index
    %461 = vector.load %arg7[%c0_132, %c10] : memref<8x12xf32, #tpu.memory_space<vmem>>, vector<8x1xf32>
    tpu.vector_store %arg7[%c0_132, %c10], %445 {strides = array<i32>} : memref<8x12xf32, #tpu.memory_space<vmem>>, vector<8x1xf32>,
    %c0_133 = arith.constant 0 : index
    %c10_134 = arith.constant 10 : index
    %462 = vector.load %arg8[%c0_133, %c10_134] : memref<8x12xf32, #tpu.memory_space<vmem>>, vector<8x1xf32>
    tpu.vector_store %arg8[%c0_133, %c10_134], %460 {strides = array<i32>} : memref<8x12xf32, #tpu.memory_space<vmem>>, vector<8x1xf32>,
    %c0_135 = arith.constant 0 : index
    %c10_136 = arith.constant 10 : index
    %463 = vector.load %arg1[%c0_135, %c10_136] : memref<8x12xf32, #tpu.memory_space<vmem>>, vector<8x1xf32>
    %464 = arith.mulf %460, %463 : vector<8x1xf32>
    %465 = arith.addf %445, %464 : vector<8x1xf32>
    %c0_137 = arith.constant 0 : index
    %c3_138 = arith.constant 3 : index
    %466 = vector.load %arg9[%c0_137, %c3_138] : memref<8x4xf32, #tpu.memory_space<vmem>>, vector<8x1xf32>
    tpu.vector_store %arg9[%c0_137, %c3_138], %465 {strides = array<i32>} : memref<8x4xf32, #tpu.memory_space<vmem>>, vector<8x1xf32>,
    %467 = vector.extract_strided_slice %10 {offsets = [11, 0], sizes = [1, 128], strides = [1, 1]} : vector<12x128xf32> to vector<1x128xf32>
    %468 = vector.broadcast %465 : vector<8x1xf32> to vector<8x128xf32>
    %469 = vector.broadcast %11 : vector<1x128xf32> to vector<8x128xf32>
    %470 = arith.mulf %468, %469 : vector<8x128xf32>
    %c0_139 = arith.constant 0 : index
    %c0_140 = arith.constant 0 : index
    %471 = vector.load %arg3[%c0_139, %c0_140] : memref<32x128xf32, #tpu.memory_space<vmem>>, vector<32x128xf32>
    %cst_141 = arith.constant dense<0.000000e+00> : vector<8x128xf32>
    %472 = tpu.matmul %415, %471, %cst_141 {dimension_numbers = #tpu.dot_dimension_numbers<[1], [0], [0], [1], [0, 0, 1, 1], [], []>} : vector<8x32xf32>, vector<32x128xf32>, vector<8x128xf32> -> vector<8x128xf32>
    %473 = vector.broadcast %467 : vector<1x128xf32> to vector<8x128xf32>
    %474 = arith.addf %473, %472 : vector<8x128xf32>
    %475 = arith.addf %474, %470 : vector<8x128xf32>
    %476 = vector.extract_strided_slice %475 {offsets = [0, 0], sizes = [8, 96], strides = [1, 1]} : vector<8x128xf32> to vector<8x96xf32>
    %477 = arith.negf %476 : vector<8x96xf32>
    %478 = math.exp %477 : vector<8x96xf32>
    %cst_142 = arith.constant 1.000000e+00 : f32
    %479 = vector.broadcast %cst_142 : f32 to vector<8x96xf32>
    %480 = arith.addf %479, %478 : vector<8x96xf32>
    %481 = arith.divf %479, %480 : vector<8x96xf32>
    %482 = vector.extract_strided_slice %475 {offsets = [0, 96], sizes = [8, 32], strides = [1, 1]} : vector<8x128xf32> to vector<8x32xf32>
    %483 = math.tanh %482 : vector<8x32xf32>
    %484 = vector.extract_strided_slice %481 {offsets = [0, 32], sizes = [8, 32], strides = [1, 1]} : vector<8x96xf32> to vector<8x32xf32>
    %485 = arith.mulf %484, %412 : vector<8x32xf32>
    %486 = vector.extract_strided_slice %481 {offsets = [0, 0], sizes = [8, 32], strides = [1, 1]} : vector<8x96xf32> to vector<8x32xf32>
    %487 = arith.mulf %486, %483 : vector<8x32xf32>
    %488 = arith.addf %485, %487 : vector<8x32xf32>
    %489 = vector.extract_strided_slice %481 {offsets = [0, 64], sizes = [8, 32], strides = [1, 1]} : vector<8x96xf32> to vector<8x32xf32>
    %490 = math.tanh %488 : vector<8x32xf32>
    %491 = arith.mulf %489, %490 : vector<8x32xf32>
    %492 = vector.broadcast %0 : f32 to vector<8x32xf32>
    %493 = arith.mulf %492, %491 : vector<8x32xf32>
    %494 = vector.broadcast %1 : f32 to vector<8x32xf32>
    %495 = arith.addf %493, %494 : vector<8x32xf32>
    %496 = math.exp %495 : vector<8x32xf32>
    %497 = vector.broadcast %2 : f32 to vector<8x32xf32>
    %498 = arith.mulf %497, %491 : vector<8x32xf32>
    %499 = vector.broadcast %3 : f32 to vector<8x32xf32>
    %500 = arith.addf %498, %499 : vector<8x32xf32>
    %501 = vector.broadcast %4 : f32 to vector<8x32xf32>
    %502 = arith.mulf %501, %491 : vector<8x32xf32>
    %503 = vector.broadcast %5 : f32 to vector<8x32xf32>
    %504 = arith.addf %502, %503 : vector<8x32xf32>
    %505 = arith.mulf %496, %504 : vector<8x32xf32>
    %506 = tpu.concatenate %496, %505 in 0 : vector<8x32xf32>, vector<8x32xf32> -> vector<16x32xf32>
    %c0_143 = arith.constant 0 : index
    %c0_144 = arith.constant 0 : index
    %507 = vector.load %arg4[%c0_143, %c0_144] : memref<32x32xf32, #tpu.memory_space<vmem>>, vector<32x32xf32>
    %cst_145 = arith.constant dense<0.000000e+00> : vector<16x32xf32>
    %508 = tpu.matmul %506, %507, %cst_145 {dimension_numbers = #tpu.dot_dimension_numbers<[1], [0], [0], [1], [0, 0, 1, 1], [], []>} : vector<16x32xf32>, vector<32x32xf32>, vector<16x32xf32> -> vector<16x32xf32>
    %509 = vector.extract_strided_slice %508 {offsets = [8, 0], sizes = [8, 32], strides = [1, 1]} : vector<16x32xf32> to vector<8x32xf32>
    %510 = vector.extract_strided_slice %508 {offsets = [0, 0], sizes = [8, 32], strides = [1, 1]} : vector<16x32xf32> to vector<8x32xf32>
    %cst_146 = arith.constant 9.99999971E-10 : f32
    %511 = vector.broadcast %cst_146 : f32 to vector<8x32xf32>
    %512 = arith.addf %510, %511 : vector<8x32xf32>
    %513 = tpu.reciprocal %512 {approx = true} : vector<8x32xf32> -> vector<8x32xf32>
    %514 = arith.mulf %509, %513 : vector<8x32xf32>
    %515 = arith.addf %500, %514 : vector<8x32xf32>
    %516 = math.tanh %515 : vector<8x32xf32>
    %c0_147 = arith.constant 0 : index
    %c0_148 = arith.constant 0 : index
    %517 = vector.load %arg5[%c0_147, %c0_148] : memref<32x2xf32, #tpu.memory_space<vmem>>, vector<32x2xf32>
    %cst_149 = arith.constant dense<0.000000e+00> : vector<8x2xf32>
    %518 = tpu.matmul %516, %517, %cst_149 {dimension_numbers = #tpu.dot_dimension_numbers<[1], [0], [0], [1], [0, 0, 1, 1], [], []>} : vector<8x32xf32>, vector<32x2xf32>, vector<8x2xf32> -> vector<8x2xf32>
    %519 = vector.extract_strided_slice %518 {offsets = [0, 0], sizes = [8, 1], strides = [1, 1]} : vector<8x2xf32> to vector<8x1xf32>
    %520 = vector.broadcast %6 : f32 to vector<8x1xf32>
    %521 = arith.addf %519, %520 : vector<8x1xf32>
    %522 = vector.extract_strided_slice %518 {offsets = [0, 1], sizes = [8, 1], strides = [1, 1]} : vector<8x2xf32> to vector<8x1xf32>
    %523 = vector.broadcast %7 : f32 to vector<8x1xf32>
    %524 = arith.addf %522, %523 : vector<8x1xf32>
    %cst_150 = arith.constant 0.000000e+00 : f32
    %525 = vector.broadcast %cst_150 : f32 to vector<8x1xf32>
    %526 = arith.maximumf %524, %525 : vector<8x1xf32>
    %527 = math.absf %524 : vector<8x1xf32>
    %cst_151 = arith.constant 0.000000e+00 : f32
    %528 = vector.broadcast %cst_151 : f32 to vector<8x1xf32>
    %529 = arith.subf %528, %527 : vector<8x1xf32>
    %530 = math.exp %529 : vector<8x1xf32>
    %cst_152 = arith.constant 1.000000e+00 : f32
    %531 = vector.broadcast %cst_152 : f32 to vector<8x1xf32>
    %532 = arith.addf %531, %530 : vector<8x1xf32>
    %533 = math.log %532 : vector<8x1xf32>
    %534 = arith.addf %526, %533 : vector<8x1xf32>
    %cst_153 = arith.constant 9.99999997E-7 : f32
    %535 = vector.broadcast %cst_153 : f32 to vector<8x1xf32>
    %536 = arith.addf %534, %535 : vector<8x1xf32>
    %c0_154 = arith.constant 0 : index
    %c11 = arith.constant 11 : index
    %537 = vector.load %arg7[%c0_154, %c11] : memref<8x12xf32, #tpu.memory_space<vmem>>, vector<8x1xf32>
    tpu.vector_store %arg7[%c0_154, %c11], %521 {strides = array<i32>} : memref<8x12xf32, #tpu.memory_space<vmem>>, vector<8x1xf32>,
    %c0_155 = arith.constant 0 : index
    %c11_156 = arith.constant 11 : index
    %538 = vector.load %arg8[%c0_155, %c11_156] : memref<8x12xf32, #tpu.memory_space<vmem>>, vector<8x1xf32>
    tpu.vector_store %arg8[%c0_155, %c11_156], %536 {strides = array<i32>} : memref<8x12xf32, #tpu.memory_space<vmem>>, vector<8x1xf32>,
    %c0_157 = arith.constant 0 : index
    %c0_158 = arith.constant 0 : index
    %539 = vector.load %arg10[%c0_157, %c0_158] : memref<7x32xf32, #tpu.memory_space<vmem>>, vector<7x32xf32>
    %540 = vector.broadcast %0 : f32 to vector<7x32xf32>
    %541 = arith.mulf %540, %539 : vector<7x32xf32>
    %542 = vector.broadcast %1 : f32 to vector<7x32xf32>
    %543 = arith.addf %541, %542 : vector<7x32xf32>
    %544 = math.exp %543 : vector<7x32xf32>
    %545 = vector.broadcast %2 : f32 to vector<7x32xf32>
    %546 = arith.mulf %545, %539 : vector<7x32xf32>
    %547 = vector.broadcast %3 : f32 to vector<7x32xf32>
    %548 = arith.addf %546, %547 : vector<7x32xf32>
    %549 = vector.broadcast %4 : f32 to vector<7x32xf32>
    %550 = arith.mulf %549, %539 : vector<7x32xf32>
    %551 = vector.broadcast %5 : f32 to vector<7x32xf32>
    %552 = arith.addf %550, %551 : vector<7x32xf32>
    %553 = arith.mulf %544, %552 : vector<7x32xf32>
    %554 = tpu.concatenate %544, %553 in 0 : vector<7x32xf32>, vector<7x32xf32> -> vector<14x32xf32>
    %c0_159 = arith.constant 0 : index
    %c0_160 = arith.constant 0 : index
    %555 = vector.load %arg4[%c0_159, %c0_160] : memref<32x32xf32, #tpu.memory_space<vmem>>, vector<32x32xf32>
    %cst_161 = arith.constant dense<0.000000e+00> : vector<14x32xf32>
    %556 = tpu.matmul %554, %555, %cst_161 {dimension_numbers = #tpu.dot_dimension_numbers<[1], [0], [0], [1], [0, 0, 1, 1], [], []>} : vector<14x32xf32>, vector<32x32xf32>, vector<14x32xf32> -> vector<14x32xf32>
    %557 = vector.extract_strided_slice %556 {offsets = [7, 0], sizes = [7, 32], strides = [1, 1]} : vector<14x32xf32> to vector<7x32xf32>
    %558 = vector.extract_strided_slice %556 {offsets = [0, 0], sizes = [7, 32], strides = [1, 1]} : vector<14x32xf32> to vector<7x32xf32>
    %cst_162 = arith.constant 9.99999971E-10 : f32
    %559 = vector.broadcast %cst_162 : f32 to vector<7x32xf32>
    %560 = arith.addf %558, %559 : vector<7x32xf32>
    %561 = tpu.reciprocal %560 {approx = true} : vector<7x32xf32> -> vector<7x32xf32>
    %562 = arith.mulf %557, %561 : vector<7x32xf32>
    %563 = arith.addf %548, %562 : vector<7x32xf32>
    %564 = math.tanh %563 : vector<7x32xf32>
    %c0_163 = arith.constant 0 : index
    %c0_164 = arith.constant 0 : index
    %565 = vector.load %arg5[%c0_163, %c0_164] : memref<32x2xf32, #tpu.memory_space<vmem>>, vector<32x2xf32>
    %cst_165 = arith.constant dense<0.000000e+00> : vector<7x2xf32>
    %566 = tpu.matmul %564, %565, %cst_165 {dimension_numbers = #tpu.dot_dimension_numbers<[1], [0], [0], [1], [0, 0, 1, 1], [], []>} : vector<7x32xf32>, vector<32x2xf32>, vector<7x2xf32> -> vector<7x2xf32>
    %567 = vector.extract_strided_slice %566 {offsets = [0, 0], sizes = [7, 1], strides = [1, 1]} : vector<7x2xf32> to vector<7x1xf32>
    %568 = vector.broadcast %6 : f32 to vector<7x1xf32>
    %569 = arith.addf %567, %568 : vector<7x1xf32>
    %570 = vector.extract_strided_slice %566 {offsets = [0, 1], sizes = [7, 1], strides = [1, 1]} : vector<7x2xf32> to vector<7x1xf32>
    %571 = vector.broadcast %7 : f32 to vector<7x1xf32>
    %572 = arith.addf %570, %571 : vector<7x1xf32>
    %cst_166 = arith.constant 0.000000e+00 : f32
    %573 = vector.broadcast %cst_166 : f32 to vector<7x1xf32>
    %574 = arith.maximumf %572, %573 : vector<7x1xf32>
    %575 = math.absf %572 : vector<7x1xf32>
    %cst_167 = arith.constant 0.000000e+00 : f32
    %576 = vector.broadcast %cst_167 : f32 to vector<7x1xf32>
    %577 = arith.subf %576, %575 : vector<7x1xf32>
    %578 = math.exp %577 : vector<7x1xf32>
    %cst_168 = arith.constant 1.000000e+00 : f32
    %579 = vector.broadcast %cst_168 : f32 to vector<7x1xf32>
    %580 = arith.addf %579, %578 : vector<7x1xf32>
    %581 = math.log %580 : vector<7x1xf32>
    %582 = arith.addf %574, %581 : vector<7x1xf32>
    %cst_169 = arith.constant 9.99999997E-7 : f32
    %583 = vector.broadcast %cst_169 : f32 to vector<7x1xf32>
    %584 = arith.addf %582, %583 : vector<7x1xf32>
    %585 = vector.extract_strided_slice %569 {offsets = [0, 0], sizes = [1, 1], strides = [1, 1]} : vector<7x1xf32> to vector<1x1xf32>
    %586 = vector.shape_cast %585 : vector<1x1xf32> to vector<1x1xf32>
    %587 = vector.broadcast %586 : vector<1x1xf32> to vector<8x1xf32>
    %c0_170 = arith.constant 0 : index
    %c0_171 = arith.constant 0 : index
    %588 = vector.load %arg7[%c0_170, %c0_171] : memref<8x12xf32, #tpu.memory_space<vmem>>, vector<8x1xf32>
    tpu.vector_store %arg7[%c0_170, %c0_171], %587 {strides = array<i32>} : memref<8x12xf32, #tpu.memory_space<vmem>>, vector<8x1xf32>,
    %589 = vector.extract_strided_slice %584 {offsets = [0, 0], sizes = [1, 1], strides = [1, 1]} : vector<7x1xf32> to vector<1x1xf32>
    %590 = vector.shape_cast %589 : vector<1x1xf32> to vector<1x1xf32>
    %591 = vector.broadcast %590 : vector<1x1xf32> to vector<8x1xf32>
    %c0_172 = arith.constant 0 : index
    %c0_173 = arith.constant 0 : index
    %592 = vector.load %arg8[%c0_172, %c0_173] : memref<8x12xf32, #tpu.memory_space<vmem>>, vector<8x1xf32>
    tpu.vector_store %arg8[%c0_172, %c0_173], %591 {strides = array<i32>} : memref<8x12xf32, #tpu.memory_space<vmem>>, vector<8x1xf32>,
    %593 = vector.extract_strided_slice %569 {offsets = [1, 0], sizes = [1, 1], strides = [1, 1]} : vector<7x1xf32> to vector<1x1xf32>
    %594 = vector.shape_cast %593 : vector<1x1xf32> to vector<1x1xf32>
    %595 = vector.broadcast %594 : vector<1x1xf32> to vector<8x1xf32>
    %c0_174 = arith.constant 0 : index
    %c1_175 = arith.constant 1 : index
    %596 = vector.load %arg7[%c0_174, %c1_175] : memref<8x12xf32, #tpu.memory_space<vmem>>, vector<8x1xf32>
    tpu.vector_store %arg7[%c0_174, %c1_175], %595 {strides = array<i32>} : memref<8x12xf32, #tpu.memory_space<vmem>>, vector<8x1xf32>,
    %597 = vector.extract_strided_slice %584 {offsets = [1, 0], sizes = [1, 1], strides = [1, 1]} : vector<7x1xf32> to vector<1x1xf32>
    %598 = vector.shape_cast %597 : vector<1x1xf32> to vector<1x1xf32>
    %599 = vector.broadcast %598 : vector<1x1xf32> to vector<8x1xf32>
    %c0_176 = arith.constant 0 : index
    %c1_177 = arith.constant 1 : index
    %600 = vector.load %arg8[%c0_176, %c1_177] : memref<8x12xf32, #tpu.memory_space<vmem>>, vector<8x1xf32>
    tpu.vector_store %arg8[%c0_176, %c1_177], %599 {strides = array<i32>} : memref<8x12xf32, #tpu.memory_space<vmem>>, vector<8x1xf32>,
    %601 = vector.extract_strided_slice %569 {offsets = [2, 0], sizes = [1, 1], strides = [1, 1]} : vector<7x1xf32> to vector<1x1xf32>
    %602 = vector.shape_cast %601 : vector<1x1xf32> to vector<1x1xf32>
    %603 = vector.broadcast %602 : vector<1x1xf32> to vector<8x1xf32>
    %c0_178 = arith.constant 0 : index
    %c2_179 = arith.constant 2 : index
    %604 = vector.load %arg7[%c0_178, %c2_179] : memref<8x12xf32, #tpu.memory_space<vmem>>, vector<8x1xf32>
    tpu.vector_store %arg7[%c0_178, %c2_179], %603 {strides = array<i32>} : memref<8x12xf32, #tpu.memory_space<vmem>>, vector<8x1xf32>,
    %605 = vector.extract_strided_slice %584 {offsets = [2, 0], sizes = [1, 1], strides = [1, 1]} : vector<7x1xf32> to vector<1x1xf32>
    %606 = vector.shape_cast %605 : vector<1x1xf32> to vector<1x1xf32>
    %607 = vector.broadcast %606 : vector<1x1xf32> to vector<8x1xf32>
    %c0_180 = arith.constant 0 : index
    %c2_181 = arith.constant 2 : index
    %608 = vector.load %arg8[%c0_180, %c2_181] : memref<8x12xf32, #tpu.memory_space<vmem>>, vector<8x1xf32>
    tpu.vector_store %arg8[%c0_180, %c2_181], %607 {strides = array<i32>} : memref<8x12xf32, #tpu.memory_space<vmem>>, vector<8x1xf32>,
    %609 = vector.extract_strided_slice %569 {offsets = [3, 0], sizes = [1, 1], strides = [1, 1]} : vector<7x1xf32> to vector<1x1xf32>
    %610 = vector.shape_cast %609 : vector<1x1xf32> to vector<1x1xf32>
    %611 = vector.broadcast %610 : vector<1x1xf32> to vector<8x1xf32>
    %c0_182 = arith.constant 0 : index
    %c3_183 = arith.constant 3 : index
    %612 = vector.load %arg7[%c0_182, %c3_183] : memref<8x12xf32, #tpu.memory_space<vmem>>, vector<8x1xf32>
    tpu.vector_store %arg7[%c0_182, %c3_183], %611 {strides = array<i32>} : memref<8x12xf32, #tpu.memory_space<vmem>>, vector<8x1xf32>,
    %613 = vector.extract_strided_slice %584 {offsets = [3, 0], sizes = [1, 1], strides = [1, 1]} : vector<7x1xf32> to vector<1x1xf32>
    %614 = vector.shape_cast %613 : vector<1x1xf32> to vector<1x1xf32>
    %615 = vector.broadcast %614 : vector<1x1xf32> to vector<8x1xf32>
    %c0_184 = arith.constant 0 : index
    %c3_185 = arith.constant 3 : index
    %616 = vector.load %arg8[%c0_184, %c3_185] : memref<8x12xf32, #tpu.memory_space<vmem>>, vector<8x1xf32>
    tpu.vector_store %arg8[%c0_184, %c3_185], %615 {strides = array<i32>} : memref<8x12xf32, #tpu.memory_space<vmem>>, vector<8x1xf32>,
    %617 = vector.extract_strided_slice %569 {offsets = [4, 0], sizes = [1, 1], strides = [1, 1]} : vector<7x1xf32> to vector<1x1xf32>
    %618 = vector.shape_cast %617 : vector<1x1xf32> to vector<1x1xf32>
    %619 = vector.broadcast %618 : vector<1x1xf32> to vector<8x1xf32>
    %c0_186 = arith.constant 0 : index
    %c4_187 = arith.constant 4 : index
    %620 = vector.load %arg7[%c0_186, %c4_187] : memref<8x12xf32, #tpu.memory_space<vmem>>, vector<8x1xf32>
    tpu.vector_store %arg7[%c0_186, %c4_187], %619 {strides = array<i32>} : memref<8x12xf32, #tpu.memory_space<vmem>>, vector<8x1xf32>,
    %621 = vector.extract_strided_slice %584 {offsets = [4, 0], sizes = [1, 1], strides = [1, 1]} : vector<7x1xf32> to vector<1x1xf32>
    %622 = vector.shape_cast %621 : vector<1x1xf32> to vector<1x1xf32>
    %623 = vector.broadcast %622 : vector<1x1xf32> to vector<8x1xf32>
    %c0_188 = arith.constant 0 : index
    %c4_189 = arith.constant 4 : index
    %624 = vector.load %arg8[%c0_188, %c4_189] : memref<8x12xf32, #tpu.memory_space<vmem>>, vector<8x1xf32>
    tpu.vector_store %arg8[%c0_188, %c4_189], %623 {strides = array<i32>} : memref<8x12xf32, #tpu.memory_space<vmem>>, vector<8x1xf32>,
    %625 = vector.extract_strided_slice %569 {offsets = [5, 0], sizes = [1, 1], strides = [1, 1]} : vector<7x1xf32> to vector<1x1xf32>
    %626 = vector.shape_cast %625 : vector<1x1xf32> to vector<1x1xf32>
    %627 = vector.broadcast %626 : vector<1x1xf32> to vector<8x1xf32>
    %c0_190 = arith.constant 0 : index
    %c5_191 = arith.constant 5 : index
    %628 = vector.load %arg7[%c0_190, %c5_191] : memref<8x12xf32, #tpu.memory_space<vmem>>, vector<8x1xf32>
    tpu.vector_store %arg7[%c0_190, %c5_191], %627 {strides = array<i32>} : memref<8x12xf32, #tpu.memory_space<vmem>>, vector<8x1xf32>,
    %629 = vector.extract_strided_slice %584 {offsets = [5, 0], sizes = [1, 1], strides = [1, 1]} : vector<7x1xf32> to vector<1x1xf32>
    %630 = vector.shape_cast %629 : vector<1x1xf32> to vector<1x1xf32>
    %631 = vector.broadcast %630 : vector<1x1xf32> to vector<8x1xf32>
    %c0_192 = arith.constant 0 : index
    %c5_193 = arith.constant 5 : index
    %632 = vector.load %arg8[%c0_192, %c5_193] : memref<8x12xf32, #tpu.memory_space<vmem>>, vector<8x1xf32>
    tpu.vector_store %arg8[%c0_192, %c5_193], %631 {strides = array<i32>} : memref<8x12xf32, #tpu.memory_space<vmem>>, vector<8x1xf32>,
    %633 = vector.extract_strided_slice %569 {offsets = [6, 0], sizes = [1, 1], strides = [1, 1]} : vector<7x1xf32> to vector<1x1xf32>
    %634 = vector.shape_cast %633 : vector<1x1xf32> to vector<1x1xf32>
    %635 = vector.broadcast %634 : vector<1x1xf32> to vector<8x1xf32>
    %c0_194 = arith.constant 0 : index
    %c6_195 = arith.constant 6 : index
    %636 = vector.load %arg7[%c0_194, %c6_195] : memref<8x12xf32, #tpu.memory_space<vmem>>, vector<8x1xf32>
    tpu.vector_store %arg7[%c0_194, %c6_195], %635 {strides = array<i32>} : memref<8x12xf32, #tpu.memory_space<vmem>>, vector<8x1xf32>,
    %637 = vector.extract_strided_slice %584 {offsets = [6, 0], sizes = [1, 1], strides = [1, 1]} : vector<7x1xf32> to vector<1x1xf32>
    %638 = vector.shape_cast %637 : vector<1x1xf32> to vector<1x1xf32>
    %639 = vector.broadcast %638 : vector<1x1xf32> to vector<8x1xf32>
    %c0_196 = arith.constant 0 : index
    %c6_197 = arith.constant 6 : index
    %640 = vector.load %arg8[%c0_196, %c6_197] : memref<8x12xf32, #tpu.memory_space<vmem>>, vector<8x1xf32>
    tpu.vector_store %arg8[%c0_196, %c6_197], %639 {strides = array<i32>} : memref<8x12xf32, #tpu.memory_space<vmem>>, vector<8x1xf32>,
    return
  }
}

</mosaic_0001>

<bundles_post_ra>
// kernel: deepar_forward.1
= control target key start
LH: loop header
LB: loop body
LE: loop exit
PB: predicated region body
PF: predicated region fallthrough
CT: control target
= control target key end

     0   :  { %15 = vsyncpa [#allocation5], 0  ;;  %s2728_s0 = inlined_call_operand.vmem [shape: f32[12,6], index: 0, kind: input, shape index: {}]   ;;  %s2729_s1 = inlined_call_operand.vmem [shape: f32[8,12], index: 1, kind: input, shape index: {}]   ;;  %s2730_s2 = inlined_call_operand.vmem [shape: f32[6,128], index: 2, kind: input, shape index: {}]   ;;  %s2731_s3 = inlined_call_operand.vmem [shape: f32[32,128], index: 3, kind: input, shape index: {}]   ;;  %s2732_s4 = inlined_call_operand.vmem [shape: f32[32,32], index: 4, kind: input, shape index: {}]   ;;  %s2733_s5 = inlined_call_operand.vmem [shape: f32[32,2], index: 5, kind: input, shape index: {}]   ;;  %s2734_s6 = inlined_call_operand.vmem [shape: f32[8], index: 6, kind: input, shape index: {}]   ;;  %s2735_s7 = inlined_call_operand.hbm [shape: f32[8,12], index: 7, kind: output, shape index: {0}]   ;;  %s2736_s8 = inlined_call_operand.hbm [shape: f32[8,12], index: 8, kind: output, shape index: {1}]   ;;  %s2737_s9 = inlined_call_operand.vmem [shape: f32[8,4], index: 9, kind: output, shape index: {2}]  }
   0x1   :  { %16 = vsyncpa [#allocation4], 0 }
   0x2   :  { %17 = vsyncpa [#allocation8], 0  ;;  %s35_s11 = sshll.u32 %s2734_s6, 4  ;;  %s2136_s12 = smov [#allocation3]   ;;  %s36_s11 = int_to_ptr.vmem [resolvable:$true] %s35_s11 }
   0x3   :  { %38 = dma.vmem_to_smem %s36_s11, 16, %s2136_s12, [#allocation5]  }
   0x4   :  { %2130 = dma.done.wait [#allocation5], 16  }
   0x5   :  { %2131 = vsyncadd [#allocation5], 4294967280 }
   0x6   :  { %43 = sfence }
   0x7   :  { %v93_v0 = vld [vmem:[%s2731_s3 + $0x18] sm:$0xff]  ;;  %v92_v1 = vld [vmem:[%s2731_s3 + $0x10] sm:$0xff]  ;;  %vm62_vm0 = vcmask 1045504   ;;  %vm55_vm1 = vcmask 48128   ;;  %v54_v2 = vld [vmem:[%s2730_s2] sm:$0x3f] }
   0x8   :  { %110 = vmatpush.msra.mxu1 %v93_v0  ;;  %v52_v3 = vld [vmem:[%s2728_s0] sm:$0xff]  ;;  %180 = vmatpush.msra.mxu2 %v93_v0  ;;  %v91_v4 = vld [vmem:[%s2731_s3 + $0x8] sm:$0xff]  ;;  %v2137_v6 = vmov 0.0   ;;  %s2138_s24 = smov 32   ;;  %s2139_s25 = smov 64   ;;  %vm160_vm6 = vcmask 253952  }
   0x9   :  { %1844 = vmatpush.msk.msra.mxu0 %vm62_vm0, %v54_v2  ;;  %259 = vmatpush.msra.mxu3 %v93_v0  ;;  %v90_v5 = vld [vmem:[%s2731_s3] sm:$0xff]  ;;  %vm94_vm7 = vcmask 261120   ;;  %s1837_s28 = sld [smem:[#allocation3 + $0x1]]  ;;  %s2140_s29 = smov 122  }
   0xa   :  { %111 = vmatpush.msra.mxu1 %v92_v1  ;;  %1845 = vmatmul.msk.f32.vlgmr.msra.gmra.mxu0 %vm55_vm1, %v52_v3  ;;  %s1840_s12 = sld [smem:[#allocation3 + $0x4]]  ;;  %s2144_s20 = smov 120  }
   0xb   :  { %181 = vmatpush.msra.mxu2 %v92_v1  ;;  %260 = vmatpush.msra.mxu3 %v92_v1  ;;  %s1841_s17 = sld [smem:[#allocation3 + $0x5]]  ;;  %s2145_s21 = smov 119  }
   0xc   :  { %112 = vmatpush.msra.mxu1 %v91_v4  ;;  %575 = vmatpush.msrb.mxu0 %v93_v0  ;;  %s1838_s22 = sld [smem:[#allocation3 + $0x2]]  ;;  %s2148_s23 = smov 9  }
   0xd   :  { %182 = vmatpush.msra.mxu2 %v91_v4  ;;  %261 = vmatpush.msra.mxu3 %v91_v4  ;;  %s1839_s27 = sld [smem:[#allocation3 + $0x3]]  ;;  %s2149_s26 = smov 6  }
   0xe   :  { %113 = vmatpush.msra.mxu1 %v90_v5  ;;  %576 = vmatpush.msrb.mxu0 %v92_v1  ;;  %s1843_s30 = sld [smem:[#allocation3 + $0x7]]  ;;  %s2152_s16 = smov 10  }
   0xf   :  { %114 = vmatmul.f32.vlgmr.msra.gmra.mxu1 %v2137_v6  ;;  %183 = vmatpush.msra.mxu2 %v90_v5  ;;  %s1842_s10 = sld [smem:[#allocation3 + $0x6]]  ;;  %s2156_s18 = smov 11  }
  0x10   :  { %262 = vmatpush.msra.mxu3 %v90_v5  ;;  %338 = vmatpush.msrb.mxu1 %v93_v0 }
  0x11   :  { %417 = vmatpush.msrb.mxu2 %v93_v0  ;;  %577 = vmatpush.msrb.mxu0 %v91_v4 }
  0x12   :  { %496 = vmatpush.msrb.mxu3 %v93_v0  ;;  %339 = vmatpush.msrb.mxu1 %v92_v1 }
  0x13   :  { %418 = vmatpush.msrb.mxu2 %v92_v1  ;;  %578 = vmatpush.msrb.mxu0 %v90_v5 }
  0x14   :  { %497 = vmatpush.msrb.mxu3 %v92_v1  ;;  %340 = vmatpush.msrb.mxu1 %v91_v4 }
  0x15   :  { %419 = vmatpush.msrb.mxu2 %v91_v4  ;;  %870 = vmatpush.msra.mxu0 %v93_v0 }
  0x16   :  { %498 = vmatpush.msrb.mxu3 %v91_v4  ;;  %341 = vmatpush.msrb.mxu1 %v90_v5 }
  0x17   :  { %420 = vmatpush.msrb.mxu2 %v90_v5  ;;  %871 = vmatpush.msra.mxu0 %v92_v1 }
  0x18   :  { %499 = vmatpush.msrb.mxu3 %v90_v5  ;;  %654 = vmatpush.msra.mxu1 %v93_v0 }
  0x19   :  { %872 = vmatpush.msra.mxu0 %v91_v4 }
  0x1a   :  { %655 = vmatpush.msra.mxu1 %v92_v1 }
  0x1b   :  { %873 = vmatpush.msra.mxu0 %v90_v5 }
  0x1c   :  { %656 = vmatpush.msra.mxu1 %v91_v4 }
  0x1e   :  { %657 = vmatpush.msra.mxu1 %v90_v5 }
  0x87   :  { %v2231_v7 = vpop.f32.mrf.mxu0 }
  0x8c   :  { %v115_v8 = vpop.f32.mrf.mxu1 }
  0x8d   :  { %v118_v9 = vadd.f32 %v115_v8, %v2231_v7 }
  0x8f   :  { %1914 = vtanh.f32 %v118_v9  ;;  %v1847_v11 = vmul.f32 -1.442695, %v118_v9 }
  0x91   :  { %1916 = vpow2.f32 %v1847_v11 }
  0x95   :  { %v1915_v10 = vpop.eup %1914 }
  0x96   :  { %141 = vrot.lane.b32.xlu0 %v1915_v10, %s2138_s24 }
  0x97   :  { %v1917_v12 = vpop.eup %1916 }
  0x98   :  { %v122_v13 = vadd.f32 1.0, %v1917_v12 }
  0x9a   :  { %1918 = vrcp.f32 %v122_v13  ;;  %v134_v19 = vand.u32 2147483648, %v122_v13  ;;  %vm128_vm3 = vweird.f32 %v122_v13  ;;  %v132_v20 = vand.u32 2147483647, %v122_v13 }
  0x9c   :  { %v135_v22 = vor.u32 1.1754944e-38, %v134_v19  ;;  %vm133_vm5 = vcmp.eq.f32.partialorder %v132_v20, 8.507059e+37 }
  0xa0   :  { %v1919_v14 = vpop.eup %1918 }
  0xa1   :  { %v124_v15 = vmul.f32 %v1919_v14, %v122_v13  ;;  %vm129_vm2 = vweird.f32 %v1919_v14 }
  0xa2   :  { %vm130_vm4 = vmor %vm128_vm3, %vm129_vm2 }
  0xa3   :  { %v125_v16 = vsub.f32 1.0, %v124_v15 }
  0xa5   :  { %v126_v17 = vmul.f32 %v1919_v14, %v125_v16 }
  0xa7   :  { %v127_v18 = vadd.f32 %v1919_v14, %v126_v17 }
  0xa9   :  { %v131_v21 = vsel %vm130_vm4, %v1919_v14, %v127_v18 }
  0xaa   :  { %v136_v24 = vsel %vm133_vm5, %v135_v22, %v131_v21 }
  0xab   :  { %v139_v26 = vmul.f32 0.0, %v136_v24 }
 0x108   :  { %v142_v23 = vpop.permute.xlu0 %141 }
 0x109   :  { %v144_v25 = vmul.f32 %v142_v23, %v136_v24 }
 0x10b   :  { %146 = vrot.lane.b32.xlu0 %v144_v25, %s2138_s24 }
 0x17d   :  { %v147_v27 = vpop.permute.xlu0 %146 }
 0x17e   :  { %v149_v28 = vadd.f32 %v147_v27, %v139_v26 }
 0x180   :  { %1920 = vtanh.f32 %v149_v28  ;;  %v213_v52 = vrot.slane %v149_v28, 7 }
 0x186   :  { %v1921_v29 = vpop.eup %1920 }
 0x187   :  { %152 = vrot.lane.b32.xlu1 %v1921_v29, %s2138_s24 }
 0x1f9   :  { %v153_v30 = vpop.permute.xlu1 %152 }
 0x1fa   :  { %v155_v31 = vmul.f32 %v153_v30, %v136_v24 }
 0x1fc   :  { %157 = vrot.lane.b32.xlu1 %v155_v31, %s2139_s25 }
 0x26e   :  { %v158_v32 = vpop.permute.xlu1 %157 }
 0x26f   :  { %161 = vst.msk [vmem:[#allocation2] sm:$0x1] %vm160_vm6, %v158_v32  ;;  %1848 = vmatmul.msk.f32.vlgmr.msra.gmra.mxu2 %vm94_vm7, %v158_v32 }
 0x2f2   :  { %v185_v33 = vpop.f32.mrf.mxu2 }
 0x2f3   :  { %v189_v34 = vrot.slane %v185_v33, 7 }
 0x2f5   :  { %v191_v35 = vadd.f32 %v189_v34, %v2231_v7 }
 0x2f7   :  { %1922 = vtanh.f32 %v191_v35  ;;  %v1849_v37 = vmul.f32 -1.442695, %v191_v35 }
 0x2f9   :  { %1924 = vpow2.f32 %v1849_v37 }
 0x2fd   :  { %v1923_v36 = vpop.eup %1922 }
 0x2fe   :  { %217 = vrot.lane.b32.xlu2 %v1923_v36, %s2138_s24 }
 0x2ff   :  { %v1925_v38 = vpop.eup %1924 }
 0x300   :  { %v195_v39 = vadd.f32 1.0, %v1925_v38 }
 0x302   :  { %1926 = vrcp.f32 %v195_v39  ;;  %v207_v45 = vand.u32 2147483648, %v195_v39  ;;  %vm201_vm9 = vweird.f32 %v195_v39  ;;  %v205_v46 = vand.u32 2147483647, %v195_v39 }
 0x304   :  { %v208_v48 = vor.u32 1.1754944e-38, %v207_v45  ;;  %vm206_vm11 = vcmp.eq.f32.partialorder %v205_v46, 8.507059e+37 }
 0x308   :  { %v1927_v40 = vpop.eup %1926 }
 0x309   :  { %v197_v41 = vmul.f32 %v1927_v40, %v195_v39  ;;  %vm202_vm8 = vweird.f32 %v1927_v40 }
 0x30a   :  { %vm203_vm10 = vmor %vm201_vm9, %vm202_vm8 }
 0x30b   :  { %v198_v42 = vsub.f32 1.0, %v197_v41 }
 0x30d   :  { %v199_v43 = vmul.f32 %v1927_v40, %v198_v42 }
 0x30f   :  { %v200_v44 = vadd.f32 %v1927_v40, %v199_v43 }
 0x311   :  { %v204_v47 = vsel %vm203_vm10, %v1927_v40, %v200_v44 }
 0x312   :  { %v209_v50 = vsel %vm206_vm11, %v208_v48, %v204_v47 }
 0x313   :  { %v215_v53 = vmul.f32 %v213_v52, %v209_v50 }
 0x358   :  { %v218_v49 = vpop.permute.xlu2 %217 }
 0x359   :  { %v220_v51 = vmul.f32 %v218_v49, %v209_v50 }
 0x35b   :  { %222 = vrot.lane.b32.xlu2 %v220_v51, %s2138_s24 }
 0x3b5   :  { %v223_v54 = vpop.permute.xlu2 %222 }
 0x3b6   :  { %v225_v55 = vadd.f32 %v223_v54, %v215_v53 }
 0x3b8   :  { %1928 = vtanh.f32 %v225_v55  ;;  %v292_v17 = vrot.slane %v225_v55, 7 }
 0x3be   :  { %v1929_v56 = vpop.eup %1928 }
 0x3bf   :  { %228 = vrot.lane.b32.xlu0 %v1929_v56, %s2138_s24 }
 0x431   :  { %v229_v57 = vpop.permute.xlu0 %228 }
 0x432   :  { %v2243_v58 = vmul.f32 %v229_v57, %v209_v50 }
 0x434   :  { %v242_v59 = vrot.slane %v2243_v58, 1 }
 0x436   :  { %243 = vrot.lane.b32.xlu1 %v242_v59, %s2139_s25 }
 0x4a8   :  { %v244_v60 = vpop.permute.xlu1 %243 }
 0x4a9   :  { %1850 = vmatmul.msk.f32.vlgmr.msra.gmra.mxu3 %vm94_vm7, %v244_v60 }
 0x52c   :  { %v264_v61 = vpop.f32.mrf.mxu3 }
 0x52d   :  { %v268_v62 = vrot.slane %v264_v61, 6 }
 0x52f   :  { %v270_v63 = vadd.f32 %v268_v62, %v2231_v7 }
 0x531   :  { %1930 = vtanh.f32 %v270_v63  ;;  %v1851_v1 = vmul.f32 -1.442695, %v270_v63 }
 0x533   :  { %1932 = vpow2.f32 %v1851_v1 }
 0x537   :  { %v1931_v0 = vpop.eup %1930 }
 0x538   :  { %296 = vrot.lane.b32.xlu2 %v1931_v0, %s2138_s24 }
 0x539   :  { %v1933_v2 = vpop.eup %1932 }
 0x53a   :  { %v274_v3 = vadd.f32 1.0, %v1933_v2 }
 0x53c   :  { %1934 = vrcp.f32 %v274_v3  ;;  %v286_v10 = vand.u32 2147483648, %v274_v3  ;;  %vm280_vm13 = vweird.f32 %v274_v3  ;;  %v284_v11 = vand.u32 2147483647, %v274_v3 }
 0x53e   :  { %v287_v13 = vor.u32 1.1754944e-38, %v286_v10  ;;  %vm285_vm15 = vcmp.eq.f32.partialorder %v284_v11, 8.507059e+37 }
 0x542   :  { %v1935_v4 = vpop.eup %1934 }
 0x543   :  { %v276_v5 = vmul.f32 %v1935_v4, %v274_v3  ;;  %vm281_vm12 = vweird.f32 %v1935_v4 }
 0x544   :  { %vm282_vm14 = vmor %vm280_vm13, %vm281_vm12 }
 0x545   :  { %v277_v6 = vsub.f32 1.0, %v276_v5 }
 0x547   :  { %v278_v8 = vmul.f32 %v1935_v4, %v277_v6 }
 0x549   :  { %v279_v9 = vadd.f32 %v1935_v4, %v278_v8 }
 0x54b   :  { %v283_v12 = vsel %vm282_vm14, %v1935_v4, %v279_v9 }
 0x54c   :  { %v288_v15 = vsel %vm285_vm15, %v287_v13, %v283_v12 }
 0x54d   :  { %v294_v18 = vmul.f32 %v292_v17, %v288_v15 }
 0x592   :  { %v297_v14 = vpop.permute.xlu2 %296 }
 0x593   :  { %v299_v16 = vmul.f32 %v297_v14, %v288_v15 }
 0x595   :  { %301 = vrot.lane.b32.xlu0 %v299_v16, %s2138_s24 }
 0x607   :  { %v302_v19 = vpop.permute.xlu0 %301 }
 0x608   :  { %v304_v20 = vadd.f32 %v302_v19, %v294_v18 }
 0x60a   :  { %1936 = vtanh.f32 %v304_v20  ;;  %v371_v45 = vrot.slane %v304_v20, 7 }
 0x610   :  { %v1937_v21 = vpop.eup %1936 }
 0x611   :  { %307 = vrot.lane.b32.xlu1 %v1937_v21, %s2138_s24 }
 0x683   :  { %v308_v22 = vpop.permute.xlu1 %307 }
 0x684   :  { %v2252_v23 = vmul.f32 %v308_v22, %v288_v15 }
 0x686   :  { %v321_v24 = vrot.slane %v2252_v23, 2 }
 0x688   :  { %322 = vrot.lane.b32.xlu2 %v321_v24, %s2139_s25 }
 0x6e2   :  { %v323_v25 = vpop.permute.xlu2 %322 }
 0x6e3   :  { %1852 = vmatmul.msk.f32.vlgmr.msrb.gmra.mxu1 %vm94_vm7, %v323_v25 }
 0x760   :  { %v343_v26 = vpop.f32.mrf.mxu1 }
 0x761   :  { %v347_v27 = vrot.slane %v343_v26, 5 }
 0x763   :  { %v349_v28 = vadd.f32 %v347_v27, %v2231_v7 }
 0x765   :  { %1938 = vtanh.f32 %v349_v28  ;;  %v1853_v30 = vmul.f32 -1.442695, %v349_v28 }
 0x767   :  { %1940 = vpow2.f32 %v1853_v30 }
 0x76b   :  { %v1939_v29 = vpop.eup %1938 }
 0x76c   :  { %375 = vrot.lane.b32.xlu0 %v1939_v29, %s2138_s24 }
 0x76d   :  { %v1941_v31 = vpop.eup %1940 }
 0x76e   :  { %v353_v32 = vadd.f32 1.0, %v1941_v31 }
 0x770   :  { %1942 = vrcp.f32 %v353_v32  ;;  %v365_v38 = vand.u32 2147483648, %v353_v32  ;;  %vm359_vm2 = vweird.f32 %v353_v32  ;;  %v363_v39 = vand.u32 2147483647, %v353_v32 }
 0x772   :  { %v366_v41 = vor.u32 1.1754944e-38, %v365_v38  ;;  %vm364_vm4 = vcmp.eq.f32.partialorder %v363_v39, 8.507059e+37 }
 0x776   :  { %v1943_v33 = vpop.eup %1942 }
 0x777   :  { %v355_v34 = vmul.f32 %v1943_v33, %v353_v32  ;;  %vm360_vm0 = vweird.f32 %v1943_v33 }
 0x778   :  { %vm361_vm3 = vmor %vm359_vm2, %vm360_vm0 }
 0x779   :  { %v356_v35 = vsub.f32 1.0, %v355_v34 }
 0x77b   :  { %v357_v36 = vmul.f32 %v1943_v33, %v356_v35 }
 0x77d   :  { %v358_v37 = vadd.f32 %v1943_v33, %v357_v36 }
 0x77f   :  { %v362_v40 = vsel %vm361_vm3, %v1943_v33, %v358_v37 }
 0x780   :  { %v367_v43 = vsel %vm364_vm4, %v366_v41, %v362_v40 }
 0x781   :  { %v373_v46 = vmul.f32 %v371_v45, %v367_v43  ;;  %v53_v45 = vld [vmem:[%s2728_s0 + $0x8] sm:$0xf]  ;;  %s44_s0 = sld [smem:[#allocation3]] }
 0x782   :  { %1846 = vmatmul.msk.f32.gmra.mxu0 %vm55_vm1, %v53_v45  ;;  %v2321_v45 = vld [vmem:[%s2732_s4 + $0x8] sm:$0xff] }
 0x7de   :  { %v376_v42 = vpop.permute.xlu0 %375 }
 0x7df   :  { %v378_v44 = vmul.f32 %v376_v42, %v367_v43 }
 0x7e1   :  { %380 = vrot.lane.b32.xlu1 %v378_v44, %s2138_s24 }
 0x853   :  { %v381_v47 = vpop.permute.xlu1 %380 }
 0x854   :  { %v383_v48 = vadd.f32 %v381_v47, %v373_v46 }
 0x856   :  { %1944 = vtanh.f32 %v383_v48  ;;  %v450_v11 = vrot.slane %v383_v48, 7 }
 0x85c   :  { %v1945_v49 = vpop.eup %1944 }
 0x85d   :  { %386 = vrot.lane.b32.xlu2 %v1945_v49, %s2138_s24 }
 0x8b7   :  { %v387_v50 = vpop.permute.xlu2 %386 }
 0x8b8   :  { %v2261_v51 = vmul.f32 %v387_v50, %v367_v43  ;;  %v2288_v50 = vpop.f32.mrf.mxu0 }
 0x8ba   :  { %v400_v52 = vrot.slane %v2261_v51, 3 }
 0x8bc   :  { %401 = vrot.lane.b32.xlu0 %v400_v52, %s2139_s25 }
 0x92e   :  { %v402_v53 = vpop.permute.xlu0 %401 }
 0x92f   :  { %1854 = vmatmul.msk.f32.vlgmr.msrb.gmra.mxu2 %vm94_vm7, %v402_v53 }
 0x9b2   :  { %v422_v54 = vpop.f32.mrf.mxu2 }
 0x9b3   :  { %v426_v55 = vrot.slane %v422_v54, 4 }
 0x9b5   :  { %v428_v56 = vadd.f32 %v426_v55, %v2231_v7 }
 0x9b7   :  { %1946 = vtanh.f32 %v428_v56  ;;  %v1855_v59 = vmul.f32 -1.442695, %v428_v56 }
 0x9b9   :  { %1948 = vpow2.f32 %v1855_v59 }
 0x9bd   :  { %v1947_v57 = vpop.eup %1946 }
 0x9be   :  { %454 = vrot.lane.b32.xlu1 %v1947_v57, %s2138_s24 }
 0x9bf   :  { %v1949_v60 = vpop.eup %1948 }
 0x9c0   :  { %v432_v61 = vadd.f32 1.0, %v1949_v60 }
 0x9c2   :  { %1950 = vrcp.f32 %v432_v61  ;;  %v444_v3 = vand.u32 2147483648, %v432_v61  ;;  %vm438_vm6 = vweird.f32 %v432_v61  ;;  %v442_v4 = vand.u32 2147483647, %v432_v61 }
 0x9c4   :  { %v445_v6 = vor.u32 1.1754944e-38, %v444_v3  ;;  %vm443_vm9 = vcmp.eq.f32.partialorder %v442_v4, 8.507059e+37 }
 0x9c8   :  { %v1951_v62 = vpop.eup %1950 }
 0x9c9   :  { %v434_v63 = vmul.f32 %v1951_v62, %v432_v61  ;;  %vm439_vm5 = vweird.f32 %v1951_v62 }
 0x9ca   :  { %vm440_vm8 = vmor %vm438_vm6, %vm439_vm5  ;;  %vm727_vm6 = vcmask 1040384  }
 0x9cb   :  { %v435_v0 = vsub.f32 1.0, %v434_v63 }
 0x9cd   :  { %v436_v1 = vmul.f32 %v1951_v62, %v435_v0 }
 0x9cf   :  { %v437_v2 = vadd.f32 %v1951_v62, %v436_v1 }
 0x9d1   :  { %v441_v5 = vsel %vm440_vm8, %v1951_v62, %v437_v2  ;;  %vm839_vm8 = vcmask 7168  }
 0x9d2   :  { %v446_v9 = vsel %vm443_vm9, %v445_v6, %v441_v5 }
 0x9d3   :  { %v452_v12 = vmul.f32 %v450_v11, %v446_v9 }
 0xa30   :  { %v455_v8 = vpop.permute.xlu1 %454 }
 0xa31   :  { %v457_v10 = vmul.f32 %v455_v8, %v446_v9 }
 0xa33   :  { %459 = vrot.lane.b32.xlu2 %v457_v10, %s2138_s24 }
 0xa8d   :  { %v460_v13 = vpop.permute.xlu2 %459 }
 0xa8e   :  { %v462_v14 = vadd.f32 %v460_v13, %v452_v12 }
 0xa90   :  { %1952 = vtanh.f32 %v462_v14  ;;  %v529_v40 = vrot.slane %v462_v14, 7 }
 0xa96   :  { %v1953_v15 = vpop.eup %1952 }
 0xa97   :  { %465 = vrot.lane.b32.xlu0 %v1953_v15, %s2138_s24 }
 0xb09   :  { %v466_v16 = vpop.permute.xlu0 %465 }
 0xb0a   :  { %v2270_v17 = vmul.f32 %v466_v16, %v446_v9 }
 0xb0c   :  { %v479_v18 = vrot.slane %v2270_v17, 4 }
 0xb0e   :  { %480 = vrot.lane.b32.xlu1 %v479_v18, %s2139_s25 }
 0xb80   :  { %v481_v19 = vpop.permute.xlu1 %480 }
 0xb81   :  { %1856 = vmatmul.msk.f32.vlgmr.msrb.gmra.mxu3 %vm94_vm7, %v481_v19 }
 0xc04   :  { %v501_v20 = vpop.f32.mrf.mxu3 }
 0xc05   :  { %v505_v21 = vrot.slane %v501_v20, 3 }
 0xc07   :  { %v507_v22 = vadd.f32 %v505_v21, %v2231_v7 }
 0xc09   :  { %1954 = vtanh.f32 %v507_v22  ;;  %v1857_v25 = vmul.f32 -1.442695, %v507_v22 }
 0xc0b   :  { %1956 = vpow2.f32 %v1857_v25 }
 0xc0f   :  { %v1955_v24 = vpop.eup %1954 }
 0xc10   :  { %533 = vrot.lane.b32.xlu2 %v1955_v24, %s2138_s24 }
 0xc11   :  { %v1957_v26 = vpop.eup %1956 }
 0xc12   :  { %v511_v27 = vadd.f32 1.0, %v1957_v26 }
 0xc14   :  { %1958 = vrcp.f32 %v511_v27  ;;  %v523_v33 = vand.u32 2147483648, %v511_v27  ;;  %vm517_vm11 = vweird.f32 %v511_v27  ;;  %v521_v34 = vand.u32 2147483647, %v511_v27 }
 0xc16   :  { %v524_v36 = vor.u32 1.1754944e-38, %v523_v33  ;;  %vm522_vm13 = vcmp.eq.f32.partialorder %v521_v34, 8.507059e+37 }
 0xc1a   :  { %v1959_v28 = vpop.eup %1958 }
 0xc1b   :  { %v513_v29 = vmul.f32 %v1959_v28, %v511_v27  ;;  %vm518_vm10 = vweird.f32 %v1959_v28 }
 0xc1c   :  { %vm519_vm12 = vmor %vm517_vm11, %vm518_vm10 }
 0xc1d   :  { %v514_v30 = vsub.f32 1.0, %v513_v29 }
 0xc1f   :  { %v515_v31 = vmul.f32 %v1959_v28, %v514_v30 }
 0xc21   :  { %v516_v32 = vadd.f32 %v1959_v28, %v515_v31 }
 0xc23   :  { %v520_v35 = vsel %vm519_vm12, %v1959_v28, %v516_v32 }
 0xc24   :  { %v525_v38 = vsel %vm522_vm13, %v524_v36, %v520_v35 }
 0xc25   :  { %v531_v41 = vmul.f32 %v529_v40, %v525_v38 }
 0xc6a   :  { %v534_v37 = vpop.permute.xlu2 %533 }
 0xc6b   :  { %v536_v39 = vmul.f32 %v534_v37, %v525_v38 }
 0xc6d   :  { %538 = vrot.lane.b32.xlu0 %v536_v39, %s2138_s24 }
 0xcdf   :  { %v539_v42 = vpop.permute.xlu0 %538 }
 0xce0   :  { %v541_v43 = vadd.f32 %v539_v42, %v531_v41 }
 0xce2   :  { %1960 = vtanh.f32 %v541_v43  ;;  %v608_v9 = vrot.slane %v541_v43, 7  ;;  %v2309_v43 = vld [vmem:[%s2732_s4 + $0x18] sm:$0xff] }
 0xce3   :  { %750 = vmatpush.msra.mxu2 %v2309_v43  ;;  %954 = vmatpush.msrb.mxu1 %v2309_v43 }
 0xce8   :  { %v1961_v44 = vpop.eup %1960 }
 0xce9   :  { %544 = vrot.lane.b32.xlu1 %v1961_v44, %s2138_s24  ;;  %v2314_v44 = vld [vmem:[%s2732_s4 + $0x10] sm:$0xff] }
 0xcea   :  { %751 = vmatpush.msra.mxu2 %v2314_v44  ;;  %955 = vmatpush.msrb.mxu1 %v2314_v44 }
 0xcec   :  { %752 = vmatpush.msra.mxu2 %v2321_v45  ;;  %956 = vmatpush.msrb.mxu1 %v2321_v45 }
 0xd5b   :  { %v545_v46 = vpop.permute.xlu1 %544 }
 0xd5c   :  { %v2283_v47 = vmul.f32 %v545_v46, %v525_v38 }
 0xd5e   :  { %v558_v48 = vrot.slane %v2283_v47, 5 }
 0xd60   :  { %559 = vrot.lane.b32.xlu2 %v558_v48, %s2139_s25  ;;  %v2324_v48 = vstv %s44_s0  ;;  %s2151_s0 = smov 2  }
 0xdba   :  { %v560_v49 = vpop.permute.xlu2 %559 }
 0xdbb   :  { %1858 = vmatmul.msk.f32.vlgmr.msrb.gmra.mxu0 %vm94_vm7, %v560_v49 }
 0xdbc   :  { %1152 = vmatpush.msrb.mxu0 %v2309_v43 }
 0xdbe   :  { %1153 = vmatpush.msrb.mxu0 %v2314_v44 }
 0xdc0   :  { %1154 = vmatpush.msrb.mxu0 %v2321_v45 }
 0xe38   :  { %v580_v52 = vpop.f32.mrf.mxu0 }
 0xe39   :  { %v584_v53 = vrot.slane %v580_v52, 2  ;;  %v2333_v52 = vld [vmem:[%s2732_s4] sm:$0xff]  ;;  %s2154_s4 = smov 5  }
 0xe3a   :  { %753 = vmatpush.msra.mxu2 %v2333_v52  ;;  %957 = vmatpush.msrb.mxu1 %v2333_v52 }
 0xe3b   :  { %v586_v54 = vadd.f32 %v584_v53, %v2231_v7  ;;  %v2336_v53 = vstv %s1837_s28  ;;  %1155 = vmatpush.msrb.mxu0 %v2333_v52 }
 0xe3d   :  { %1962 = vtanh.f32 %v586_v54  ;;  %v1859_v56 = vmul.f32 -1.442695, %v586_v54 }
 0xe3f   :  { %1964 = vpow2.f32 %v1859_v56 }
 0xe43   :  { %v1963_v55 = vpop.eup %1962 }
 0xe44   :  { %612 = vrot.lane.b32.xlu0 %v1963_v55, %s2138_s24 }
 0xe45   :  { %v1965_v57 = vpop.eup %1964 }
 0xe46   :  { %v590_v59 = vadd.f32 1.0, %v1965_v57  ;;  %v2348_v57 = vstv %s1840_s12 }
 0xe48   :  { %1966 = vrcp.f32 %v590_v59  ;;  %v602_v1 = vand.u32 2147483648, %v590_v59  ;;  %vm596_vm14 = vweird.f32 %v590_v59  ;;  %v600_v2 = vand.u32 2147483647, %v590_v59 }
 0xe4a   :  { %v603_v4 = vor.u32 1.1754944e-38, %v602_v1  ;;  %vm601_vm0 = vcmp.eq.f32.partialorder %v600_v2, 8.507059e+37 }
 0xe4e   :  { %v1967_v60 = vpop.eup %1966 }
 0xe4f   :  { %v592_v61 = vmul.f32 %v1967_v60, %v590_v59  ;;  %vm597_vm1 = vweird.f32 %v1967_v60 }
 0xe50   :  { %vm598_vm15 = vmor %vm596_vm14, %vm597_vm1 }
 0xe51   :  { %v593_v62 = vsub.f32 1.0, %v592_v61 }
 0xe53   :  { %v594_v63 = vmul.f32 %v1967_v60, %v593_v62 }
 0xe55   :  { %v595_v0 = vadd.f32 %v1967_v60, %v594_v63 }
 0xe57   :  { %v599_v3 = vsel %vm598_vm15, %v1967_v60, %v595_v0  ;;  %v2354_v60 = vstv %s1841_s17  ;;  %s2153_s17 = smov 3  }
 0xe58   :  { %v604_v6 = vsel %vm601_vm0, %v603_v4, %v599_v3 }
 0xe59   :  { %v610_v10 = vmul.f32 %v608_v9, %v604_v6 }
 0xeb6   :  { %v613_v5 = vpop.permute.xlu0 %612 }
 0xeb7   :  { %v615_v8 = vmul.f32 %v613_v5, %v604_v6 }
 0xeb9   :  { %617 = vrot.lane.b32.xlu1 %v615_v8, %s2138_s24 }
 0xf2b   :  { %v618_v11 = vpop.permute.xlu1 %617 }
 0xf2c   :  { %v620_v12 = vadd.f32 %v618_v11, %v610_v10 }
 0xf2e   :  { %1968 = vtanh.f32 %v620_v12  ;;  %v687_v38 = vrot.slane %v620_v12, 7 }
 0xf34   :  { %v1969_v13 = vpop.eup %1968 }
 0xf35   :  { %623 = vrot.lane.b32.xlu2 %v1969_v13, %s2138_s24  ;;  %v2372_v13 = vld [vmem:[%s2733_s5 + $0x18] sm:$0xff] }
 0xf36   :  { %793 = vmatpush.msra.mxu3 %v2372_v13  ;;  %995 = vmatpush.msrb.mxu2 %v2372_v13 }
 0xf8f   :  { %v624_v14 = vpop.permute.xlu2 %623 }
 0xf90   :  { %v2294_v15 = vmul.f32 %v624_v14, %v604_v6  ;;  %v2377_v14 = vld [vmem:[%s2733_s5 + $0x10] sm:$0xff] }
 0xf91   :  { %794 = vmatpush.msra.mxu3 %v2377_v14  ;;  %996 = vmatpush.msrb.mxu2 %v2377_v14 }
 0xf92   :  { %v637_v16 = vrot.slane %v2294_v15, 6 }
 0xf94   :  { %638 = vrot.lane.b32.xlu0 %v637_v16, %s2139_s25  ;;  %v2384_v16 = vld [vmem:[%s2733_s5 + $0x8] sm:$0xff] }
 0xf95   :  { %795 = vmatpush.msra.mxu3 %v2384_v16  ;;  %997 = vmatpush.msrb.mxu2 %v2384_v16 }
0x1006   :  { %v639_v18 = vpop.permute.xlu0 %638 }
0x1007   :  { %1860 = vmatmul.msk.f32.vlgmr.msra.gmra.mxu1 %vm94_vm7, %v639_v18  ;;  %v2391_v18 = vld [vmem:[%s2733_s5] sm:$0xff] }
0x1008   :  { %1350 = vmatpush.msra.mxu1 %v2309_v43  ;;  %796 = vmatpush.msra.mxu3 %v2391_v18 }
0x1009   :  { %998 = vmatpush.msrb.mxu2 %v2391_v18 }
0x100a   :  { %1351 = vmatpush.msra.mxu1 %v2314_v44 }
0x100c   :  { %1352 = vmatpush.msra.mxu1 %v2321_v45 }
0x100e   :  { %1353 = vmatpush.msra.mxu1 %v2333_v52 }
0x1084   :  { %v659_v19 = vpop.f32.mrf.mxu1 }
0x1085   :  { %v663_v20 = vrot.slane %v659_v19, 1  ;;  %v2399_v19 = vstv %s1838_s22  ;;  %s2147_s22 = smov 8  }
0x1087   :  { %v665_v21 = vadd.f32 %v663_v20, %v2231_v7 }
0x1089   :  { %1970 = vtanh.f32 %v665_v21  ;;  %v1861_v24 = vmul.f32 -1.442695, %v665_v21  ;;  %v2405_v21 = vstv %s1839_s27  ;;  %s2150_s27 = smov 1  }
0x108b   :  { %1972 = vpow2.f32 %v1861_v24 }
0x108f   :  { %v1971_v22 = vpop.eup %1970 }
0x1090   :  { %691 = vrot.lane.b32.xlu1 %v1971_v22, %s2138_s24 }
0x1091   :  { %v1973_v25 = vpop.eup %1972 }
0x1092   :  { %v669_v26 = vadd.f32 1.0, %v1973_v25 }
0x1094   :  { %1974 = vrcp.f32 %v669_v26  ;;  %v681_v32 = vand.u32 2147483648, %v669_v26  ;;  %vm675_vm3 = vweird.f32 %v669_v26  ;;  %v679_v33 = vand.u32 2147483647, %v669_v26 }
0x1096   :  { %v682_v34 = vor.u32 1.1754944e-38, %v681_v32  ;;  %vm680_vm5 = vcmp.eq.f32.partialorder %v679_v33, 8.507059e+37 }
0x109a   :  { %v1975_v27 = vpop.eup %1974 }
0x109b   :  { %v671_v28 = vmul.f32 %v1975_v27, %v669_v26  ;;  %vm676_vm2 = vweird.f32 %v1975_v27 }
0x109c   :  { %vm677_vm4 = vmor %vm675_vm3, %vm676_vm2 }
0x109d   :  { %v672_v29 = vsub.f32 1.0, %v671_v28  ;;  %v2412_v28 = vld [vmem:[%s2729_s1] sm:$0xff]  ;;  %s2141_s1 = smov 127  }
0x109f   :  { %v673_v30 = vmul.f32 %v1975_v27, %v672_v29 }
0x10a1   :  { %v674_v31 = vadd.f32 %v1975_v27, %v673_v30  ;;  %v2416_v30 = vstv %s1843_s30 }
0x10a3   :  { %v678_v7 = vsel %vm677_vm4, %v1975_v27, %v674_v31 }
0x10a4   :  { %v683_v36 = vsel %vm680_vm5, %v682_v34, %v678_v7 }
0x10a5   :  { %v689_v39 = vmul.f32 %v687_v38, %v683_v36 }
0x1102   :  { %v692_v35 = vpop.permute.xlu1 %691 }
0x1103   :  { %v694_v37 = vmul.f32 %v692_v35, %v683_v36 }
0x1105   :  { %696 = vrot.lane.b32.xlu2 %v694_v37, %s2138_s24 }
0x115f   :  { %v697_v40 = vpop.permute.xlu2 %696 }
0x1160   :  { %v2302_v41 = vadd.f32 %v697_v40, %v689_v39 }
0x1162   :  { %1976 = vtanh.f32 %v2302_v41 }
0x1168   :  { %v1977_v42 = vpop.eup %1976 }
0x1169   :  { %702 = vrot.lane.b32.xlu0 %v1977_v42, %s2138_s24 }
0x11db   :  { %v703_v46 = vpop.permute.xlu0 %702 }
0x11dc   :  { %v2328_v49 = vmul.f32 %v703_v46, %v683_v36 }
0x11de   :  { %v707_v54 = vmul.f32 %v2324_v48, %v2328_v49  ;;  %v717_v59 = vmul.f32 %v2348_v57, %v2328_v49  ;;  %v853_v3 = vrot.slane %v2328_v49, 7  ;;  %v713_v20 = vmul.f32 %v2399_v19, %v2328_v49 }
0x11e0   :  { %v709_v55 = vadd.f32 %v2336_v53, %v707_v54  ;;  %v719_v61 = vadd.f32 %v2354_v60, %v717_v59  ;;  %v715_v22 = vadd.f32 %v2405_v21, %v713_v20 }
0x11e2   :  { %v710_v56 = vmul.f32 1.442695, %v709_v55  ;;  %v2142_v55 = vmov 0  }
0x11e3   :  { %1910 = vset.pattern.permute.xlu1 %v2142_v55  ;;  %1911 = vset.pattern.permute.xlu0 %v2142_v55 }
0x11e4   :  { %1978 = vpow2.f32 %v710_v56  ;;  %1912 = vset.pattern.permute.xlu2 %v2142_v55  ;;  %v2425_v56 = vstv %s1842_s10 }
0x11ea   :  { %v1979_v62 = vpop.eup %1978 }
0x11eb   :  { %v720_v63 = vmul.f32 %v1979_v62, %v719_v61  ;;  %v722_v0 = vrot.slane %v1979_v62, 7 }
0x11ed   :  { %v725_v1 = vrot.slane %v720_v63, 6 }
0x11ef   :  { %v728_v2 = vsel %vm727_vm6, %v722_v0, %v725_v1 }
0x11f0   :  { %734 = vrot.lane.b32.xlu1 %v728_v2, %s2139_s25  ;;  %v2441_v2 = vld [vmem:[%s2730_s2 + $0x4] ss:$0 sm:$0xff] }
0x11f8   :  { %854 = vrot.lane.b32.xlu1 %v853_v3, %s2139_s25 }
0x1262   :  { %v735_v4 = vpop.permute.xlu1 %734 }
0x1263   :  { %1862 = vmatmul.msk.f32.vlgmr.msra.gmra.mxu2 %vm94_vm7, %v735_v4 }
0x1264   :  { %1193 = vmatpush.msra.mxu2 %v2372_v13 }
0x1266   :  { %1194 = vmatpush.msra.mxu2 %v2377_v14 }
0x1268   :  { %1195 = vmatpush.msra.mxu2 %v2384_v16 }
0x126a   :  { %v855_v5 = vpop.permute.xlu1 %854  ;;  %1196 = vmatpush.msra.mxu2 %v2391_v18 }
0x126b   :  { %1864 = vmatmul.msk.f32.vlgmr.msra.gmra.mxu0 %vm94_vm7, %v855_v5 }
0x126c   :  { %1548 = vmatpush.msra.mxu0 %v2309_v43 }
0x126e   :  { %1549 = vmatpush.msra.mxu0 %v2314_v44 }
0x1270   :  { %1550 = vmatpush.msra.mxu0 %v2321_v45 }
0x1272   :  { %1551 = vmatpush.msra.mxu0 %v2333_v52 }
0x12e6   :  { %v755_v6 = vpop.f32.mrf.mxu2 }
0x12e7   :  { %v758_v8 = vadd.f32 1e-09, %v755_v6 }
0x12e8   :  { %v875_v0 = vpop.f32.mrf.mxu0 }
0x12e9   :  { %1980 = vrcp.f32 %v758_v8  ;;  %v878_v1 = vadd.f32 %v875_v0, %v2288_v50 }
0x12eb   :  { %v879_v4 = vperm.slane %v878_v1, 0  ;;  %v1051_v1 = vld [vmem:[%s2731_s3 + $0x18] sm:$0xff] }
0x12ec   :  { %1069 = vmatpush.msrb.mxu3 %v1051_v1 }
0x12ef   :  { %v1981_v9 = vpop.eup %1980 }
0x12f0   :  { %v761_v10 = vrot.slane %v1981_v9, 7 }
0x12f2   :  { %v763_v11 = vmul.f32 %v761_v10, %v755_v6 }
0x12f4   :  { %v765_v12 = vrot.slane %v763_v11, 2 }
0x12f6   :  { %766 = vrot.lane.b32.xlu2 %v765_v12, %s2139_s25 }
0x12fe   :  { %830 = vrot.lane.b32.xlu2 %v2412_v28, %s2140_s29 }
0x1350   :  { %v767_v24 = vpop.permute.xlu2 %766 }
0x1351   :  { %v769_v25 = vadd.f32 %v767_v24, %v715_v22 }
0x1353   :  { %1982 = vtanh.f32 %v769_v25 }
0x1358   :  { %v831_v46 = vpop.permute.xlu2 %830 }
0x1359   :  { %v1983_v26 = vpop.eup %1982 }
0x135a   :  { %v776_v27 = vrot.slane %v1983_v26, 7 }
0x135c   :  { %777 = vrot.lane.b32.xlu0 %v776_v27, %s2139_s25 }
0x13ce   :  { %v778_v29 = vpop.permute.xlu0 %777 }
0x13cf   :  { %1863 = vmatmul.msk.f32.vlgmr.msra.gmra.mxu3 %vm94_vm7, %v778_v29 }
0x1452   :  { %v798_v31 = vpop.f32.mrf.mxu3 }
0x1453   :  { %v804_v32 = vadd.f32 %v2416_v30, %v798_v31  ;;  %v2428_v59 = vadd.f32 %v2425_v56, %v798_v31 }
0x1455   :  { %v806_v33 = vand.u32 2147483647, %v804_v32  ;;  %v805_v38 = vmax.f32 %v804_v32, 0.0  ;;  %v815_v61 = vperm.slane %v2428_v59, 0 }
0x1457   :  { %v807_v7 = vsub.f32 0.0, %v806_v33 }
0x1459   :  { %v808_v34 = vmul.f32 1.442695, %v807_v7 }
0x145b   :  { %1984 = vpow2.f32 %v808_v34  ;;  %v901_v34 = vperm.slane %v2302_v41, 7 }
0x1461   :  { %v1985_v35 = vpop.eup %1984 }
0x1462   :  { %v810_v36 = vadd.f32 1.0, %v1985_v35 }
0x1464   :  { %1986 = vlog2.f32 %v810_v36 }
0x146a   :  { %v1987_v37 = vpop.eup %1986 }
0x146b   :  { %v812_v39 = vmul.f32 0.6931472, %v1987_v37 }
0x146d   :  { %v813_v40 = vadd.f32 %v812_v39, %v805_v38 }
0x146f   :  { %v2419_v42 = vadd.f32 1e-06, %v813_v40 }
0x1471   :  { %v822_v49 = vperm.slane %v2419_v42, 0  ;;  %v1683_v42 = vld [vmem:[%s2733_s5 + $0x8] sm:$0xff] }
0x1473   :  { %v833_v54 = vmul.f32 %v831_v46, %v822_v49 }
0x1475   :  { %835 = vrot.lane.b32.xlu0 %v833_v54, %s2141_s1 }
0x14e7   :  { %v836_v62 = vpop.permute.xlu0 %835 }
0x14e8   :  { %v838_v63 = vadd.f32 %v836_v62, %v815_v61 }
0x14ea   :  { %840 = vst.msk [vmem:[%s2737_s9] sm:$0xff] %vm839_vm8, %v838_v63  ;;  %843 = vperm.xlu1 %1910, %v838_v63  }
0x155c   :  { %v844_v3 = vpop.permute.xlu1 %843 }
0x155d   :  { %v847_v5 = vmul.f32 %v2441_v2, %v844_v3  ;;  %v1050_v3 = vld [vmem:[%s2731_s3 + $0x10] sm:$0xff] }
0x155e   :  { %1070 = vmatpush.msrb.mxu3 %v1050_v3 }
0x155f   :  { %v880_v6 = vadd.f32 %v879_v4, %v847_v5  ;;  %v1049_v4 = vld [vmem:[%s2731_s3 + $0x8] sm:$0xff]  ;;  %v1048_v5 = vld [vmem:[%s2731_s3] sm:$0xff]  ;;  %s2143_s3 = smov 121  }
0x1560   :  { %1071 = vmatpush.msrb.mxu3 %v1049_v4 }
0x1561   :  { %1988 = vtanh.f32 %v880_v6  ;;  %v1865_v9 = vmul.f32 -1.442695, %v880_v6 }
0x1562   :  { %1072 = vmatpush.msrb.mxu3 %v1048_v5 }
0x1563   :  { %1990 = vpow2.f32 %v1865_v9 }
0x1564   :  { %1267 = vmatpush.msra.mxu3 %v1051_v1 }
0x1566   :  { %1268 = vmatpush.msra.mxu3 %v1050_v3 }
0x1567   :  { %v1989_v8 = vpop.eup %1988 }
0x1568   :  { %904 = vrot.lane.b32.xlu2 %v1989_v8, %s2138_s24  ;;  %1269 = vmatpush.msra.mxu3 %v1049_v4 }
0x1569   :  { %v1991_v10 = vpop.eup %1990 }
0x156a   :  { %v884_v11 = vadd.f32 1.0, %v1991_v10  ;;  %1270 = vmatpush.msra.mxu3 %v1048_v5 }
0x156c   :  { %1992 = vrcp.f32 %v884_v11  ;;  %v896_v26 = vand.u32 2147483648, %v884_v11  ;;  %vm890_vm10 = vweird.f32 %v884_v11  ;;  %v894_v27 = vand.u32 2147483647, %v884_v11 }
0x156e   :  { %v897_v31 = vor.u32 1.1754944e-38, %v896_v26  ;;  %vm895_vm12 = vcmp.eq.f32.partialorder %v894_v27, 8.507059e+37 }
0x1572   :  { %v1993_v12 = vpop.eup %1992 }
0x1573   :  { %v886_v20 = vmul.f32 %v1993_v12, %v884_v11  ;;  %vm891_vm9 = vweird.f32 %v1993_v12 }
0x1574   :  { %vm892_vm11 = vmor %vm890_vm10, %vm891_vm9 }
0x1575   :  { %v887_v22 = vsub.f32 1.0, %v886_v20 }
0x1577   :  { %v888_v24 = vmul.f32 %v1993_v12, %v887_v22 }
0x1579   :  { %v889_v25 = vadd.f32 %v1993_v12, %v888_v24 }
0x157b   :  { %v893_v29 = vsel %vm892_vm11, %v1993_v12, %v889_v25 }
0x157c   :  { %v898_v33 = vsel %vm895_vm12, %v897_v31, %v893_v29  ;;  %vm236_vm12 = vcmask 254977  }
0x157d   :  { %v902_v35 = vmul.f32 %v901_v34, %v898_v33 }
0x15c2   :  { %v905_v32 = vpop.permute.xlu2 %904 }
0x15c3   :  { %v907_v7 = vmul.f32 %v905_v32, %v898_v33 }
0x15c5   :  { %909 = vrot.lane.b32.xlu0 %v907_v7, %s2138_s24 }
0x1637   :  { %v910_v36 = vpop.permute.xlu0 %909 }
0x1638   :  { %v2447_v37 = vadd.f32 %v910_v36, %v902_v35 }
0x163a   :  { %1994 = vtanh.f32 %v2447_v37 }
0x1640   :  { %v1995_v38 = vpop.eup %1994 }
0x1641   :  { %915 = vrot.lane.b32.xlu1 %v1995_v38, %s2138_s24 }
0x16b3   :  { %v916_v39 = vpop.permute.xlu1 %915 }
0x16b4   :  { %v918_v40 = vmul.f32 %v916_v39, %v898_v33 }
0x16b6   :  { %v919_v46 = vmul.f32 %v918_v40, %v2324_v48  ;;  %v925_v62 = vmul.f32 %v918_v40, %v2348_v57  ;;  %v923_v24 = vmul.f32 %v918_v40, %v2399_v19 }
0x16b8   :  { %v920_v54 = vadd.f32 %v919_v46, %v2336_v53  ;;  %v926_v41 = vadd.f32 %v925_v62, %v2354_v60  ;;  %v924_v25 = vadd.f32 %v923_v24, %v2405_v21 }
0x16ba   :  { %v921_v55 = vmul.f32 1.442695, %v920_v54 }
0x16bc   :  { %1996 = vpow2.f32 %v921_v55 }
0x16c2   :  { %v1997_v63 = vpop.eup %1996 }
0x16c3   :  { %934 = vrot.lane.b32.xlu2 %v1997_v63, %s2139_s25  ;;  %v927_v0 = vmul.f32 %v1997_v63, %v926_v41  ;;  %v1077_v63 = vperm.slane %v2288_v50, 1 }
0x16c5   :  { %936 = vrot.lane.b32.xlu0 %v927_v0, %s2139_s25 }
0x16cd   :  { %1053 = vrot.lane.b32.xlu0 %v918_v40, %s2139_s25 }
0x171d   :  { %v935_v6 = vpop.permute.xlu2 %934 }
0x171e   :  { %1866 = vmatmul.msk.f32.vlgmr.msrb.gmra.mxu1 %vm94_vm7, %v935_v6 }
0x1737   :  { %v937_v8 = vpop.permute.xlu0 %936 }
0x1738   :  { %1867 = vmatmul.msk.f32.gmra.mxu1 %vm94_vm7, %v937_v8 }
0x173f   :  { %v1054_v9 = vpop.permute.xlu0 %1053 }
0x1740   :  { %1869 = vmatmul.msk.f32.vlgmr.msrb.gmra.mxu3 %vm94_vm7, %v1054_v9 }
0x1741   :  { %1465 = vmatpush.msrb.mxu3 %v1051_v1 }
0x1743   :  { %1466 = vmatpush.msrb.mxu3 %v1050_v3 }
0x1745   :  { %1467 = vmatpush.msrb.mxu3 %v1049_v4 }
0x1747   :  { %1468 = vmatpush.msrb.mxu3 %v1048_v5 }
0x179b   :  { %v959_v10 = vpop.f32.mrf.mxu1 }
0x179c   :  { %v965_v11 = vadd.f32 1e-09, %v959_v10 }
0x179e   :  { %1998 = vrcp.f32 %v965_v11 }
0x17a4   :  { %v1999_v12 = vpop.eup %1998 }
0x17b5   :  { %v962_v20 = vpop.f32.mrf.mxu1 }
0x17b6   :  { %v967_v22 = vmul.f32 %v1999_v12, %v962_v20 }
0x17b8   :  { %969 = vrot.lane.b32.xlu1 %v967_v22, %s2139_s25 }
0x17c0   :  { %1028 = vrot.lane.b32.xlu1 %v2412_v28, %s2143_s3 }
0x17c3   :  { %v1074_v41 = vpop.f32.mrf.mxu3 }
0x17c4   :  { %v1078_v1 = vadd.f32 %v1077_v63, %v1074_v41 }
0x182a   :  { %v970_v26 = vpop.permute.xlu1 %969 }
0x182b   :  { %v972_v27 = vadd.f32 %v970_v26, %v924_v25 }
0x182d   :  { %2000 = vtanh.f32 %v972_v27 }
0x1832   :  { %v1029_v54 = vpop.permute.xlu1 %1028 }
0x1833   :  { %v2001_v29 = vpop.eup %2000 }
0x1834   :  { %979 = vrot.lane.b32.xlu2 %v2001_v29, %s2139_s25 }
0x188e   :  { %v980_v31 = vpop.permute.xlu2 %979 }
0x188f   :  { %1868 = vmatmul.msk.f32.vlgmr.msrb.gmra.mxu2 %vm94_vm7, %v980_v31 }
0x1890   :  { %1391 = vmatpush.msrb.mxu2 %v2372_v13 }
0x1892   :  { %1392 = vmatpush.msrb.mxu2 %v2377_v14 }
0x1894   :  { %1393 = vmatpush.msrb.mxu2 %v2384_v16 }
0x1896   :  { %1394 = vmatpush.msrb.mxu2 %v2391_v18 }
0x1912   :  { %v1000_v32 = vpop.f32.mrf.mxu2 }
0x1913   :  { %v1004_v33 = vadd.f32 %v1000_v32, %v2416_v30  ;;  %v2489_v18 = vadd.f32 %v1000_v32, %v2425_v56 }
0x1915   :  { %v1006_v7 = vand.u32 2147483647, %v1004_v33  ;;  %v1005_v40 = vmax.f32 %v1004_v33, 0.0 }
0x1917   :  { %v1007_v34 = vsub.f32 0.0, %v1006_v7 }
0x1919   :  { %v1008_v35 = vmul.f32 1.442695, %v1007_v34 }
0x191b   :  { %2002 = vpow2.f32 %v1008_v35 }
0x1921   :  { %v2003_v36 = vpop.eup %2002 }
0x1922   :  { %v1010_v38 = vadd.f32 1.0, %v2003_v36 }
0x1924   :  { %2004 = vlog2.f32 %v1010_v38 }
0x192a   :  { %v2005_v39 = vpop.eup %2004 }
0x192b   :  { %v1012_v46 = vmul.f32 0.6931472, %v2005_v39 }
0x192d   :  { %v1013_v13 = vadd.f32 %v1012_v46, %v1005_v40 }
0x192f   :  { %v2484_v14 = vadd.f32 1e-06, %v1013_v13 }
0x1931   :  { %v1031_v16 = vmul.f32 %v1029_v54, %v2484_v14 }
0x1933   :  { %1033 = vrot.lane.b32.xlu2 %v1031_v16, %s2141_s1 }
0x198d   :  { %v1034_v55 = vpop.permute.xlu2 %1033 }
0x198e   :  { %v2492_v62 = vadd.f32 %v1034_v55, %v2489_v18 }
0x1990   :  { %1044 = vperm.xlu0 %1911, %v2492_v62  }
0x1a02   :  { %v1045_v0 = vpop.permute.xlu0 %1044 }
0x1a03   :  { %v1047_v3 = vmul.f32 %v2441_v2, %v1045_v0 }
0x1a05   :  { %v1079_v4 = vadd.f32 %v1078_v1, %v1047_v3 }
0x1a07   :  { %2006 = vtanh.f32 %v1079_v4  ;;  %v1870_v6 = vmul.f32 -1.442695, %v1079_v4 }
0x1a09   :  { %2008 = vpow2.f32 %v1870_v6 }
0x1a0d   :  { %v2007_v5 = vpop.eup %2006 }
0x1a0e   :  { %1102 = vrot.lane.b32.xlu1 %v2007_v5, %s2138_s24 }
0x1a0f   :  { %v2009_v8 = vpop.eup %2008 }
0x1a10   :  { %v1083_v9 = vadd.f32 1.0, %v2009_v8 }
0x1a12   :  { %2010 = vrcp.f32 %v1083_v9  ;;  %v1095_v24 = vand.u32 2147483648, %v1083_v9  ;;  %vm1089_vm1 = vweird.f32 %v1083_v9  ;;  %v1093_v25 = vand.u32 2147483647, %v1083_v9 }
0x1a14   :  { %v1096_v27 = vor.u32 1.1754944e-38, %v1095_v24  ;;  %vm1094_vm15 = vcmp.eq.f32.partialorder %v1093_v25, 8.507059e+37 }
0x1a18   :  { %v2011_v10 = vpop.eup %2010 }
0x1a19   :  { %v1085_v11 = vmul.f32 %v2011_v10, %v1083_v9  ;;  %vm1090_vm13 = vweird.f32 %v2011_v10 }
0x1a1a   :  { %vm1091_vm14 = vmor %vm1089_vm1, %vm1090_vm13  ;;  %vm473_vm13 = vcmask 258052   ;;  %vm315_vm1 = vcmask 256002  }
0x1a1b   :  { %v1086_v12 = vsub.f32 1.0, %v1085_v11 }
0x1a1d   :  { %v1087_v20 = vmul.f32 %v2011_v10, %v1086_v12 }
0x1a1f   :  { %v1088_v22 = vadd.f32 %v2011_v10, %v1087_v20 }
0x1a21   :  { %v1092_v26 = vsel %vm1091_vm14, %v2011_v10, %v1088_v22  ;;  %vm394_vm14 = vcmask 257027  }
0x1a22   :  { %v1097_v31 = vsel %vm1094_vm15, %v1096_v27, %v1092_v26  ;;  %vm552_vm15 = vcmask 259077  }
0x1a23   :  { %v1100_v33 = vmul.f32 %v1097_v31, %v2447_v37 }
0x1a80   :  { %v1103_v29 = vpop.permute.xlu1 %1102 }
0x1a81   :  { %v1105_v32 = vmul.f32 %v1103_v29, %v1097_v31 }
0x1a83   :  { %1107 = vrot.lane.b32.xlu2 %v1105_v32, %s2138_s24 }
0x1add   :  { %v1108_v7 = vpop.permute.xlu2 %1107 }
0x1ade   :  { %v2500_v34 = vadd.f32 %v1108_v7, %v1100_v33 }
0x1ae0   :  { %2012 = vtanh.f32 %v2500_v34 }
0x1ae6   :  { %v2013_v35 = vpop.eup %2012 }
0x1ae7   :  { %1113 = vrot.lane.b32.xlu1 %v2013_v35, %s2138_s24 }
0x1b59   :  { %v1114_v36 = vpop.permute.xlu1 %1113 }
0x1b5a   :  { %v1116_v38 = vmul.f32 %v1114_v36, %v1097_v31 }
0x1b5c   :  { %v1117_v39 = vmul.f32 %v1116_v38, %v2324_v48  ;;  %v1123_v13 = vmul.f32 %v1116_v38, %v2348_v57  ;;  %v1121_v6 = vmul.f32 %v1116_v38, %v2399_v19 }
0x1b5e   :  { %v1118_v40 = vadd.f32 %v1117_v39, %v2336_v53  ;;  %v1124_v37 = vadd.f32 %v1123_v13, %v2354_v60  ;;  %v1275_v39 = vperm.slane %v2288_v50, 2 }
0x1b60   :  { %v1119_v46 = vmul.f32 1.442695, %v1118_v40 }
0x1b62   :  { %2014 = vpow2.f32 %v1119_v46 }
0x1b68   :  { %v2015_v54 = vpop.eup %2014 }
0x1b69   :  { %1132 = vrot.lane.b32.xlu2 %v2015_v54, %s2139_s25  ;;  %v1125_v16 = vmul.f32 %v2015_v54, %v1124_v37 }
0x1b6b   :  { %1134 = vrot.lane.b32.xlu0 %v1125_v16, %s2139_s25 }
0x1b73   :  { %1251 = vrot.lane.b32.xlu0 %v1116_v38, %s2139_s25 }
0x1bc3   :  { %v1133_v55 = vpop.permute.xlu2 %1132 }
0x1bc4   :  { %1871 = vmatmul.msk.f32.vlgmr.msrb.gmra.mxu0 %vm94_vm7, %v1133_v55 }
0x1bdd   :  { %v1135_v41 = vpop.permute.xlu0 %1134 }
0x1bde   :  { %1872 = vmatmul.msk.f32.gmra.mxu0 %vm94_vm7, %v1135_v41 }
0x1be5   :  { %v1252_v63 = vpop.permute.xlu0 %1251 }
0x1be6   :  { %1874 = vmatmul.msk.f32.vlgmr.msra.gmra.mxu3 %vm94_vm7, %v1252_v63 }
0x1be7   :  { %1656 = vmatpush.msra.mxu3 %v2309_v43  ;;  %v1122_v43 = vadd.f32 %v1121_v6, %v2405_v21 }
0x1be9   :  { %1657 = vmatpush.msra.mxu3 %v2314_v44 }
0x1beb   :  { %1658 = vmatpush.msra.mxu3 %v2321_v45 }
0x1bed   :  { %1659 = vmatpush.msra.mxu3 %v2333_v52 }
0x1c41   :  { %v1157_v0 = vpop.f32.mrf.mxu0 }
0x1c42   :  { %v1163_v1 = vadd.f32 1e-09, %v1157_v0 }
0x1c44   :  { %2016 = vrcp.f32 %v1163_v1 }
0x1c4a   :  { %v2017_v3 = vpop.eup %2016 }
0x1c5b   :  { %v1160_v4 = vpop.f32.mrf.mxu0 }
0x1c5c   :  { %v1165_v5 = vmul.f32 %v2017_v3, %v1160_v4 }
0x1c5e   :  { %1167 = vrot.lane.b32.xlu1 %v1165_v5, %s2139_s25 }
0x1c66   :  { %1226 = vrot.lane.b32.xlu1 %v2412_v28, %s2144_s20 }
0x1c69   :  { %v1272_v38 = vpop.f32.mrf.mxu3 }
0x1c6a   :  { %v1276_v46 = vadd.f32 %v1275_v39, %v1272_v38 }
0x1cd0   :  { %v1168_v44 = vpop.permute.xlu1 %1167 }
0x1cd1   :  { %v1170_v8 = vadd.f32 %v1168_v44, %v1122_v43 }
0x1cd3   :  { %2018 = vtanh.f32 %v1170_v8 }
0x1cd8   :  { %v1227_v31 = vpop.permute.xlu1 %1226 }
0x1cd9   :  { %v2019_v45 = vpop.eup %2018 }
0x1cda   :  { %1177 = vrot.lane.b32.xlu2 %v2019_v45, %s2139_s25 }
0x1d34   :  { %v1178_v52 = vpop.permute.xlu2 %1177 }
0x1d35   :  { %1873 = vmatmul.msk.f32.vlgmr.msra.gmra.mxu2 %vm94_vm7, %v1178_v52 }
0x1db8   :  { %v1198_v9 = vpop.f32.mrf.mxu2 }
0x1db9   :  { %v1202_v10 = vadd.f32 %v1198_v9, %v2416_v30  ;;  %v2530_v7 = vadd.f32 %v1198_v9, %v2425_v56 }
0x1dbb   :  { %v1204_v11 = vand.u32 2147483647, %v1202_v10  ;;  %v1203_v26 = vmax.f32 %v1202_v10, 0.0 }
0x1dbd   :  { %v1205_v12 = vsub.f32 0.0, %v1204_v11 }
0x1dbf   :  { %v1206_v20 = vmul.f32 1.442695, %v1205_v12 }
0x1dc1   :  { %2020 = vpow2.f32 %v1206_v20 }
0x1dc7   :  { %v2021_v22 = vpop.eup %2020 }
0x1dc8   :  { %v1208_v24 = vadd.f32 1.0, %v2021_v22 }
0x1dca   :  { %2022 = vlog2.f32 %v1208_v24 }
0x1dd0   :  { %v2023_v25 = vpop.eup %2022 }
0x1dd1   :  { %v1210_v27 = vmul.f32 0.6931472, %v2023_v25 }
0x1dd3   :  { %v1211_v29 = vadd.f32 %v1210_v27, %v1203_v26 }
0x1dd5   :  { %v2525_v32 = vadd.f32 1e-06, %v1211_v29 }
0x1dd7   :  { %v1229_v33 = vmul.f32 %v1227_v31, %v2525_v32 }
0x1dd9   :  { %1231 = vrot.lane.b32.xlu2 %v1229_v33, %s2141_s1 }
0x1e33   :  { %v1232_v35 = vpop.permute.xlu2 %1231 }
0x1e34   :  { %v2533_v36 = vadd.f32 %v1232_v35, %v2530_v7 }
0x1e36   :  { %1242 = vperm.xlu0 %1911, %v2533_v36  }
0x1ea8   :  { %v1243_v40 = vpop.permute.xlu0 %1242 }
0x1ea9   :  { %v1245_v13 = vmul.f32 %v2441_v2, %v1243_v40 }
0x1eab   :  { %v1277_v37 = vadd.f32 %v1276_v46, %v1245_v13 }
0x1ead   :  { %2024 = vtanh.f32 %v1277_v37  ;;  %v1875_v16 = vmul.f32 -1.442695, %v1277_v37 }
0x1eaf   :  { %2026 = vpow2.f32 %v1875_v16 }
0x1eb3   :  { %v2025_v54 = vpop.eup %2024 }
0x1eb4   :  { %1300 = vrot.lane.b32.xlu1 %v2025_v54, %s2138_s24 }
0x1eb5   :  { %v2027_v55 = vpop.eup %2026 }
0x1eb6   :  { %v1281_v41 = vadd.f32 1.0, %v2027_v55 }
0x1eb8   :  { %2028 = vrcp.f32 %v1281_v41  ;;  %v1293_v5 = vand.u32 2147483648, %v1281_v41  ;;  %vm1287_vm2 = vweird.f32 %v1281_v41  ;;  %v1291_v6 = vand.u32 2147483647, %v1281_v41 }
0x1eba   :  { %v1294_v44 = vor.u32 1.1754944e-38, %v1293_v5  ;;  %vm1292_vm4 = vcmp.eq.f32.partialorder %v1291_v6, 8.507059e+37 }
0x1ebe   :  { %v2029_v63 = vpop.eup %2028 }
0x1ebf   :  { %v1283_v0 = vmul.f32 %v2029_v63, %v1281_v41  ;;  %vm1288_vm0 = vweird.f32 %v2029_v63 }
0x1ec0   :  { %vm1289_vm3 = vmor %vm1287_vm2, %vm1288_vm0  ;;  %vm631_vm0 = vcmask 260102   ;;  %vm820_vm2 = vcmask 64568  }
0x1ec1   :  { %v1284_v1 = vsub.f32 1.0, %v1283_v0 }
0x1ec3   :  { %v1285_v3 = vmul.f32 %v2029_v63, %v1284_v1 }
0x1ec5   :  { %v1286_v4 = vadd.f32 %v2029_v63, %v1285_v3 }
0x1ec7   :  { %v1290_v43 = vsel %vm1289_vm3, %v2029_v63, %v1286_v4  ;;  %vm1633_vm3 = vcmask 1046528  }
0x1ec8   :  { %v1295_v45 = vsel %vm1292_vm4, %v1294_v44, %v1290_v43  ;;  %vm1019_vm4 = vcmask 72768  }
0x1ec9   :  { %v1298_v9 = vmul.f32 %v1295_v45, %v2500_v34 }
0x1f26   :  { %v1301_v8 = vpop.permute.xlu1 %1300 }
0x1f27   :  { %v1303_v52 = vmul.f32 %v1301_v8, %v1295_v45 }
0x1f29   :  { %1305 = vrot.lane.b32.xlu2 %v1303_v52, %s2138_s24 }
0x1f83   :  { %v1306_v10 = vpop.permute.xlu2 %1305 }
0x1f84   :  { %v2541_v11 = vadd.f32 %v1306_v10, %v1298_v9 }
0x1f86   :  { %2030 = vtanh.f32 %v2541_v11 }
0x1f8c   :  { %v2031_v12 = vpop.eup %2030 }
0x1f8d   :  { %1311 = vrot.lane.b32.xlu0 %v2031_v12, %s2138_s24 }
0x1fff   :  { %v1312_v20 = vpop.permute.xlu0 %1311 }
0x2000   :  { %v1314_v22 = vmul.f32 %v1312_v20, %v1295_v45 }
0x2002   :  { %v1315_v24 = vmul.f32 %v1314_v22, %v2324_v48  ;;  %v1321_v27 = vmul.f32 %v1314_v22, %v2348_v57  ;;  %v1319_v54 = vmul.f32 %v1314_v22, %v2399_v19 }
0x2004   :  { %v1316_v25 = vadd.f32 %v1315_v24, %v2336_v53  ;;  %v1322_v34 = vadd.f32 %v1321_v27, %v2354_v60  ;;  %v1320_v16 = vadd.f32 %v1319_v54, %v2405_v21 }
0x2006   :  { %v1317_v26 = vmul.f32 1.442695, %v1316_v25 }
0x2008   :  { %2032 = vpow2.f32 %v1317_v26  ;;  %v1473_v26 = vperm.slane %v2288_v50, 3 }
0x200e   :  { %v2033_v29 = vpop.eup %2032 }
0x200f   :  { %1330 = vrot.lane.b32.xlu1 %v2033_v29, %s2139_s25  ;;  %v1323_v31 = vmul.f32 %v2033_v29, %v1322_v34 }
0x2011   :  { %1332 = vrot.lane.b32.xlu2 %v1323_v31, %s2139_s25 }
0x2019   :  { %1449 = vrot.lane.b32.xlu2 %v1314_v22, %s2139_s25 }
0x206b   :  { %v1333_v33 = vpop.permute.xlu2 %1332 }
0x2073   :  { %v1450_v35 = vpop.permute.xlu2 %1449 }
0x2074   :  { %1879 = vmatmul.msk.f32.vlgmr.msrb.gmra.mxu3 %vm94_vm7, %v1450_v35 }
0x2081   :  { %v1331_v38 = vpop.permute.xlu1 %1330 }
0x2082   :  { %1876 = vmatmul.msk.f32.vlgmr.msra.gmra.mxu1 %vm94_vm7, %v1331_v38 }
0x208a   :  { %1877 = vmatmul.msk.f32.gmra.mxu1 %vm94_vm7, %v1333_v33 }
0x20f7   :  { %v1470_v25 = vpop.f32.mrf.mxu3 }
0x20f8   :  { %v1474_v34 = vadd.f32 %v1473_v26, %v1470_v25 }
0x20ff   :  { %v1355_v39 = vpop.f32.mrf.mxu1 }
0x2100   :  { %v1361_v40 = vadd.f32 1e-09, %v1355_v39 }
0x2102   :  { %2034 = vrcp.f32 %v1361_v40 }
0x2107   :  { %v1358_v46 = vpop.f32.mrf.mxu1 }
0x2108   :  { %v2035_v13 = vpop.eup %2034 }
0x2109   :  { %v1363_v37 = vmul.f32 %v2035_v13, %v1358_v46 }
0x210b   :  { %1365 = vrot.lane.b32.xlu0 %v1363_v37, %s2139_s25 }
0x2113   :  { %1424 = vrot.lane.b32.xlu0 %v2412_v28, %s2145_s21 }
0x217d   :  { %v1366_v55 = vpop.permute.xlu0 %1365 }
0x217e   :  { %v1368_v41 = vadd.f32 %v1366_v55, %v1320_v16 }
0x2180   :  { %2036 = vtanh.f32 %v1368_v41 }
0x2185   :  { %v1425_v9 = vpop.permute.xlu0 %1424 }
0x2186   :  { %v2037_v63 = vpop.eup %2036 }
0x2187   :  { %1375 = vrot.lane.b32.xlu1 %v2037_v63, %s2139_s25 }
0x21f9   :  { %v1376_v0 = vpop.permute.xlu1 %1375 }
0x21fa   :  { %1878 = vmatmul.msk.f32.vlgmr.msrb.gmra.mxu2 %vm94_vm7, %v1376_v0 }
0x227d   :  { %v1396_v1 = vpop.f32.mrf.mxu2 }
0x227e   :  { %v1400_v3 = vadd.f32 %v1396_v1, %v2416_v30  ;;  %v2567_v20 = vadd.f32 %v1396_v1, %v2425_v56 }
0x2280   :  { %v1402_v4 = vand.u32 2147483647, %v1400_v3  ;;  %v1401_v8 = vmax.f32 %v1400_v3, 0.0 }
0x2282   :  { %v1403_v5 = vsub.f32 0.0, %v1402_v4 }
0x2284   :  { %v1404_v6 = vmul.f32 1.442695, %v1403_v5 }
0x2286   :  { %2038 = vpow2.f32 %v1404_v6 }
0x228c   :  { %v2039_v43 = vpop.eup %2038 }
0x228d   :  { %v1406_v28 = vadd.f32 1.0, %v2039_v43 }
0x228f   :  { %2040 = vlog2.f32 %v1406_v28 }
0x2295   :  { %v2041_v44 = vpop.eup %2040 }
0x2296   :  { %v1408_v45 = vmul.f32 0.6931472, %v2041_v44 }
0x2298   :  { %v1409_v52 = vadd.f32 %v1408_v45, %v1401_v8 }
0x229a   :  { %v2562_v10 = vadd.f32 1e-06, %v1409_v52 }
0x229c   :  { %v1427_v12 = vmul.f32 %v1425_v9, %v2562_v10 }
0x229e   :  { %1429 = vrot.lane.b32.xlu1 %v1427_v12, %s2141_s1 }
0x2310   :  { %v1430_v22 = vpop.permute.xlu1 %1429 }
0x2311   :  { %v2570_v24 = vadd.f32 %v1430_v22, %v2567_v20 }
0x2313   :  { %1440 = vperm.xlu2 %1912, %v2570_v24  }
0x236d   :  { %v1441_v27 = vpop.permute.xlu2 %1440 }
0x236e   :  { %v1443_v29 = vmul.f32 %v2441_v2, %v1441_v27 }
0x2370   :  { %v1475_v31 = vadd.f32 %v1474_v34, %v1443_v29 }
0x2372   :  { %2042 = vtanh.f32 %v1475_v31  ;;  %v1880_v35 = vmul.f32 -1.442695, %v1475_v31 }
0x2374   :  { %2044 = vpow2.f32 %v1880_v35 }
0x2378   :  { %v2043_v33 = vpop.eup %2042 }
0x2379   :  { %1498 = vrot.lane.b32.xlu0 %v2043_v33, %s2138_s24 }
0x237a   :  { %v2045_v38 = vpop.eup %2044 }
0x237b   :  { %v1479_v39 = vadd.f32 1.0, %v2045_v38 }
0x237d   :  { %2046 = vrcp.f32 %v1479_v39  ;;  %v1491_v50 = vand.u32 2147483648, %v1479_v39  ;;  %vm1485_vm9 = vweird.f32 %v1479_v39  ;;  %v1489_v16 = vand.u32 2147483647, %v1479_v39 }
0x237f   :  { %v1492_v55 = vor.u32 1.1754944e-38, %v1491_v50  ;;  %vm1490_vm11 = vcmp.eq.f32.partialorder %v1489_v16, 8.507059e+37 }
0x2383   :  { %v2047_v40 = vpop.eup %2046 }
0x2384   :  { %v1481_v46 = vmul.f32 %v2047_v40, %v1479_v39  ;;  %vm1486_vm5 = vweird.f32 %v2047_v40 }
0x2385   :  { %vm1487_vm10 = vmor %vm1485_vm9, %vm1486_vm5  ;;  %vm1217_vm5 = vcmask 80968   ;;  %vm1041_vm9 = vcmask 15368  }
0x2386   :  { %v1482_v13 = vsub.f32 1.0, %v1481_v46 }
0x2388   :  { %v1483_v37 = vmul.f32 %v2047_v40, %v1482_v13 }
0x238a   :  { %v1484_v54 = vadd.f32 %v2047_v40, %v1483_v37 }
0x238c   :  { %v1488_v2 = vsel %vm1487_vm10, %v2047_v40, %v1484_v54  ;;  %vm1239_vm10 = vcmask 23568  }
0x238d   :  { %v1493_v63 = vsel %vm1490_vm11, %v1492_v55, %v1488_v2  ;;  %vm1613_vm11 = vcmask 97368  }
0x238e   :  { %v1496_v1 = vmul.f32 %v1493_v63, %v2541_v11 }
0x23eb   :  { %v1499_v41 = vpop.permute.xlu0 %1498 }
0x23ec   :  { %v1501_v0 = vmul.f32 %v1499_v41, %v1493_v63 }
0x23ee   :  { %1503 = vrot.lane.b32.xlu1 %v1501_v0, %s2138_s24 }
0x2460   :  { %v1504_v3 = vpop.permute.xlu1 %1503 }
0x2461   :  { %v1506_v4 = vadd.f32 %v1504_v3, %v1496_v1 }
0x2463   :  { %2048 = vtanh.f32 %v1506_v4 }
0x2469   :  { %v2049_v5 = vpop.eup %2048 }
0x246a   :  { %1509 = vrot.lane.b32.xlu2 %v2049_v5, %s2138_s24  ;;  %s2146_s24 = smov 7  }
0x2472   :  { %233 = vrot.lane.b32.xlu2 %v2243_v58, %s2139_s25 }
0x247a   :  { %470 = vrot.lane.b32.xlu2 %v2270_v17, %s2139_s25 }
0x24c4   :  { %v1510_v6 = vpop.permute.xlu2 %1509 }
0x24c5   :  { %v2583_v43 = vmul.f32 %v1510_v6, %v1493_v63 }
0x24c7   :  { %v1513_v28 = vmul.f32 %v2583_v43, %v2324_v48  ;;  %v1519_v45 = vmul.f32 %v2583_v43, %v2348_v57  ;;  %v1517_v1 = vmul.f32 %v2583_v43, %v2399_v19 }
0x24c9   :  { %v1514_v11 = vadd.f32 %v1513_v28, %v2336_v53  ;;  %v1520_v58 = vadd.f32 %v1519_v45, %v2354_v60  ;;  %v1518_v3 = vadd.f32 %v1517_v1, %v2405_v21 }
0x24cb   :  { %v1515_v44 = vmul.f32 1.442695, %v1514_v11 }
0x24cc   :  { %v234_v8 = vpop.permute.xlu2 %233 }
0x24cd   :  { %2050 = vpow2.f32 %v1515_v44  ;;  %237 = vst.msk [vmem:[#allocation2] sm:$0x2] %vm236_vm12, %v234_v8  ;;  %vm1766_vm12 = vcmask 39968  }
0x24d3   :  { %v2051_v17 = vpop.eup %2050 }
0x24d4   :  { %1528 = vrot.lane.b32.xlu0 %v2051_v17, %s2139_s25  ;;  %v471_v52 = vpop.permute.xlu2 %470  ;;  %v1521_v9 = vmul.f32 %v2051_v17, %v1520_v58 }
0x24d5   :  { %474 = vst.msk [vmem:[#allocation2] sm:$0x10] %vm473_vm13, %v471_v52  ;;  %vm1779_vm13 = vcmask 48168  }
0x24d6   :  { %1530 = vrot.lane.b32.xlu1 %v1521_v9, %s2139_s25 }
0x24dc   :  { %312 = vrot.lane.b32.xlu0 %v2252_v23, %s2139_s25 }
0x24de   :  { %391 = vrot.lane.b32.xlu1 %v2261_v51, %s2139_s25 }
0x24e4   :  { %549 = vrot.lane.b32.xlu0 %v2283_v47, %s2139_s25 }
0x24e6   :  { %628 = vrot.lane.b32.xlu1 %v2294_v15, %s2139_s25 }
0x24ee   :  { %817 = vrot.lane.b32.xlu1 %v815_v61, %s2146_s24 }
0x24f6   :  { %1022 = vrot.lane.b32.xlu1 %v2484_v14, %s2146_s24  ;;  %s1807_s24 = sshll.u32 %s2735_s7, 4  ;;  %s2158_s7 = smov [#allocation7]   ;;  %s1808_s24 = int_to_ptr.hbm [resolvable:$true] %s1807_s24 }
0x24fe   :  { %1220 = vrot.lane.b32.xlu1 %v2525_v32, %s2147_s22 }
0x2506   :  { %1418 = vrot.lane.b32.xlu1 %v2562_v10, %s2148_s23 }
0x2546   :  { %v1529_v23 = vpop.permute.xlu0 %1528 }
0x2547   :  { %1881 = vmatmul.msk.f32.vlgmr.msra.gmra.mxu0 %vm94_vm7, %v1529_v23 }
0x2548   :  { %v1531_v51 = vpop.permute.xlu1 %1530 }
0x254e   :  { %v313_v47 = vpop.permute.xlu0 %312 }
0x254f   :  { %316 = vst.msk [vmem:[#allocation2] sm:$0x4] %vm315_vm1, %v313_v47  ;;  %1882 = vmatmul.msk.f32.gmra.mxu0 %vm94_vm7, %v1531_v51  ;;  %vm1792_vm1 = vcmask 56368  }
0x2550   :  { %v392_v15 = vpop.permute.xlu1 %391 }
0x2551   :  { %395 = vst.msk [vmem:[#allocation2] sm:$0x8] %vm394_vm14, %v392_v15 }
0x2556   :  { %v550_v59 = vpop.permute.xlu0 %549 }
0x2557   :  { %553 = vst.msk [vmem:[#allocation2] sm:$0x20] %vm552_vm15, %v550_v59 }
0x2558   :  { %v629_v61 = vpop.permute.xlu1 %628 }
0x2559   :  { %632 = vst.msk [vmem:[#allocation2] sm:$0x40] %vm631_vm0, %v629_v61 }
0x2560   :  { %v818_v14 = vpop.permute.xlu1 %817  ;;  %v1620_v32 = vld [vmem:[#allocation2] sm:$0x7f] }
0x2561   :  { %821 = vst.msk [vmem:[#allocation6] sm:$0xff] %vm820_vm2, %v818_v14  ;;  %v1621_v10 = vmul.f32 %v1620_v32, %v2324_v48  ;;  %v1627_v25 = vmul.f32 %v1620_v32, %v2348_v57  ;;  %v1685_v57 = vld [vmem:[%s2733_s5 + $0x18] sm:$0xff]  ;;  %v1625_v46 = vmul.f32 %v1620_v32, %v2399_v19 }
0x2562   :  { %1701 = vmatpush.msrb.mxu1 %v1685_v57  ;;  %1589 = vmatpush.msra.mxu2 %v1685_v57 }
0x2563   :  { %v1622_v12 = vadd.f32 %v1621_v10, %v2336_v53  ;;  %v1628_v26 = vadd.f32 %v1627_v25, %v2354_v60  ;;  %v1684_v60 = vld [vmem:[%s2733_s5 + $0x10] sm:$0xff]  ;;  %v1626_v2 = vadd.f32 %v1625_v46, %v2405_v21 }
0x2564   :  { %1702 = vmatpush.msrb.mxu1 %v1684_v60  ;;  %1590 = vmatpush.msra.mxu2 %v1684_v60 }
0x2565   :  { %v1623_v22 = vmul.f32 1.442695, %v1622_v12 }
0x2566   :  { %1703 = vmatpush.msrb.mxu1 %v1683_v42  ;;  %1591 = vmatpush.msra.mxu2 %v1683_v42 }
0x2567   :  { %2052 = vpow2.f32 %v1623_v22 }
0x2568   :  { %v1023_v0 = vpop.permute.xlu1 %1022 }
0x256d   :  { %v2053_v27 = vpop.eup %2052 }
0x256e   :  { %v1629_v34 = vmul.f32 %v2053_v27, %v1628_v26 }
0x2570   :  { %v1631_v29 = vrot.slane %v1629_v34, 1  ;;  %v1221_v5 = vpop.permute.xlu1 %1220 }
0x2572   :  { %v1634_v31 = vsel %vm1633_vm3, %v2053_v27, %v1631_v29 }
0x2573   :  { %1884 = vmatmul.msk.f32.vlgmr.msra.gmra.mxu3 %vm94_vm7, %v1634_v31 }
0x2578   :  { %v1419_v44 = vpop.permute.xlu1 %1418 }
0x257b   :  { %1885 = vmatmul.msk.f32.gmra.mxu3 %vm94_vm7, %v1631_v29 }
0x25c4   :  { %v1553_v33 = vpop.f32.mrf.mxu0 }
0x25c5   :  { %v1559_v35 = vadd.f32 1e-09, %v1553_v33 }
0x25c7   :  { %2054 = vrcp.f32 %v1559_v35 }
0x25cc   :  { %v1556_v48 = vpop.f32.mrf.mxu0 }
0x25cd   :  { %v2055_v53 = vpop.eup %2054 }
0x25ce   :  { %v1561_v38 = vmul.f32 %v2055_v53, %v1556_v48 }
0x25d0   :  { %1563 = vrot.lane.b32.xlu2 %v1561_v38, %s2139_s25 }
0x25d8   :  { %824 = vrot.lane.b32.xlu2 %v822_v49, %s2149_s26  ;;  %v1682_v49 = vld [vmem:[%s2733_s5] sm:$0xff] }
0x25d9   :  { %1704 = vmatpush.msrb.mxu1 %v1682_v49  ;;  %1592 = vmatpush.msra.mxu2 %v1682_v49 }
0x25e0   :  { %1038 = vrot.lane.b32.xlu2 %v2492_v62, %s2150_s27 }
0x25e8   :  { %1236 = vrot.lane.b32.xlu2 %v2533_v36, %s2151_s0 }
0x25f6   :  { %v1661_v62 = vpop.f32.mrf.mxu3 }
0x25f7   :  { %v1667_v36 = vadd.f32 1e-09, %v1661_v62 }
0x25f9   :  { %2056 = vrcp.f32 %v1667_v36 }
0x25fe   :  { %v1664_v13 = vpop.f32.mrf.mxu3 }
0x25ff   :  { %v2057_v39 = vpop.eup %2056 }
0x2600   :  { %v1670_v40 = vrot.slane %v2057_v39, 1 }
0x2602   :  { %v1672_v37 = vmul.f32 %v1670_v40, %v1661_v62  ;;  %v1673_v54 = vmul.f32 %v1670_v40, %v1664_v13 }
0x2604   :  { %v1676_v50 = vrot.slane %v1672_v37, 7  ;;  %v1677_v16 = vrot.slane %v1673_v54, 7 }
0x2606   :  { %v1678_v55 = vsel %vm727_vm6, %v1676_v50, %v1677_v16  ;;  %vm1415_vm6 = vcmask 89168  }
0x2607   :  { %v1680_v41 = vadd.f32 %v1678_v55, %v1626_v2 }
0x2609   :  { %2058 = vtanh.f32 %v1680_v41 }
0x260f   :  { %v2059_v63 = vpop.eup %2058 }
0x2610   :  { %1886 = vmatmul.msk.f32.vlgmr.msrb.gmra.mxu1 %vm94_vm7, %v2059_v63 }
0x262a   :  { %v1564_v4 = vpop.permute.xlu2 %1563 }
0x262b   :  { %v1566_v6 = vadd.f32 %v1564_v4, %v1518_v3 }
0x262d   :  { %2060 = vtanh.f32 %v1566_v6 }
0x2632   :  { %v825_v28 = vpop.permute.xlu2 %824 }
0x2633   :  { %v2061_v11 = vpop.eup %2060  ;;  %827 = vst.msk [vmem:[#allocation7] sm:$0xff] %vm820_vm2, %v825_v28 }
0x2634   :  { %1025 = vst.msk [vmem:[#allocation7] sm:$0xff] %vm1019_vm4, %v1023_v0  ;;  %1573 = vrot.lane.b32.xlu0 %v2061_v11, %s2139_s25 }
0x2635   :  { %1223 = vst.msk [vmem:[#allocation7] sm:$0xff] %vm1217_vm5, %v1221_v5 }
0x2636   :  { %1421 = vst.msk [vmem:[#allocation7] sm:$0xff] %vm1415_vm6, %v1419_v44 }
0x263a   :  { %v1039_v19 = vpop.permute.xlu2 %1038 }
0x263b   :  { %1042 = vst.msk [vmem:[%s2737_s9] sm:$0xff] %vm1041_vm9, %v1039_v19 }
0x263c   :  { %1016 = vrot.lane.b32.xlu0 %v2489_v18, %s2147_s22  ;;  %s1816_s22 = sshll.u32 %s2158_s7, 4  ;;  %s1817_s22 = int_to_ptr.vmem [resolvable:$true] %s1816_s22 }
0x2642   :  { %v1237_v21 = vpop.permute.xlu2 %1236 }
0x2643   :  { %1240 = vst.msk [vmem:[%s2737_s9] sm:$0xff] %vm1239_vm10, %v1237_v21 }
0x2644   :  { %1214 = vrot.lane.b32.xlu0 %v2530_v7, %s2148_s23 }
0x264c   :  { %1412 = vrot.lane.b32.xlu0 %v2567_v20, %s2152_s16 }
0x268d   :  { %v1706_v43 = vpop.f32.mrf.mxu1 }
0x268e   :  { %v2664_v8 = vadd.f32 %v1706_v43, %v2425_v56  ;;  %v1710_v18 = vadd.f32 %v1706_v43, %v2416_v30 }
0x2690   :  { %v1712_v45 = vand.u32 2147483647, %v1710_v18  ;;  %v1729_v58 = vperm.slane %v2664_v8, 1  ;;  %v1737_v17 = vperm.slane %v2664_v8, 2  ;;  %v1749_v20 = vperm.slane %v2664_v8, 3 }
0x2691   :  { %v1711_v47 = vmax.f32 %v1710_v18, 0.0  ;;  %v1774_v26 = vperm.slane %v2664_v8, 5  ;;  %v1761_v34 = vperm.slane %v2664_v8, 4  ;;  %v1787_v62 = vperm.slane %v2664_v8, 6 }
0x2692   :  { %v1713_v52 = vsub.f32 0.0, %v1712_v45  ;;  %1731 = vrot.lane.b32.xlu2 %v1729_v58, %s2150_s27  ;;  %1739 = vrot.lane.b32.xlu0 %v1737_v17, %s2151_s0  ;;  %v1721_v63 = vperm.slane %v2664_v8, 0 }
0x2694   :  { %v1714_v7 = vmul.f32 1.442695, %v1713_v52 }
0x2696   :  { %2062 = vpow2.f32 %v1714_v7 }
0x269a   :  { %1751 = vrot.lane.b32.xlu2 %v1749_v20, %s2153_s17 }
0x269c   :  { %v2063_v9 = vpop.eup %2062 }
0x269d   :  { %v1716_v23 = vadd.f32 1.0, %v2063_v9 }
0x269f   :  { %2064 = vlog2.f32 %v1716_v23 }
0x26a5   :  { %v2065_v51 = vpop.eup %2064 }
0x26a6   :  { %v1718_v15 = vmul.f32 0.6931472, %v2065_v51  ;;  %v1574_v59 = vpop.permute.xlu0 %1573 }
0x26a7   :  { %1883 = vmatmul.msk.f32.vlgmr.msra.gmra.mxu2 %vm94_vm7, %v1574_v59  ;;  %vm1437_vm7 = vcmask 31768  }
0x26a8   :  { %v1719_v61 = vadd.f32 %v1718_v15, %v1711_v47 }
0x26aa   :  { %v2674_v14 = vadd.f32 1e-06, %v1719_v61 }
0x26ac   :  { %v1723_v32 = vperm.slane %v2674_v14, 0  ;;  %v1768_v10 = vperm.slane %v2674_v14, 4  ;;  %v1755_v12 = vperm.slane %v2674_v14, 3  ;;  %v1743_v25 = vperm.slane %v2674_v14, 2 }
0x26ad   :  { %v1781_v31 = vperm.slane %v2674_v14, 5  ;;  %v1794_v54 = vperm.slane %v2674_v14, 6  ;;  %v1735_v5 = vperm.slane %v2674_v14, 1 }
0x26ae   :  { %1725 = vrot.lane.b32.xlu1 %v1723_v32, %s2141_s1  ;;  %1770 = vrot.lane.b32.xlu2 %v1768_v10, %s2153_s17  ;;  %v1017_v22 = vpop.permute.xlu0 %1016  ;;  %s2155_s1 = smov 4  }
0x26af   :  { %1757 = vrot.lane.b32.xlu0 %v1755_v12, %s2151_s0  ;;  %1020 = vst.msk [vmem:[#allocation6] sm:$0xff] %vm1019_vm4, %v1017_v22 }
0x26b6   :  { %1745 = vrot.lane.b32.xlu1 %v1743_v25, %s2150_s27  ;;  %v1215_v27 = vpop.permute.xlu0 %1214  ;;  %s1818_s27 = sshll.u32 %s2736_s8, 4  ;;  %s1819_s27 = int_to_ptr.hbm [resolvable:$true] %s1818_s27 }
0x26b7   :  { %1776 = vrot.lane.b32.xlu0 %v1774_v26, %s2154_s4  ;;  %1218 = vst.msk [vmem:[#allocation6] sm:$0xff] %vm1217_vm5, %v1215_v27 }
0x26be   :  { %1763 = vrot.lane.b32.xlu1 %v1761_v34, %s2155_s1  ;;  %v1413_v29 = vpop.permute.xlu0 %1412 }
0x26bf   :  { %1416 = vst.msk [vmem:[#allocation6] sm:$0xff] %vm1415_vm6, %v1413_v29 }
0x26c6   :  { %1783 = vrot.lane.b32.xlu1 %v1781_v31, %s2155_s1 }
0x26ce   :  { %1434 = vrot.lane.b32.xlu1 %v2570_v24, %s2153_s17 }
0x26ec   :  { %v1732_v50 = vpop.permute.xlu2 %1731 }
0x26f4   :  { %v1752_v16 = vpop.permute.xlu2 %1751 }
0x2704   :  { %v1740_v2 = vpop.permute.xlu0 %1739 }
0x2708   :  { %v1771_v55 = vpop.permute.xlu2 %1770 }
0x2720   :  { %v1726_v33 = vpop.permute.xlu1 %1725 }
0x2721   :  { %v1758_v41 = vpop.permute.xlu0 %1757 }
0x2728   :  { %v1746_v35 = vpop.permute.xlu1 %1745 }
0x2729   :  { %v1777_v1 = vpop.permute.xlu0 %1776 }
0x272a   :  { %v1594_v48 = vpop.f32.mrf.mxu2 }
0x272b   :  { %v1597_v53 = vadd.f32 %v1594_v48, %v2425_v56  ;;  %v1598_v38 = vadd.f32 %v1594_v48, %v2416_v30 }
0x272d   :  { %v1600_v57 = vand.u32 2147483647, %v1598_v38  ;;  %1610 = vrot.lane.b32.xlu2 %v1597_v53, %s2156_s18  ;;  %v1599_v56 = vmax.f32 %v1598_v38, 0.0 }
0x272f   :  { %v1601_v60 = vsub.f32 0.0, %v1600_v57 }
0x2730   :  { %v1764_v42 = vpop.permute.xlu1 %1763 }
0x2731   :  { %v1602_v49 = vmul.f32 1.442695, %v1601_v60 }
0x2733   :  { %2066 = vpow2.f32 %v1602_v49 }
0x2735   :  { %1789 = vrot.lane.b32.xlu2 %v1787_v62, %s2149_s26 }
0x2738   :  { %v1784_v36 = vpop.permute.xlu1 %1783 }
0x2739   :  { %v2067_v24 = vpop.eup %2066 }
0x273a   :  { %v1604_v39 = vadd.f32 1.0, %v2067_v24 }
0x273c   :  { %2068 = vlog2.f32 %v1604_v39 }
0x2740   :  { %v1435_v40 = vpop.permute.xlu1 %1434 }
0x2741   :  { %1438 = vst.msk [vmem:[%s2737_s9] sm:$0xff] %vm1437_vm7, %v1435_v40  ;;  %s2157_s9 = smov [#allocation6]  }
0x2742   :  { %v2069_v30 = vpop.eup %2068  ;;  %s1805_s3 = sshll.u32 %s2157_s9, 4  ;;  %s1806_s3 = int_to_ptr.vmem [resolvable:$true] %s1805_s3 }
0x2743   :  { %v1606_v46 = vmul.f32 0.6931472, %v2069_v30 }
0x2745   :  { %v1607_v13 = vadd.f32 %v1606_v46, %v1599_v56 }
0x2747   :  { %v1608_v37 = vadd.f32 1e-06, %v1607_v13 }
0x2749   :  { %1616 = vrot.lane.b32.xlu0 %v1608_v37, %s2152_s16 }
0x2751   :  { %1796 = vrot.lane.b32.xlu0 %v1794_v54, %s2154_s4 }
0x2787   :  { %v1611_v0 = vpop.permute.xlu2 %1610 }
0x2788   :  { %1614 = vst.msk [vmem:[#allocation6] sm:$0xff] %vm1613_vm11, %v1611_v0 }
0x2789   :  { %1722 = vst.msk [vmem:[#allocation6] sm:$0xff] %vm839_vm8, %v1721_v63 }
0x278a   :  { %1734 = vst.msk [vmem:[#allocation6] sm:$0xff] %vm1041_vm9, %v1732_v50 }
0x278b   :  { %1742 = vst.msk [vmem:[#allocation6] sm:$0xff] %vm1239_vm10, %v1740_v2 }
0x278c   :  { %1754 = vst.msk [vmem:[#allocation6] sm:$0xff] %vm1437_vm7, %v1752_v16 }
0x278d   :  { %1767 = vst.msk [vmem:[#allocation6] sm:$0xff] %vm1766_vm12, %v1764_v42 }
0x278e   :  { %1780 = vst.msk [vmem:[#allocation6] sm:$0xff] %vm1779_vm13, %v1777_v1 }
0x278f   :  { %v1790_v3 = vpop.permute.xlu2 %1789 }
0x2790   :  { %1793 = vst.msk [vmem:[#allocation6] sm:$0xff] %vm1792_vm1, %v1790_v3 }
0x2791   :  { %1810 = dma.vmem_to_hbm [thread:$0]  %s1806_s3, 128, %s1808_s24, [#allocation4]  }
0x27bb   :  { %v1617_v4 = vpop.permute.xlu0 %1616 }
0x27bc   :  { %1619 = vst.msk [vmem:[#allocation7] sm:$0xff] %vm1613_vm11, %v1617_v4 }
0x27bd   :  { %1728 = vst.msk [vmem:[#allocation7] sm:$0xff] %vm839_vm8, %v1726_v33 }
0x27be   :  { %1736 = vst.msk [vmem:[#allocation7] sm:$0xff] %vm1041_vm9, %v1735_v5 }
0x27bf   :  { %1748 = vst.msk [vmem:[#allocation7] sm:$0xff] %vm1239_vm10, %v1746_v35 }
0x27c0   :  { %1760 = vst.msk [vmem:[#allocation7] sm:$0xff] %vm1437_vm7, %v1758_v41 }
0x27c1   :  { %1773 = vst.msk [vmem:[#allocation7] sm:$0xff] %vm1766_vm12, %v1771_v55 }
0x27c2   :  { %1786 = vst.msk [vmem:[#allocation7] sm:$0xff] %vm1779_vm13, %v1784_v36 }
0x27c3   :  { %v1797_v6 = vpop.permute.xlu0 %1796 }
0x27c4   :  { %1799 = vst.msk [vmem:[#allocation7] sm:$0xff] %vm1792_vm1, %v1797_v6 }
0x27c5   :  { %1821 = dma.vmem_to_hbm [thread:$0]  %s1817_s22, 128, %s1819_s27, [#allocation8]  }
0x27c6   :  { %2132 = dma.done.wait [#allocation4], 128  }
0x27c7   :  { %2133 = vsyncadd [#allocation4], 4294967168 }
0x27c8   :  { %2134 = dma.done.wait [#allocation8], 128  }
0x27c9   :  { %2135 = vsyncadd [#allocation8], 4294967168 }
0x27ca   :  { %1834 = vsyncpa [#allocation4], 1 }
0x27cb   :  { %1835 = vsyncpa [#allocation8], 1 }
0x27cc   :  { %1836 = vsyncpa [#allocation5], 1 }

</bundles_post_ra>
